<compile_context>
chip_gen: v7x
topology: tpu7x:2x2x1
jax: 0.10.0
libtpu: 0.0.40
codegen_flags: <defaults>
</compile_context>

<pallas_src>
import functools

import jax
import jax.numpy as jnp
from jax.experimental import pallas as pl
from jax.experimental.pallas import tpu as pltpu

# ----------------------------- model configuration --------------------------
N_LEADS = 2
CLASSES = ("N", "S", "V")                   # -> n_classes = 3
N_CLASSES = len(CLASSES)
SEQ_LEN = 32
BATCH = 2

# MultiScopicCNN: 2 branches x 2 blocks x 2 dilated convs ('same' padding,
# bias, ReLU), then per-block BatchNorm1d (eval) + MaxPool1d(subsample).
SCOPES = (((1, 1), (2, 2)),
          ((2, 4), (4, 8)))                 # dilations per branch/block/conv
NUM_FILTERS = (((4, 8), (8, 16)),
               ((4, 8), (8, 16)))
FILTER_LENGTHS = (((3, 3), (3, 3)),
                  ((5, 5), (5, 5)))
SUBSAMPLE = ((2, 2), (2, 2))
SE_REDUCTION = 4
CLF_HIDDEN = (16, 8)                        # clf.out_channels; +[n_classes]
BN_EPS = 1e-5

N_BRANCHES = len(SCOPES)
N_BLOCKS = len(SCOPES[0])


# ----------------------------- derived static sizes -------------------------
def _derived():
    blk_len, blk_ch = [], []
    length = SEQ_LEN
    for k in range(N_BLOCKS):
        blk_len.append(length)
        blk_ch.append(NUM_FILTERS[0][k][-1])
        length //= SUBSAMPLE[0][k]
    return tuple(blk_len), tuple(blk_ch), length


BLOCK_LEN, BLOCK_CH, OUT_LEN = _derived()

# All branches must share per-block output channels / subsampling so the
# per-block pooling scratch can be reused and branches concat cleanly.
for _b in range(N_BRANCHES):
    assert SUBSAMPLE[_b] == SUBSAMPLE[0]
    for _k in range(N_BLOCKS):
        assert NUM_FILTERS[_b][_k][-1] == BLOCK_CH[_k]
# Power-of-two lengths: the batch-boundary mask uses `iota & (length-1)`.
for _l in BLOCK_LEN:
    assert _l & (_l - 1) == 0 and _l % 1 == 0

C_CNN = sum(NUM_FILTERS[b][-1][-1] for b in range(N_BRANCHES))
C_RED = C_CNN // SE_REDUCTION
CLF_DIMS = (C_CNN,) + CLF_HIDDEN + (N_CLASSES,)


# ----------------------------- parameter packing -----------------------------
_ROW_ALIGN = 8  # sublane tile: every entry starts at an 8-aligned row


def _pack_params(entries):
    """Pack many small 2-D parameter arrays into one (rows, width) f32 blob,
    each entry padded to an 8-row boundary so in-kernel slices are aligned."""
    width = max(a.shape[-1] for _, a in entries)
    layout, rows, r = {}, [], 0
    for name, arr in entries:
        nr, nc = arr.shape
        layout[name] = (r, nr, nc)            # (row offset, n rows, n cols)
        nr_pad = -(-nr // _ROW_ALIGN) * _ROW_ALIGN
        rows.append(jnp.pad(arr.astype(jnp.float32),
                            ((0, nr_pad - nr), (0, width - nc))))
        r += nr_pad
    return jnp.concatenate(rows, axis=0), layout


def _init_params(key):
    keys = iter(jax.random.split(key, 128))

    def nrm(shape, fan_in):
        return (jax.random.normal(next(keys), shape, jnp.float32)
                / jnp.sqrt(jnp.float32(fan_in)))

    entries = []
    # -------- MultiScopicCNN convs + folded eval-mode BatchNorm --------
    for b in range(N_BRANCHES):
        cin = N_LEADS
        for k in range(N_BLOCKS):
            for j in range(len(SCOPES[b][k])):
                ksz = FILTER_LENGTHS[b][k][j]
                cout = NUM_FILTERS[b][k][j]
                w = nrm((ksz, cin, cout), ksz * cin)       # (tap, Cin, Cout)
                entries.append((f"w_{b}_{k}_{j}", w.reshape(ksz * cin, cout)))
                entries.append((f"b_{b}_{k}_{j}", nrm((1, cout), ksz * cin)))
                cin = cout
            gamma = 0.8 + 0.4 * jax.random.uniform(next(keys), (cin,), jnp.float32)
            beta = 0.1 * jax.random.normal(next(keys), (cin,), jnp.float32)
            rmean = 0.1 * jax.random.normal(next(keys), (cin,), jnp.float32)
            rvar = 0.8 + 0.4 * jax.random.uniform(next(keys), (cin,), jnp.float32)
            scale = gamma / jnp.sqrt(rvar + BN_EPS)
            shift = beta - rmean * scale
            entries.append((f"bns_{b}_{k}", scale.reshape(1, -1)))
            entries.append((f"bnh_{b}_{k}", shift.reshape(1, -1)))

    # -------- SEBlock (unsplit: branch outputs are lane-concatenated) --------
    entries.append(("se_w1", nrm((C_CNN, C_RED), C_CNN)))
    entries.append(("se_b1", nrm((1, C_RED), C_CNN)))
    entries.append(("se_w2", nrm((C_RED, C_CNN), C_RED)))
    entries.append(("se_b2", nrm((1, C_CNN), C_RED)))

    # -------- SeqLin classifier --------
    entries.append(("clf_w1", nrm((CLF_DIMS[0], CLF_DIMS[1]), CLF_DIMS[0])))
    entries.append(("clf_b1", nrm((1, CLF_DIMS[1]), CLF_DIMS[0])))
    entries.append(("clf_w2", nrm((CLF_DIMS[1], CLF_DIMS[2]), CLF_DIMS[1])))
    entries.append(("clf_b2", nrm((1, CLF_DIMS[2]), CLF_DIMS[1])))
    entries.append(("clf_w3", nrm((CLF_DIMS[2], CLF_DIMS[3]), CLF_DIMS[2])))
    entries.append(("clf_b3", nrm((1, CLF_DIMS[3]), CLF_DIMS[2])))

    return _pack_params(entries)


# ----------------------------- fused Pallas kernel ---------------------------
def _mish(v):
    """Mish(v) = v * tanh(softplus(v)) with an overflow-safe softplus."""
    sp = jnp.maximum(v, 0.0) + jnp.log(1.0 + jnp.exp(-jnp.abs(v)))
    return v * jnp.tanh(sp)


def _fused_kernel(x_ref, w_ref, o_ref, *pool_refs, layout, batch):
    """Entire ECG_SEQ_LAB_NET forward for the whole (sublane-stacked) batch."""

    def rd(name):
        r0, nr, nc = layout[name]
        return w_ref[pl.ds(r0, nr), pl.ds(0, nc)]

    def dot(a, b):
        # bf16 MXU operands, f32 accumulation.
        return jnp.dot(a.astype(jnp.bfloat16), b.astype(jnp.bfloat16),
                       preferred_element_type=jnp.float32)

    x = x_ref[...]                                        # (batch*L, n_leads)

    # ------------------------- MultiScopicCNN -------------------------
    branch_feats = []
    for b in range(N_BRANCHES):
        h = x
        length, cin = SEQ_LEN, N_LEADS
        for k in range(N_BLOCKS):
            for j in range(len(SCOPES[b][k])):
                ksz = FILTER_LENGTHS[b][k][j]
                dil = SCOPES[b][k][j]
                cout = NUM_FILTERS[b][k][j]
                pad = (ksz - 1) // 2 * dil
                rows = batch * length
                # Local (within-batch-element) sequence index for each row;
                # lengths are powers of two so `&` replaces the modulo.
                local = (jax.lax.broadcasted_iota(jnp.int32, (rows, 1), 0)
                         & (length - 1))
                # im2col LHS: shifted copies of h, masked at the 'same'
                # padding AND at batch-element boundaries (roll is cyclic
                # over the stacked batch, mask kills any cross-element rows).
                taps = []
                for t in range(ksz):                      # static unroll
                    shift = t * dil - pad                 # tap reads h[i+shift]
                    if shift == 0:
                        taps.append(h)
                    elif shift <= -length or shift >= length:
                        taps.append(jnp.zeros_like(h))    # entirely in the pad
                    else:
                        rolled = pltpu.roll(h, shift=(-shift) % rows, axis=0)
                        keep = jnp.where(
                            jnp.logical_and(local + shift >= 0,
                                            local + shift < length),
                            1.0, 0.0)
                        taps.append(rolled * keep)
                lhs = jnp.concatenate(taps, axis=-1)      # (rows, ksz*cin)
                # ONE MXU matmul per conv against the contiguous weight slab.
                h = jnp.maximum(
                    dot(lhs, rd(f"w_{b}_{k}_{j}")) + rd(f"b_{b}_{k}_{j}"), 0.0)
                cin = cout
            # BatchNorm1d (eval, folded) + MaxPool1d(ds, stride=ds) via a
            # single VMEM staging store and stride-`ds` sublane reads.
            ds = SUBSAMPLE[b][k]
            out_l = length // ds
            out_rows = batch * out_l
            xn = h * rd(f"bns_{b}_{k}") + rd(f"bnh_{b}_{k}")
            pool_refs[k][...] = xn
            m = pool_refs[k][pl.ds(0, out_rows, stride=ds), :]
            for jj in range(1, ds):
                m = jnp.maximum(m, pool_refs[k][pl.ds(jj, out_rows, stride=ds), :])
            h = m
            length = out_l
            # nn.Dropout: identity at inference
        branch_feats.append(h)                            # (batch*OUT_LEN, 16)

    # ------------------------- rnn = "none" ---------------------------
    # TODO(synk): StackedLSTM branch (config rnn='lstm') not implemented.

    # Lane-concat the branches once; SE / classifier use unsplit weights.
    feats = jnp.concatenate(branch_feats, axis=-1)        # (batch*OUT_LEN, C_CNN)

    # ------------------------- SEBlock attention ----------------------
    pooled = jnp.concatenate(
        [jnp.mean(feats[bi * OUT_LEN:(bi + 1) * OUT_LEN, :],
                  axis=0, keepdims=True)
         for bi in range(batch)], axis=0)                 # (batch, C_CNN)
    u = jnp.maximum(dot(pooled, rd("se_w1")) + rd("se_b1"), 0.0)   # ReLU
    s = dot(u, rd("se_w2")) + rd("se_b2")
    s = pl.reciprocal(1.0 + jnp.exp(-s), approx=True)     # Sigmoid (EUP recip)
    scaled = jnp.concatenate(
        [feats[bi * OUT_LEN:(bi + 1) * OUT_LEN, :] * s[bi:bi + 1, :]
         for bi in range(batch)], axis=0)                 # channel rescale

    # ------------------------- SeqLin classifier ----------------------
    z = _mish(dot(scaled, rd("clf_w1")) + rd("clf_b1"))
    z = _mish(dot(z, rd("clf_w2")) + rd("clf_b2"))
    o_ref[...] = dot(z, rd("clf_w3")) + rd("clf_b3")


# ----------------------------- wrapper ----------------------------------------
def _cost_estimate(batch, blob):
    flops = 0
    for b in range(N_BRANCHES):
        length, cin = SEQ_LEN, N_LEADS
        for k in range(N_BLOCKS):
            for j in range(len(SCOPES[b][k])):
                cout = NUM_FILTERS[b][k][j]
                flops += 2 * length * FILTER_LENGTHS[b][k][j] * cin * cout
                cin = cout
            length //= SUBSAMPLE[b][k]
    flops += 2 * (C_CNN * C_RED + C_RED * C_CNN)          # SE FCs
    for i in range(len(CLF_DIMS) - 1):
        flops += 2 * OUT_LEN * CLF_DIMS[i] * CLF_DIMS[i + 1]
    trans = C_CNN + OUT_LEN * 2 * (CLF_DIMS[1] + CLF_DIMS[2])
    io_bytes = 4 * (N_LEADS * SEQ_LEN + OUT_LEN * N_CLASSES)
    return pl.CostEstimate(flops=int(batch * flops),
                           transcendentals=int(batch * trans),
                           bytes_accessed=int(batch * io_bytes + blob.size * 4))


def ecg_seq_lab_net_forward(x_ncl, blob, layout):
    """x_ncl: (batch, channels, seq_len) as in PyTorch.  Returns raw logits of
    shape (batch, seq_len // 4, n_classes) (recover_length=False, no softmax,
    exactly like the module's forward())."""
    x = jnp.transpose(x_ncl, (0, 2, 1)).astype(jnp.float32)   # NCL -> NLC
    bsz = x.shape[0]
    x_stacked = x.reshape(bsz * SEQ_LEN, N_LEADS)             # batch on sublanes
    kernel = functools.partial(_fused_kernel, layout=layout, batch=bsz)
    out = pl.pallas_call(
        kernel,
        out_shape=jax.ShapeDtypeStruct((bsz * OUT_LEN, N_CLASSES), jnp.float32),
        grid=(1,),                                            # single fused step
        in_specs=[
            pl.BlockSpec((bsz * SEQ_LEN, N_LEADS), lambda i: (0, 0)),
            pl.BlockSpec(blob.shape, lambda i: (0, 0)),       # one weight blob
        ],
        out_specs=pl.BlockSpec((bsz * OUT_LEN, N_CLASSES), lambda i: (0, 0)),
        scratch_shapes=[pltpu.VMEM((bsz * BLOCK_LEN[k], BLOCK_CH[k]), jnp.float32)
                        for k in range(N_BLOCKS)],
        compiler_params=pltpu.CompilerParams(
            dimension_semantics=("arbitrary",)),
        cost_estimate=_cost_estimate(bsz, blob),
    )(x_stacked, blob)
    return out.reshape(bsz, OUT_LEN, N_CLASSES)


# ----------------------------- main -------------------------------------------
if __name__ == "__main__":
    key = jax.random.PRNGKey(0)
    pkey, xkey = jax.random.split(key)
    blob, layout = _init_params(pkey)
    x = jax.random.normal(xkey, (BATCH, N_LEADS, SEQ_LEN), jnp.float32)

    fwd = jax.jit(lambda a, w: ecg_seq_lab_net_forward(a, w, layout))
    pred = jax.block_until_ready(fwd(x, blob))

    assert pred.shape == (BATCH, SEQ_LEN // 4, N_CLASSES), pred.shape
    assert bool(jnp.all(jnp.isfinite(pred)))
    print("KERNEL_OK")
</pallas_src>

<mosaic_0001>
module attributes {stable_mosaic.version = 11 : i64} {
  func.func @_fused_kernel(%arg0: i32, %arg1: memref<64x2xf32, #tpu.memory_space<vmem>>, %arg2: memref<456x32xf32, #tpu.memory_space<vmem>>, %arg3: memref<16x3xf32, #tpu.memory_space<vmem>>, %arg4: memref<64x8xf32, #tpu.memory_space<vmem>>, %arg5: memref<32x16xf32, #tpu.memory_space<vmem>>) attributes {dimension_semantics = [#tpu.dimension_semantics<arbitrary>], iteration_bounds = array<i64: 1>, scalar_prefetch = 0 : i64, scratch_operands = 2 : i64, tpu.core_type = #tpu.core_type<tc>, window_params = [{pipeline_mode = #tpu.pipeline_mode<synchronous>, transform_indices = @transform_0, window_bounds = array<i64: 64, 2>}, {pipeline_mode = #tpu.pipeline_mode<synchronous>, transform_indices = @transform_1, window_bounds = array<i64: 456, 32>}, {pipeline_mode = #tpu.pipeline_mode<synchronous>, transform_indices = @transform_2, window_bounds = array<i64: 16, 3>}]} {
    %c0 = arith.constant 0 : index
    %c0_0 = arith.constant 0 : index
    %0 = vector.load %arg1[%c0, %c0_0] : memref<64x2xf32, #tpu.memory_space<vmem>>, vector<64x2xf32>
    %1 = tpu.iota {dimensions = array<i32: 0>} : vector<64x1xi32>
    %c31_i32 = arith.constant 31 : i32
    %2 = vector.broadcast %c31_i32 : i32 to vector<64x1xi32>
    %3 = arith.andi %1, %2 : vector<64x1xi32>
    %c1_i32 = arith.constant 1 : i32
    %4 = tpu.dynamic_rotate %0 by %c1_i32 dim 0 : vector<64x2xf32>, i32 -> vector<64x2xf32>
    %c-1_i32 = arith.constant -1 : i32
    %5 = vector.broadcast %c-1_i32 : i32 to vector<64x1xi32>
    %6 = arith.addi %3, %5 : vector<64x1xi32>
    %c0_i32 = arith.constant 0 : i32
    %7 = vector.broadcast %c0_i32 : i32 to vector<64x1xi32>
    %8 = arith.cmpi sge, %6, %7 : vector<64x1xi32>
    %c-1_i32_1 = arith.constant -1 : i32
    %9 = vector.broadcast %c-1_i32_1 : i32 to vector<64x1xi32>
    %10 = arith.addi %3, %9 : vector<64x1xi32>
    %c32_i32 = arith.constant 32 : i32
    %11 = vector.broadcast %c32_i32 : i32 to vector<64x1xi32>
    %12 = arith.cmpi slt, %10, %11 : vector<64x1xi32>
    %13 = arith.andi %8, %12 : vector<64x1xi1>
    %cst = arith.constant 1.000000e+00 : f32
    %cst_2 = arith.constant 0.000000e+00 : f32
    %14 = vector.broadcast %cst : f32 to vector<64x1xf32>
    %15 = vector.broadcast %cst_2 : f32 to vector<64x1xf32>
    %16 = arith.select %13, %14, %15 : vector<64x1xi1>, vector<64x1xf32>
    %17 = vector.broadcast %16 : vector<64x1xf32> to vector<64x2xf32>
    %18 = arith.mulf %4, %17 : vector<64x2xf32>
    %c63_i32 = arith.constant 63 : i32
    %19 = tpu.dynamic_rotate %0 by %c63_i32 dim 0 : vector<64x2xf32>, i32 -> vector<64x2xf32>
    %c1_i32_3 = arith.constant 1 : i32
    %20 = vector.broadcast %c1_i32_3 : i32 to vector<64x1xi32>
    %21 = arith.addi %3, %20 : vector<64x1xi32>
    %c0_i32_4 = arith.constant 0 : i32
    %22 = vector.broadcast %c0_i32_4 : i32 to vector<64x1xi32>
    %23 = arith.cmpi sge, %21, %22 : vector<64x1xi32>
    %c1_i32_5 = arith.constant 1 : i32
    %24 = vector.broadcast %c1_i32_5 : i32 to vector<64x1xi32>
    %25 = arith.addi %3, %24 : vector<64x1xi32>
    %c32_i32_6 = arith.constant 32 : i32
    %26 = vector.broadcast %c32_i32_6 : i32 to vector<64x1xi32>
    %27 = arith.cmpi slt, %25, %26 : vector<64x1xi32>
    %28 = arith.andi %23, %27 : vector<64x1xi1>
    %cst_7 = arith.constant 1.000000e+00 : f32
    %cst_8 = arith.constant 0.000000e+00 : f32
    %29 = vector.broadcast %cst_7 : f32 to vector<64x1xf32>
    %30 = vector.broadcast %cst_8 : f32 to vector<64x1xf32>
    %31 = arith.select %28, %29, %30 : vector<64x1xi1>, vector<64x1xf32>
    %32 = vector.broadcast %31 : vector<64x1xf32> to vector<64x2xf32>
    %33 = arith.mulf %19, %32 : vector<64x2xf32>
    %34 = tpu.concatenate %18, %0, %33 in 1 : vector<64x2xf32>, vector<64x2xf32>, vector<64x2xf32> -> vector<64x6xf32>
    %c0_9 = arith.constant 0 : index
    %c0_10 = arith.constant 0 : index
    %35 = vector.load %arg2[%c0_9, %c0_10] : memref<456x32xf32, #tpu.memory_space<vmem>>, vector<6x4xf32>
    %36 = arith.truncf %34 : vector<64x6xf32> to vector<64x6xbf16>
    %37 = arith.truncf %35 : vector<6x4xf32> to vector<6x4xbf16>
    %cst_11 = arith.constant dense<0.000000e+00> : vector<64x4xf32>
    %38 = tpu.matmul %36, %37, %cst_11 {dimension_numbers = #tpu.dot_dimension_numbers<[1], [0], [0], [1], [0, 0, 1, 1], [], []>} : vector<64x6xbf16>, vector<6x4xbf16>, vector<64x4xf32> -> vector<64x4xf32>
    %c8 = arith.constant 8 : index
    %c0_12 = arith.constant 0 : index
    %39 = vector.load %arg2[%c8, %c0_12] : memref<456x32xf32, #tpu.memory_space<vmem>>, vector<1x4xf32>
    %40 = vector.broadcast %39 : vector<1x4xf32> to vector<64x4xf32>
    %41 = arith.addf %38, %40 : vector<64x4xf32>
    %cst_13 = arith.constant 0.000000e+00 : f32
    %42 = vector.broadcast %cst_13 : f32 to vector<64x4xf32>
    %43 = arith.maximumf %41, %42 : vector<64x4xf32>
    %44 = tpu.iota {dimensions = array<i32: 0>} : vector<64x1xi32>
    %c31_i32_14 = arith.constant 31 : i32
    %45 = vector.broadcast %c31_i32_14 : i32 to vector<64x1xi32>
    %46 = arith.andi %44, %45 : vector<64x1xi32>
    %c1_i32_15 = arith.constant 1 : i32
    %47 = tpu.dynamic_rotate %43 by %c1_i32_15 dim 0 : vector<64x4xf32>, i32 -> vector<64x4xf32>
    %c-1_i32_16 = arith.constant -1 : i32
    %48 = vector.broadcast %c-1_i32_16 : i32 to vector<64x1xi32>
    %49 = arith.addi %46, %48 : vector<64x1xi32>
    %c0_i32_17 = arith.constant 0 : i32
    %50 = vector.broadcast %c0_i32_17 : i32 to vector<64x1xi32>
    %51 = arith.cmpi sge, %49, %50 : vector<64x1xi32>
    %c-1_i32_18 = arith.constant -1 : i32
    %52 = vector.broadcast %c-1_i32_18 : i32 to vector<64x1xi32>
    %53 = arith.addi %46, %52 : vector<64x1xi32>
    %c32_i32_19 = arith.constant 32 : i32
    %54 = vector.broadcast %c32_i32_19 : i32 to vector<64x1xi32>
    %55 = arith.cmpi slt, %53, %54 : vector<64x1xi32>
    %56 = arith.andi %51, %55 : vector<64x1xi1>
    %cst_20 = arith.constant 1.000000e+00 : f32
    %cst_21 = arith.constant 0.000000e+00 : f32
    %57 = vector.broadcast %cst_20 : f32 to vector<64x1xf32>
    %58 = vector.broadcast %cst_21 : f32 to vector<64x1xf32>
    %59 = arith.select %56, %57, %58 : vector<64x1xi1>, vector<64x1xf32>
    %60 = vector.broadcast %59 : vector<64x1xf32> to vector<64x4xf32>
    %61 = arith.mulf %47, %60 : vector<64x4xf32>
    %c63_i32_22 = arith.constant 63 : i32
    %62 = tpu.dynamic_rotate %43 by %c63_i32_22 dim 0 : vector<64x4xf32>, i32 -> vector<64x4xf32>
    %c1_i32_23 = arith.constant 1 : i32
    %63 = vector.broadcast %c1_i32_23 : i32 to vector<64x1xi32>
    %64 = arith.addi %46, %63 : vector<64x1xi32>
    %c0_i32_24 = arith.constant 0 : i32
    %65 = vector.broadcast %c0_i32_24 : i32 to vector<64x1xi32>
    %66 = arith.cmpi sge, %64, %65 : vector<64x1xi32>
    %c1_i32_25 = arith.constant 1 : i32
    %67 = vector.broadcast %c1_i32_25 : i32 to vector<64x1xi32>
    %68 = arith.addi %46, %67 : vector<64x1xi32>
    %c32_i32_26 = arith.constant 32 : i32
    %69 = vector.broadcast %c32_i32_26 : i32 to vector<64x1xi32>
    %70 = arith.cmpi slt, %68, %69 : vector<64x1xi32>
    %71 = arith.andi %66, %70 : vector<64x1xi1>
    %cst_27 = arith.constant 1.000000e+00 : f32
    %cst_28 = arith.constant 0.000000e+00 : f32
    %72 = vector.broadcast %cst_27 : f32 to vector<64x1xf32>
    %73 = vector.broadcast %cst_28 : f32 to vector<64x1xf32>
    %74 = arith.select %71, %72, %73 : vector<64x1xi1>, vector<64x1xf32>
    %75 = vector.broadcast %74 : vector<64x1xf32> to vector<64x4xf32>
    %76 = arith.mulf %62, %75 : vector<64x4xf32>
    %77 = tpu.concatenate %61, %43, %76 in 1 : vector<64x4xf32>, vector<64x4xf32>, vector<64x4xf32> -> vector<64x12xf32>
    %c16 = arith.constant 16 : index
    %c0_29 = arith.constant 0 : index
    %78 = vector.load %arg2[%c16, %c0_29] : memref<456x32xf32, #tpu.memory_space<vmem>>, vector<12x8xf32>
    %79 = arith.truncf %77 : vector<64x12xf32> to vector<64x12xbf16>
    %80 = arith.truncf %78 : vector<12x8xf32> to vector<12x8xbf16>
    %cst_30 = arith.constant dense<0.000000e+00> : vector<64x8xf32>
    %81 = tpu.matmul %79, %80, %cst_30 {dimension_numbers = #tpu.dot_dimension_numbers<[1], [0], [0], [1], [0, 0, 1, 1], [], []>} : vector<64x12xbf16>, vector<12x8xbf16>, vector<64x8xf32> -> vector<64x8xf32>
    %c32 = arith.constant 32 : index
    %c0_31 = arith.constant 0 : index
    %82 = vector.load %arg2[%c32, %c0_31] : memref<456x32xf32, #tpu.memory_space<vmem>>, vector<1x8xf32>
    %83 = vector.broadcast %82 : vector<1x8xf32> to vector<64x8xf32>
    %84 = arith.addf %81, %83 : vector<64x8xf32>
    %cst_32 = arith.constant 0.000000e+00 : f32
    %85 = vector.broadcast %cst_32 : f32 to vector<64x8xf32>
    %86 = arith.maximumf %84, %85 : vector<64x8xf32>
    %c40 = arith.constant 40 : index
    %c0_33 = arith.constant 0 : index
    %87 = vector.load %arg2[%c40, %c0_33] : memref<456x32xf32, #tpu.memory_space<vmem>>, vector<1x8xf32>
    %88 = vector.broadcast %87 : vector<1x8xf32> to vector<64x8xf32>
    %89 = arith.mulf %86, %88 : vector<64x8xf32>
    %c48 = arith.constant 48 : index
    %c0_34 = arith.constant 0 : index
    %90 = vector.load %arg2[%c48, %c0_34] : memref<456x32xf32, #tpu.memory_space<vmem>>, vector<1x8xf32>
    %91 = vector.broadcast %90 : vector<1x8xf32> to vector<64x8xf32>
    %92 = arith.addf %89, %91 : vector<64x8xf32>
    %c0_35 = arith.constant 0 : index
    %c0_36 = arith.constant 0 : index
    %93 = vector.load %arg4[%c0_35, %c0_36] : memref<64x8xf32, #tpu.memory_space<vmem>>, vector<64x8xf32>
    tpu.vector_store %arg4[%c0_35, %c0_36], %92 {strides = array<i32>} : memref<64x8xf32, #tpu.memory_space<vmem>>, vector<64x8xf32>,
    %c0_37 = arith.constant 0 : index
    %c0_38 = arith.constant 0 : index
    %94 = tpu.strided_load %arg4[%c0_37, %c0_38] {strides = array<i32: 2, 1>} : memref<64x8xf32, #tpu.memory_space<vmem>>, vector<32x8xf32>
    %c1 = arith.constant 1 : index
    %c0_39 = arith.constant 0 : index
    %95 = tpu.strided_load %arg4[%c1, %c0_39] {strides = array<i32: 2, 1>} : memref<64x8xf32, #tpu.memory_space<vmem>>, vector<32x8xf32>
    %96 = arith.maximumf %94, %95 : vector<32x8xf32>
    %97 = tpu.iota {dimensions = array<i32: 0>} : vector<32x1xi32>
    %c15_i32 = arith.constant 15 : i32
    %98 = vector.broadcast %c15_i32 : i32 to vector<32x1xi32>
    %99 = arith.andi %97, %98 : vector<32x1xi32>
    %c2_i32 = arith.constant 2 : i32
    %100 = tpu.dynamic_rotate %96 by %c2_i32 dim 0 : vector<32x8xf32>, i32 -> vector<32x8xf32>
    %c-2_i32 = arith.constant -2 : i32
    %101 = vector.broadcast %c-2_i32 : i32 to vector<32x1xi32>
    %102 = arith.addi %99, %101 : vector<32x1xi32>
    %c0_i32_40 = arith.constant 0 : i32
    %103 = vector.broadcast %c0_i32_40 : i32 to vector<32x1xi32>
    %104 = arith.cmpi sge, %102, %103 : vector<32x1xi32>
    %c-2_i32_41 = arith.constant -2 : i32
    %105 = vector.broadcast %c-2_i32_41 : i32 to vector<32x1xi32>
    %106 = arith.addi %99, %105 : vector<32x1xi32>
    %c16_i32 = arith.constant 16 : i32
    %107 = vector.broadcast %c16_i32 : i32 to vector<32x1xi32>
    %108 = arith.cmpi slt, %106, %107 : vector<32x1xi32>
    %109 = arith.andi %104, %108 : vector<32x1xi1>
    %cst_42 = arith.constant 1.000000e+00 : f32
    %cst_43 = arith.constant 0.000000e+00 : f32
    %110 = vector.broadcast %cst_42 : f32 to vector<32x1xf32>
    %111 = vector.broadcast %cst_43 : f32 to vector<32x1xf32>
    %112 = arith.select %109, %110, %111 : vector<32x1xi1>, vector<32x1xf32>
    %113 = vector.broadcast %112 : vector<32x1xf32> to vector<32x8xf32>
    %114 = arith.mulf %100, %113 : vector<32x8xf32>
    %c30_i32 = arith.constant 30 : i32
    %115 = tpu.dynamic_rotate %96 by %c30_i32 dim 0 : vector<32x8xf32>, i32 -> vector<32x8xf32>
    %c2_i32_44 = arith.constant 2 : i32
    %116 = vector.broadcast %c2_i32_44 : i32 to vector<32x1xi32>
    %117 = arith.addi %99, %116 : vector<32x1xi32>
    %c0_i32_45 = arith.constant 0 : i32
    %118 = vector.broadcast %c0_i32_45 : i32 to vector<32x1xi32>
    %119 = arith.cmpi sge, %117, %118 : vector<32x1xi32>
    %c2_i32_46 = arith.constant 2 : i32
    %120 = vector.broadcast %c2_i32_46 : i32 to vector<32x1xi32>
    %121 = arith.addi %99, %120 : vector<32x1xi32>
    %c16_i32_47 = arith.constant 16 : i32
    %122 = vector.broadcast %c16_i32_47 : i32 to vector<32x1xi32>
    %123 = arith.cmpi slt, %121, %122 : vector<32x1xi32>
    %124 = arith.andi %119, %123 : vector<32x1xi1>
    %cst_48 = arith.constant 1.000000e+00 : f32
    %cst_49 = arith.constant 0.000000e+00 : f32
    %125 = vector.broadcast %cst_48 : f32 to vector<32x1xf32>
    %126 = vector.broadcast %cst_49 : f32 to vector<32x1xf32>
    %127 = arith.select %124, %125, %126 : vector<32x1xi1>, vector<32x1xf32>
    %128 = vector.broadcast %127 : vector<32x1xf32> to vector<32x8xf32>
    %129 = arith.mulf %115, %128 : vector<32x8xf32>
    %130 = tpu.concatenate %114, %96, %129 in 1 : vector<32x8xf32>, vector<32x8xf32>, vector<32x8xf32> -> vector<32x24xf32>
    %c56 = arith.constant 56 : index
    %c0_50 = arith.constant 0 : index
    %131 = vector.load %arg2[%c56, %c0_50] : memref<456x32xf32, #tpu.memory_space<vmem>>, vector<24x8xf32>
    %132 = arith.truncf %130 : vector<32x24xf32> to vector<32x24xbf16>
    %133 = arith.truncf %131 : vector<24x8xf32> to vector<24x8xbf16>
    %cst_51 = arith.constant dense<0.000000e+00> : vector<32x8xf32>
    %134 = tpu.matmul %132, %133, %cst_51 {dimension_numbers = #tpu.dot_dimension_numbers<[1], [0], [0], [1], [0, 0, 1, 1], [], []>} : vector<32x24xbf16>, vector<24x8xbf16>, vector<32x8xf32> -> vector<32x8xf32>
    %c80 = arith.constant 80 : index
    %c0_52 = arith.constant 0 : index
    %135 = vector.load %arg2[%c80, %c0_52] : memref<456x32xf32, #tpu.memory_space<vmem>>, vector<1x8xf32>
    %136 = vector.broadcast %135 : vector<1x8xf32> to vector<32x8xf32>
    %137 = arith.addf %134, %136 : vector<32x8xf32>
    %cst_53 = arith.constant 0.000000e+00 : f32
    %138 = vector.broadcast %cst_53 : f32 to vector<32x8xf32>
    %139 = arith.maximumf %137, %138 : vector<32x8xf32>
    %140 = tpu.iota {dimensions = array<i32: 0>} : vector<32x1xi32>
    %c15_i32_54 = arith.constant 15 : i32
    %141 = vector.broadcast %c15_i32_54 : i32 to vector<32x1xi32>
    %142 = arith.andi %140, %141 : vector<32x1xi32>
    %c2_i32_55 = arith.constant 2 : i32
    %143 = tpu.dynamic_rotate %139 by %c2_i32_55 dim 0 : vector<32x8xf32>, i32 -> vector<32x8xf32>
    %c-2_i32_56 = arith.constant -2 : i32
    %144 = vector.broadcast %c-2_i32_56 : i32 to vector<32x1xi32>
    %145 = arith.addi %142, %144 : vector<32x1xi32>
    %c0_i32_57 = arith.constant 0 : i32
    %146 = vector.broadcast %c0_i32_57 : i32 to vector<32x1xi32>
    %147 = arith.cmpi sge, %145, %146 : vector<32x1xi32>
    %c-2_i32_58 = arith.constant -2 : i32
    %148 = vector.broadcast %c-2_i32_58 : i32 to vector<32x1xi32>
    %149 = arith.addi %142, %148 : vector<32x1xi32>
    %c16_i32_59 = arith.constant 16 : i32
    %150 = vector.broadcast %c16_i32_59 : i32 to vector<32x1xi32>
    %151 = arith.cmpi slt, %149, %150 : vector<32x1xi32>
    %152 = arith.andi %147, %151 : vector<32x1xi1>
    %cst_60 = arith.constant 1.000000e+00 : f32
    %cst_61 = arith.constant 0.000000e+00 : f32
    %153 = vector.broadcast %cst_60 : f32 to vector<32x1xf32>
    %154 = vector.broadcast %cst_61 : f32 to vector<32x1xf32>
    %155 = arith.select %152, %153, %154 : vector<32x1xi1>, vector<32x1xf32>
    %156 = vector.broadcast %155 : vector<32x1xf32> to vector<32x8xf32>
    %157 = arith.mulf %143, %156 : vector<32x8xf32>
    %c30_i32_62 = arith.constant 30 : i32
    %158 = tpu.dynamic_rotate %139 by %c30_i32_62 dim 0 : vector<32x8xf32>, i32 -> vector<32x8xf32>
    %c2_i32_63 = arith.constant 2 : i32
    %159 = vector.broadcast %c2_i32_63 : i32 to vector<32x1xi32>
    %160 = arith.addi %142, %159 : vector<32x1xi32>
    %c0_i32_64 = arith.constant 0 : i32
    %161 = vector.broadcast %c0_i32_64 : i32 to vector<32x1xi32>
    %162 = arith.cmpi sge, %160, %161 : vector<32x1xi32>
    %c2_i32_65 = arith.constant 2 : i32
    %163 = vector.broadcast %c2_i32_65 : i32 to vector<32x1xi32>
    %164 = arith.addi %142, %163 : vector<32x1xi32>
    %c16_i32_66 = arith.constant 16 : i32
    %165 = vector.broadcast %c16_i32_66 : i32 to vector<32x1xi32>
    %166 = arith.cmpi slt, %164, %165 : vector<32x1xi32>
    %167 = arith.andi %162, %166 : vector<32x1xi1>
    %cst_67 = arith.constant 1.000000e+00 : f32
    %cst_68 = arith.constant 0.000000e+00 : f32
    %168 = vector.broadcast %cst_67 : f32 to vector<32x1xf32>
    %169 = vector.broadcast %cst_68 : f32 to vector<32x1xf32>
    %170 = arith.select %167, %168, %169 : vector<32x1xi1>, vector<32x1xf32>
    %171 = vector.broadcast %170 : vector<32x1xf32> to vector<32x8xf32>
    %172 = arith.mulf %158, %171 : vector<32x8xf32>
    %173 = tpu.concatenate %157, %139, %172 in 1 : vector<32x8xf32>, vector<32x8xf32>, vector<32x8xf32> -> vector<32x24xf32>
    %c88 = arith.constant 88 : index
    %c0_69 = arith.constant 0 : index
    %174 = vector.load %arg2[%c88, %c0_69] : memref<456x32xf32, #tpu.memory_space<vmem>>, vector<24x16xf32>
    %175 = arith.truncf %173 : vector<32x24xf32> to vector<32x24xbf16>
    %176 = arith.truncf %174 : vector<24x16xf32> to vector<24x16xbf16>
    %cst_70 = arith.constant dense<0.000000e+00> : vector<32x16xf32>
    %177 = tpu.matmul %175, %176, %cst_70 {dimension_numbers = #tpu.dot_dimension_numbers<[1], [0], [0], [1], [0, 0, 1, 1], [], []>} : vector<32x24xbf16>, vector<24x16xbf16>, vector<32x16xf32> -> vector<32x16xf32>
    %c112 = arith.constant 112 : index
    %c0_71 = arith.constant 0 : index
    %178 = vector.load %arg2[%c112, %c0_71] : memref<456x32xf32, #tpu.memory_space<vmem>>, vector<1x16xf32>
    %179 = vector.broadcast %178 : vector<1x16xf32> to vector<32x16xf32>
    %180 = arith.addf %177, %179 : vector<32x16xf32>
    %cst_72 = arith.constant 0.000000e+00 : f32
    %181 = vector.broadcast %cst_72 : f32 to vector<32x16xf32>
    %182 = arith.maximumf %180, %181 : vector<32x16xf32>
    %c120 = arith.constant 120 : index
    %c0_73 = arith.constant 0 : index
    %183 = vector.load %arg2[%c120, %c0_73] : memref<456x32xf32, #tpu.memory_space<vmem>>, vector<1x16xf32>
    %184 = vector.broadcast %183 : vector<1x16xf32> to vector<32x16xf32>
    %185 = arith.mulf %182, %184 : vector<32x16xf32>
    %c128 = arith.constant 128 : index
    %c0_74 = arith.constant 0 : index
    %186 = vector.load %arg2[%c128, %c0_74] : memref<456x32xf32, #tpu.memory_space<vmem>>, vector<1x16xf32>
    %187 = vector.broadcast %186 : vector<1x16xf32> to vector<32x16xf32>
    %188 = arith.addf %185, %187 : vector<32x16xf32>
    %c0_75 = arith.constant 0 : index
    %c0_76 = arith.constant 0 : index
    %189 = vector.load %arg5[%c0_75, %c0_76] : memref<32x16xf32, #tpu.memory_space<vmem>>, vector<32x16xf32>
    tpu.vector_store %arg5[%c0_75, %c0_76], %188 {strides = array<i32>} : memref<32x16xf32, #tpu.memory_space<vmem>>, vector<32x16xf32>,
    %c0_77 = arith.constant 0 : index
    %c0_78 = arith.constant 0 : index
    %190 = tpu.strided_load %arg5[%c0_77, %c0_78] {strides = array<i32: 2, 1>} : memref<32x16xf32, #tpu.memory_space<vmem>>, vector<16x16xf32>
    %c1_79 = arith.constant 1 : index
    %c0_80 = arith.constant 0 : index
    %191 = tpu.strided_load %arg5[%c1_79, %c0_80] {strides = array<i32: 2, 1>} : memref<32x16xf32, #tpu.memory_space<vmem>>, vector<16x16xf32>
    %192 = arith.maximumf %190, %191 : vector<16x16xf32>
    %193 = tpu.iota {dimensions = array<i32: 0>} : vector<64x1xi32>
    %c31_i32_81 = arith.constant 31 : i32
    %194 = vector.broadcast %c31_i32_81 : i32 to vector<64x1xi32>
    %195 = arith.andi %193, %194 : vector<64x1xi32>
    %c4_i32 = arith.constant 4 : i32
    %196 = tpu.dynamic_rotate %0 by %c4_i32 dim 0 : vector<64x2xf32>, i32 -> vector<64x2xf32>
    %c-4_i32 = arith.constant -4 : i32
    %197 = vector.broadcast %c-4_i32 : i32 to vector<64x1xi32>
    %198 = arith.addi %195, %197 : vector<64x1xi32>
    %c0_i32_82 = arith.constant 0 : i32
    %199 = vector.broadcast %c0_i32_82 : i32 to vector<64x1xi32>
    %200 = arith.cmpi sge, %198, %199 : vector<64x1xi32>
    %c-4_i32_83 = arith.constant -4 : i32
    %201 = vector.broadcast %c-4_i32_83 : i32 to vector<64x1xi32>
    %202 = arith.addi %195, %201 : vector<64x1xi32>
    %c32_i32_84 = arith.constant 32 : i32
    %203 = vector.broadcast %c32_i32_84 : i32 to vector<64x1xi32>
    %204 = arith.cmpi slt, %202, %203 : vector<64x1xi32>
    %205 = arith.andi %200, %204 : vector<64x1xi1>
    %cst_85 = arith.constant 1.000000e+00 : f32
    %cst_86 = arith.constant 0.000000e+00 : f32
    %206 = vector.broadcast %cst_85 : f32 to vector<64x1xf32>
    %207 = vector.broadcast %cst_86 : f32 to vector<64x1xf32>
    %208 = arith.select %205, %206, %207 : vector<64x1xi1>, vector<64x1xf32>
    %209 = vector.broadcast %208 : vector<64x1xf32> to vector<64x2xf32>
    %210 = arith.mulf %196, %209 : vector<64x2xf32>
    %c2_i32_87 = arith.constant 2 : i32
    %211 = tpu.dynamic_rotate %0 by %c2_i32_87 dim 0 : vector<64x2xf32>, i32 -> vector<64x2xf32>
    %c-2_i32_88 = arith.constant -2 : i32
    %212 = vector.broadcast %c-2_i32_88 : i32 to vector<64x1xi32>
    %213 = arith.addi %195, %212 : vector<64x1xi32>
    %c0_i32_89 = arith.constant 0 : i32
    %214 = vector.broadcast %c0_i32_89 : i32 to vector<64x1xi32>
    %215 = arith.cmpi sge, %213, %214 : vector<64x1xi32>
    %c-2_i32_90 = arith.constant -2 : i32
    %216 = vector.broadcast %c-2_i32_90 : i32 to vector<64x1xi32>
    %217 = arith.addi %195, %216 : vector<64x1xi32>
    %c32_i32_91 = arith.constant 32 : i32
    %218 = vector.broadcast %c32_i32_91 : i32 to vector<64x1xi32>
    %219 = arith.cmpi slt, %217, %218 : vector<64x1xi32>
    %220 = arith.andi %215, %219 : vector<64x1xi1>
    %cst_92 = arith.constant 1.000000e+00 : f32
    %cst_93 = arith.constant 0.000000e+00 : f32
    %221 = vector.broadcast %cst_92 : f32 to vector<64x1xf32>
    %222 = vector.broadcast %cst_93 : f32 to vector<64x1xf32>
    %223 = arith.select %220, %221, %222 : vector<64x1xi1>, vector<64x1xf32>
    %224 = vector.broadcast %223 : vector<64x1xf32> to vector<64x2xf32>
    %225 = arith.mulf %211, %224 : vector<64x2xf32>
    %c62_i32 = arith.constant 62 : i32
    %226 = tpu.dynamic_rotate %0 by %c62_i32 dim 0 : vector<64x2xf32>, i32 -> vector<64x2xf32>
    %c2_i32_94 = arith.constant 2 : i32
    %227 = vector.broadcast %c2_i32_94 : i32 to vector<64x1xi32>
    %228 = arith.addi %195, %227 : vector<64x1xi32>
    %c0_i32_95 = arith.constant 0 : i32
    %229 = vector.broadcast %c0_i32_95 : i32 to vector<64x1xi32>
    %230 = arith.cmpi sge, %228, %229 : vector<64x1xi32>
    %c2_i32_96 = arith.constant 2 : i32
    %231 = vector.broadcast %c2_i32_96 : i32 to vector<64x1xi32>
    %232 = arith.addi %195, %231 : vector<64x1xi32>
    %c32_i32_97 = arith.constant 32 : i32
    %233 = vector.broadcast %c32_i32_97 : i32 to vector<64x1xi32>
    %234 = arith.cmpi slt, %232, %233 : vector<64x1xi32>
    %235 = arith.andi %230, %234 : vector<64x1xi1>
    %cst_98 = arith.constant 1.000000e+00 : f32
    %cst_99 = arith.constant 0.000000e+00 : f32
    %236 = vector.broadcast %cst_98 : f32 to vector<64x1xf32>
    %237 = vector.broadcast %cst_99 : f32 to vector<64x1xf32>
    %238 = arith.select %235, %236, %237 : vector<64x1xi1>, vector<64x1xf32>
    %239 = vector.broadcast %238 : vector<64x1xf32> to vector<64x2xf32>
    %240 = arith.mulf %226, %239 : vector<64x2xf32>
    %c60_i32 = arith.constant 60 : i32
    %241 = tpu.dynamic_rotate %0 by %c60_i32 dim 0 : vector<64x2xf32>, i32 -> vector<64x2xf32>
    %c4_i32_100 = arith.constant 4 : i32
    %242 = vector.broadcast %c4_i32_100 : i32 to vector<64x1xi32>
    %243 = arith.addi %195, %242 : vector<64x1xi32>
    %c0_i32_101 = arith.constant 0 : i32
    %244 = vector.broadcast %c0_i32_101 : i32 to vector<64x1xi32>
    %245 = arith.cmpi sge, %243, %244 : vector<64x1xi32>
    %c4_i32_102 = arith.constant 4 : i32
    %246 = vector.broadcast %c4_i32_102 : i32 to vector<64x1xi32>
    %247 = arith.addi %195, %246 : vector<64x1xi32>
    %c32_i32_103 = arith.constant 32 : i32
    %248 = vector.broadcast %c32_i32_103 : i32 to vector<64x1xi32>
    %249 = arith.cmpi slt, %247, %248 : vector<64x1xi32>
    %250 = arith.andi %245, %249 : vector<64x1xi1>
    %cst_104 = arith.constant 1.000000e+00 : f32
    %cst_105 = arith.constant 0.000000e+00 : f32
    %251 = vector.broadcast %cst_104 : f32 to vector<64x1xf32>
    %252 = vector.broadcast %cst_105 : f32 to vector<64x1xf32>
    %253 = arith.select %250, %251, %252 : vector<64x1xi1>, vector<64x1xf32>
    %254 = vector.broadcast %253 : vector<64x1xf32> to vector<64x2xf32>
    %255 = arith.mulf %241, %254 : vector<64x2xf32>
    %256 = tpu.concatenate %210, %225, %0, %240, %255 in 1 : vector<64x2xf32>, vector<64x2xf32>, vector<64x2xf32>, vector<64x2xf32>, vector<64x2xf32> -> vector<64x10xf32>
    %c136 = arith.constant 136 : index
    %c0_106 = arith.constant 0 : index
    %257 = vector.load %arg2[%c136, %c0_106] : memref<456x32xf32, #tpu.memory_space<vmem>>, vector<10x4xf32>
    %258 = arith.truncf %256 : vector<64x10xf32> to vector<64x10xbf16>
    %259 = arith.truncf %257 : vector<10x4xf32> to vector<10x4xbf16>
    %cst_107 = arith.constant dense<0.000000e+00> : vector<64x4xf32>
    %260 = tpu.matmul %258, %259, %cst_107 {dimension_numbers = #tpu.dot_dimension_numbers<[1], [0], [0], [1], [0, 0, 1, 1], [], []>} : vector<64x10xbf16>, vector<10x4xbf16>, vector<64x4xf32> -> vector<64x4xf32>
    %c152 = arith.constant 152 : index
    %c0_108 = arith.constant 0 : index
    %261 = vector.load %arg2[%c152, %c0_108] : memref<456x32xf32, #tpu.memory_space<vmem>>, vector<1x4xf32>
    %262 = vector.broadcast %261 : vector<1x4xf32> to vector<64x4xf32>
    %263 = arith.addf %260, %262 : vector<64x4xf32>
    %cst_109 = arith.constant 0.000000e+00 : f32
    %264 = vector.broadcast %cst_109 : f32 to vector<64x4xf32>
    %265 = arith.maximumf %263, %264 : vector<64x4xf32>
    %266 = tpu.iota {dimensions = array<i32: 0>} : vector<64x1xi32>
    %c31_i32_110 = arith.constant 31 : i32
    %267 = vector.broadcast %c31_i32_110 : i32 to vector<64x1xi32>
    %268 = arith.andi %266, %267 : vector<64x1xi32>
    %c8_i32 = arith.constant 8 : i32
    %269 = tpu.dynamic_rotate %265 by %c8_i32 dim 0 : vector<64x4xf32>, i32 -> vector<64x4xf32>
    %c-8_i32 = arith.constant -8 : i32
    %270 = vector.broadcast %c-8_i32 : i32 to vector<64x1xi32>
    %271 = arith.addi %268, %270 : vector<64x1xi32>
    %c0_i32_111 = arith.constant 0 : i32
    %272 = vector.broadcast %c0_i32_111 : i32 to vector<64x1xi32>
    %273 = arith.cmpi sge, %271, %272 : vector<64x1xi32>
    %c-8_i32_112 = arith.constant -8 : i32
    %274 = vector.broadcast %c-8_i32_112 : i32 to vector<64x1xi32>
    %275 = arith.addi %268, %274 : vector<64x1xi32>
    %c32_i32_113 = arith.constant 32 : i32
    %276 = vector.broadcast %c32_i32_113 : i32 to vector<64x1xi32>
    %277 = arith.cmpi slt, %275, %276 : vector<64x1xi32>
    %278 = arith.andi %273, %277 : vector<64x1xi1>
    %cst_114 = arith.constant 1.000000e+00 : f32
    %cst_115 = arith.constant 0.000000e+00 : f32
    %279 = vector.broadcast %cst_114 : f32 to vector<64x1xf32>
    %280 = vector.broadcast %cst_115 : f32 to vector<64x1xf32>
    %281 = arith.select %278, %279, %280 : vector<64x1xi1>, vector<64x1xf32>
    %282 = vector.broadcast %281 : vector<64x1xf32> to vector<64x4xf32>
    %283 = arith.mulf %269, %282 : vector<64x4xf32>
    %c4_i32_116 = arith.constant 4 : i32
    %284 = tpu.dynamic_rotate %265 by %c4_i32_116 dim 0 : vector<64x4xf32>, i32 -> vector<64x4xf32>
    %c-4_i32_117 = arith.constant -4 : i32
    %285 = vector.broadcast %c-4_i32_117 : i32 to vector<64x1xi32>
    %286 = arith.addi %268, %285 : vector<64x1xi32>
    %c0_i32_118 = arith.constant 0 : i32
    %287 = vector.broadcast %c0_i32_118 : i32 to vector<64x1xi32>
    %288 = arith.cmpi sge, %286, %287 : vector<64x1xi32>
    %c-4_i32_119 = arith.constant -4 : i32
    %289 = vector.broadcast %c-4_i32_119 : i32 to vector<64x1xi32>
    %290 = arith.addi %268, %289 : vector<64x1xi32>
    %c32_i32_120 = arith.constant 32 : i32
    %291 = vector.broadcast %c32_i32_120 : i32 to vector<64x1xi32>
    %292 = arith.cmpi slt, %290, %291 : vector<64x1xi32>
    %293 = arith.andi %288, %292 : vector<64x1xi1>
    %cst_121 = arith.constant 1.000000e+00 : f32
    %cst_122 = arith.constant 0.000000e+00 : f32
    %294 = vector.broadcast %cst_121 : f32 to vector<64x1xf32>
    %295 = vector.broadcast %cst_122 : f32 to vector<64x1xf32>
    %296 = arith.select %293, %294, %295 : vector<64x1xi1>, vector<64x1xf32>
    %297 = vector.broadcast %296 : vector<64x1xf32> to vector<64x4xf32>
    %298 = arith.mulf %284, %297 : vector<64x4xf32>
    %c60_i32_123 = arith.constant 60 : i32
    %299 = tpu.dynamic_rotate %265 by %c60_i32_123 dim 0 : vector<64x4xf32>, i32 -> vector<64x4xf32>
    %c4_i32_124 = arith.constant 4 : i32
    %300 = vector.broadcast %c4_i32_124 : i32 to vector<64x1xi32>
    %301 = arith.addi %268, %300 : vector<64x1xi32>
    %c0_i32_125 = arith.constant 0 : i32
    %302 = vector.broadcast %c0_i32_125 : i32 to vector<64x1xi32>
    %303 = arith.cmpi sge, %301, %302 : vector<64x1xi32>
    %c4_i32_126 = arith.constant 4 : i32
    %304 = vector.broadcast %c4_i32_126 : i32 to vector<64x1xi32>
    %305 = arith.addi %268, %304 : vector<64x1xi32>
    %c32_i32_127 = arith.constant 32 : i32
    %306 = vector.broadcast %c32_i32_127 : i32 to vector<64x1xi32>
    %307 = arith.cmpi slt, %305, %306 : vector<64x1xi32>
    %308 = arith.andi %303, %307 : vector<64x1xi1>
    %cst_128 = arith.constant 1.000000e+00 : f32
    %cst_129 = arith.constant 0.000000e+00 : f32
    %309 = vector.broadcast %cst_128 : f32 to vector<64x1xf32>
    %310 = vector.broadcast %cst_129 : f32 to vector<64x1xf32>
    %311 = arith.select %308, %309, %310 : vector<64x1xi1>, vector<64x1xf32>
    %312 = vector.broadcast %311 : vector<64x1xf32> to vector<64x4xf32>
    %313 = arith.mulf %299, %312 : vector<64x4xf32>
    %c56_i32 = arith.constant 56 : i32
    %314 = tpu.dynamic_rotate %265 by %c56_i32 dim 0 : vector<64x4xf32>, i32 -> vector<64x4xf32>
    %c8_i32_130 = arith.constant 8 : i32
    %315 = vector.broadcast %c8_i32_130 : i32 to vector<64x1xi32>
    %316 = arith.addi %268, %315 : vector<64x1xi32>
    %c0_i32_131 = arith.constant 0 : i32
    %317 = vector.broadcast %c0_i32_131 : i32 to vector<64x1xi32>
    %318 = arith.cmpi sge, %316, %317 : vector<64x1xi32>
    %c8_i32_132 = arith.constant 8 : i32
    %319 = vector.broadcast %c8_i32_132 : i32 to vector<64x1xi32>
    %320 = arith.addi %268, %319 : vector<64x1xi32>
    %c32_i32_133 = arith.constant 32 : i32
    %321 = vector.broadcast %c32_i32_133 : i32 to vector<64x1xi32>
    %322 = arith.cmpi slt, %320, %321 : vector<64x1xi32>
    %323 = arith.andi %318, %322 : vector<64x1xi1>
    %cst_134 = arith.constant 1.000000e+00 : f32
    %cst_135 = arith.constant 0.000000e+00 : f32
    %324 = vector.broadcast %cst_134 : f32 to vector<64x1xf32>
    %325 = vector.broadcast %cst_135 : f32 to vector<64x1xf32>
    %326 = arith.select %323, %324, %325 : vector<64x1xi1>, vector<64x1xf32>
    %327 = vector.broadcast %326 : vector<64x1xf32> to vector<64x4xf32>
    %328 = arith.mulf %314, %327 : vector<64x4xf32>
    %329 = tpu.concatenate %283, %298, %265, %313, %328 in 1 : vector<64x4xf32>, vector<64x4xf32>, vector<64x4xf32>, vector<64x4xf32>, vector<64x4xf32> -> vector<64x20xf32>
    %c160 = arith.constant 160 : index
    %c0_136 = arith.constant 0 : index
    %330 = vector.load %arg2[%c160, %c0_136] : memref<456x32xf32, #tpu.memory_space<vmem>>, vector<20x8xf32>
    %331 = arith.truncf %329 : vector<64x20xf32> to vector<64x20xbf16>
    %332 = arith.truncf %330 : vector<20x8xf32> to vector<20x8xbf16>
    %cst_137 = arith.constant dense<0.000000e+00> : vector<64x8xf32>
    %333 = tpu.matmul %331, %332, %cst_137 {dimension_numbers = #tpu.dot_dimension_numbers<[1], [0], [0], [1], [0, 0, 1, 1], [], []>} : vector<64x20xbf16>, vector<20x8xbf16>, vector<64x8xf32> -> vector<64x8xf32>
    %c184 = arith.constant 184 : index
    %c0_138 = arith.constant 0 : index
    %334 = vector.load %arg2[%c184, %c0_138] : memref<456x32xf32, #tpu.memory_space<vmem>>, vector<1x8xf32>
    %335 = vector.broadcast %334 : vector<1x8xf32> to vector<64x8xf32>
    %336 = arith.addf %333, %335 : vector<64x8xf32>
    %cst_139 = arith.constant 0.000000e+00 : f32
    %337 = vector.broadcast %cst_139 : f32 to vector<64x8xf32>
    %338 = arith.maximumf %336, %337 : vector<64x8xf32>
    %c192 = arith.constant 192 : index
    %c0_140 = arith.constant 0 : index
    %339 = vector.load %arg2[%c192, %c0_140] : memref<456x32xf32, #tpu.memory_space<vmem>>, vector<1x8xf32>
    %340 = vector.broadcast %339 : vector<1x8xf32> to vector<64x8xf32>
    %341 = arith.mulf %338, %340 : vector<64x8xf32>
    %c200 = arith.constant 200 : index
    %c0_141 = arith.constant 0 : index
    %342 = vector.load %arg2[%c200, %c0_141] : memref<456x32xf32, #tpu.memory_space<vmem>>, vector<1x8xf32>
    %343 = vector.broadcast %342 : vector<1x8xf32> to vector<64x8xf32>
    %344 = arith.addf %341, %343 : vector<64x8xf32>
    %c0_142 = arith.constant 0 : index
    %c0_143 = arith.constant 0 : index
    %345 = vector.load %arg4[%c0_142, %c0_143] : memref<64x8xf32, #tpu.memory_space<vmem>>, vector<64x8xf32>
    tpu.vector_store %arg4[%c0_142, %c0_143], %344 {strides = array<i32>} : memref<64x8xf32, #tpu.memory_space<vmem>>, vector<64x8xf32>,
    %c0_144 = arith.constant 0 : index
    %c0_145 = arith.constant 0 : index
    %346 = tpu.strided_load %arg4[%c0_144, %c0_145] {strides = array<i32: 2, 1>} : memref<64x8xf32, #tpu.memory_space<vmem>>, vector<32x8xf32>
    %c1_146 = arith.constant 1 : index
    %c0_147 = arith.constant 0 : index
    %347 = tpu.strided_load %arg4[%c1_146, %c0_147] {strides = array<i32: 2, 1>} : memref<64x8xf32, #tpu.memory_space<vmem>>, vector<32x8xf32>
    %348 = arith.maximumf %346, %347 : vector<32x8xf32>
    %349 = tpu.iota {dimensions = array<i32: 0>} : vector<32x1xi32>
    %c15_i32_148 = arith.constant 15 : i32
    %350 = vector.broadcast %c15_i32_148 : i32 to vector<32x1xi32>
    %351 = arith.andi %349, %350 : vector<32x1xi32>
    %c8_i32_149 = arith.constant 8 : i32
    %352 = tpu.dynamic_rotate %348 by %c8_i32_149 dim 0 : vector<32x8xf32>, i32 -> vector<32x8xf32>
    %c-8_i32_150 = arith.constant -8 : i32
    %353 = vector.broadcast %c-8_i32_150 : i32 to vector<32x1xi32>
    %354 = arith.addi %351, %353 : vector<32x1xi32>
    %c0_i32_151 = arith.constant 0 : i32
    %355 = vector.broadcast %c0_i32_151 : i32 to vector<32x1xi32>
    %356 = arith.cmpi sge, %354, %355 : vector<32x1xi32>
    %c-8_i32_152 = arith.constant -8 : i32
    %357 = vector.broadcast %c-8_i32_152 : i32 to vector<32x1xi32>
    %358 = arith.addi %351, %357 : vector<32x1xi32>
    %c16_i32_153 = arith.constant 16 : i32
    %359 = vector.broadcast %c16_i32_153 : i32 to vector<32x1xi32>
    %360 = arith.cmpi slt, %358, %359 : vector<32x1xi32>
    %361 = arith.andi %356, %360 : vector<32x1xi1>
    %cst_154 = arith.constant 1.000000e+00 : f32
    %cst_155 = arith.constant 0.000000e+00 : f32
    %362 = vector.broadcast %cst_154 : f32 to vector<32x1xf32>
    %363 = vector.broadcast %cst_155 : f32 to vector<32x1xf32>
    %364 = arith.select %361, %362, %363 : vector<32x1xi1>, vector<32x1xf32>
    %365 = vector.broadcast %364 : vector<32x1xf32> to vector<32x8xf32>
    %366 = arith.mulf %352, %365 : vector<32x8xf32>
    %c4_i32_156 = arith.constant 4 : i32
    %367 = tpu.dynamic_rotate %348 by %c4_i32_156 dim 0 : vector<32x8xf32>, i32 -> vector<32x8xf32>
    %c-4_i32_157 = arith.constant -4 : i32
    %368 = vector.broadcast %c-4_i32_157 : i32 to vector<32x1xi32>
    %369 = arith.addi %351, %368 : vector<32x1xi32>
    %c0_i32_158 = arith.constant 0 : i32
    %370 = vector.broadcast %c0_i32_158 : i32 to vector<32x1xi32>
    %371 = arith.cmpi sge, %369, %370 : vector<32x1xi32>
    %c-4_i32_159 = arith.constant -4 : i32
    %372 = vector.broadcast %c-4_i32_159 : i32 to vector<32x1xi32>
    %373 = arith.addi %351, %372 : vector<32x1xi32>
    %c16_i32_160 = arith.constant 16 : i32
    %374 = vector.broadcast %c16_i32_160 : i32 to vector<32x1xi32>
    %375 = arith.cmpi slt, %373, %374 : vector<32x1xi32>
    %376 = arith.andi %371, %375 : vector<32x1xi1>
    %cst_161 = arith.constant 1.000000e+00 : f32
    %cst_162 = arith.constant 0.000000e+00 : f32
    %377 = vector.broadcast %cst_161 : f32 to vector<32x1xf32>
    %378 = vector.broadcast %cst_162 : f32 to vector<32x1xf32>
    %379 = arith.select %376, %377, %378 : vector<32x1xi1>, vector<32x1xf32>
    %380 = vector.broadcast %379 : vector<32x1xf32> to vector<32x8xf32>
    %381 = arith.mulf %367, %380 : vector<32x8xf32>
    %c28_i32 = arith.constant 28 : i32
    %382 = tpu.dynamic_rotate %348 by %c28_i32 dim 0 : vector<32x8xf32>, i32 -> vector<32x8xf32>
    %c4_i32_163 = arith.constant 4 : i32
    %383 = vector.broadcast %c4_i32_163 : i32 to vector<32x1xi32>
    %384 = arith.addi %351, %383 : vector<32x1xi32>
    %c0_i32_164 = arith.constant 0 : i32
    %385 = vector.broadcast %c0_i32_164 : i32 to vector<32x1xi32>
    %386 = arith.cmpi sge, %384, %385 : vector<32x1xi32>
    %c4_i32_165 = arith.constant 4 : i32
    %387 = vector.broadcast %c4_i32_165 : i32 to vector<32x1xi32>
    %388 = arith.addi %351, %387 : vector<32x1xi32>
    %c16_i32_166 = arith.constant 16 : i32
    %389 = vector.broadcast %c16_i32_166 : i32 to vector<32x1xi32>
    %390 = arith.cmpi slt, %388, %389 : vector<32x1xi32>
    %391 = arith.andi %386, %390 : vector<32x1xi1>
    %cst_167 = arith.constant 1.000000e+00 : f32
    %cst_168 = arith.constant 0.000000e+00 : f32
    %392 = vector.broadcast %cst_167 : f32 to vector<32x1xf32>
    %393 = vector.broadcast %cst_168 : f32 to vector<32x1xf32>
    %394 = arith.select %391, %392, %393 : vector<32x1xi1>, vector<32x1xf32>
    %395 = vector.broadcast %394 : vector<32x1xf32> to vector<32x8xf32>
    %396 = arith.mulf %382, %395 : vector<32x8xf32>
    %c24_i32 = arith.constant 24 : i32
    %397 = tpu.dynamic_rotate %348 by %c24_i32 dim 0 : vector<32x8xf32>, i32 -> vector<32x8xf32>
    %c8_i32_169 = arith.constant 8 : i32
    %398 = vector.broadcast %c8_i32_169 : i32 to vector<32x1xi32>
    %399 = arith.addi %351, %398 : vector<32x1xi32>
    %c0_i32_170 = arith.constant 0 : i32
    %400 = vector.broadcast %c0_i32_170 : i32 to vector<32x1xi32>
    %401 = arith.cmpi sge, %399, %400 : vector<32x1xi32>
    %c8_i32_171 = arith.constant 8 : i32
    %402 = vector.broadcast %c8_i32_171 : i32 to vector<32x1xi32>
    %403 = arith.addi %351, %402 : vector<32x1xi32>
    %c16_i32_172 = arith.constant 16 : i32
    %404 = vector.broadcast %c16_i32_172 : i32 to vector<32x1xi32>
    %405 = arith.cmpi slt, %403, %404 : vector<32x1xi32>
    %406 = arith.andi %401, %405 : vector<32x1xi1>
    %cst_173 = arith.constant 1.000000e+00 : f32
    %cst_174 = arith.constant 0.000000e+00 : f32
    %407 = vector.broadcast %cst_173 : f32 to vector<32x1xf32>
    %408 = vector.broadcast %cst_174 : f32 to vector<32x1xf32>
    %409 = arith.select %406, %407, %408 : vector<32x1xi1>, vector<32x1xf32>
    %410 = vector.broadcast %409 : vector<32x1xf32> to vector<32x8xf32>
    %411 = arith.mulf %397, %410 : vector<32x8xf32>
    %412 = tpu.concatenate %366, %381, %348, %396, %411 in 1 : vector<32x8xf32>, vector<32x8xf32>, vector<32x8xf32>, vector<32x8xf32>, vector<32x8xf32> -> vector<32x40xf32>
    %c208 = arith.constant 208 : index
    %c0_175 = arith.constant 0 : index
    %413 = vector.load %arg2[%c208, %c0_175] : memref<456x32xf32, #tpu.memory_space<vmem>>, vector<40x8xf32>
    %414 = arith.truncf %412 : vector<32x40xf32> to vector<32x40xbf16>
    %415 = arith.truncf %413 : vector<40x8xf32> to vector<40x8xbf16>
    %cst_176 = arith.constant dense<0.000000e+00> : vector<32x8xf32>
    %416 = tpu.matmul %414, %415, %cst_176 {dimension_numbers = #tpu.dot_dimension_numbers<[1], [0], [0], [1], [0, 0, 1, 1], [], []>} : vector<32x40xbf16>, vector<40x8xbf16>, vector<32x8xf32> -> vector<32x8xf32>
    %c248 = arith.constant 248 : index
    %c0_177 = arith.constant 0 : index
    %417 = vector.load %arg2[%c248, %c0_177] : memref<456x32xf32, #tpu.memory_space<vmem>>, vector<1x8xf32>
    %418 = vector.broadcast %417 : vector<1x8xf32> to vector<32x8xf32>
    %419 = arith.addf %416, %418 : vector<32x8xf32>
    %cst_178 = arith.constant 0.000000e+00 : f32
    %420 = vector.broadcast %cst_178 : f32 to vector<32x8xf32>
    %421 = arith.maximumf %419, %420 : vector<32x8xf32>
    %422 = tpu.iota {dimensions = array<i32: 0>} : vector<32x1xi32>
    %c15_i32_179 = arith.constant 15 : i32
    %423 = vector.broadcast %c15_i32_179 : i32 to vector<32x1xi32>
    %424 = arith.andi %422, %423 : vector<32x1xi32>
    %cst_180 = arith.constant 0.000000e+00 : f32
    %425 = vector.broadcast %cst_180 : f32 to vector<32x8xf32>
    %c8_i32_181 = arith.constant 8 : i32
    %426 = tpu.dynamic_rotate %421 by %c8_i32_181 dim 0 : vector<32x8xf32>, i32 -> vector<32x8xf32>
    %c-8_i32_182 = arith.constant -8 : i32
    %427 = vector.broadcast %c-8_i32_182 : i32 to vector<32x1xi32>
    %428 = arith.addi %424, %427 : vector<32x1xi32>
    %c0_i32_183 = arith.constant 0 : i32
    %429 = vector.broadcast %c0_i32_183 : i32 to vector<32x1xi32>
    %430 = arith.cmpi sge, %428, %429 : vector<32x1xi32>
    %c-8_i32_184 = arith.constant -8 : i32
    %431 = vector.broadcast %c-8_i32_184 : i32 to vector<32x1xi32>
    %432 = arith.addi %424, %431 : vector<32x1xi32>
    %c16_i32_185 = arith.constant 16 : i32
    %433 = vector.broadcast %c16_i32_185 : i32 to vector<32x1xi32>
    %434 = arith.cmpi slt, %432, %433 : vector<32x1xi32>
    %435 = arith.andi %430, %434 : vector<32x1xi1>
    %cst_186 = arith.constant 1.000000e+00 : f32
    %cst_187 = arith.constant 0.000000e+00 : f32
    %436 = vector.broadcast %cst_186 : f32 to vector<32x1xf32>
    %437 = vector.broadcast %cst_187 : f32 to vector<32x1xf32>
    %438 = arith.select %435, %436, %437 : vector<32x1xi1>, vector<32x1xf32>
    %439 = vector.broadcast %438 : vector<32x1xf32> to vector<32x8xf32>
    %440 = arith.mulf %426, %439 : vector<32x8xf32>
    %c24_i32_188 = arith.constant 24 : i32
    %441 = tpu.dynamic_rotate %421 by %c24_i32_188 dim 0 : vector<32x8xf32>, i32 -> vector<32x8xf32>
    %c8_i32_189 = arith.constant 8 : i32
    %442 = vector.broadcast %c8_i32_189 : i32 to vector<32x1xi32>
    %443 = arith.addi %424, %442 : vector<32x1xi32>
    %c0_i32_190 = arith.constant 0 : i32
    %444 = vector.broadcast %c0_i32_190 : i32 to vector<32x1xi32>
    %445 = arith.cmpi sge, %443, %444 : vector<32x1xi32>
    %c8_i32_191 = arith.constant 8 : i32
    %446 = vector.broadcast %c8_i32_191 : i32 to vector<32x1xi32>
    %447 = arith.addi %424, %446 : vector<32x1xi32>
    %c16_i32_192 = arith.constant 16 : i32
    %448 = vector.broadcast %c16_i32_192 : i32 to vector<32x1xi32>
    %449 = arith.cmpi slt, %447, %448 : vector<32x1xi32>
    %450 = arith.andi %445, %449 : vector<32x1xi1>
    %cst_193 = arith.constant 1.000000e+00 : f32
    %cst_194 = arith.constant 0.000000e+00 : f32
    %451 = vector.broadcast %cst_193 : f32 to vector<32x1xf32>
    %452 = vector.broadcast %cst_194 : f32 to vector<32x1xf32>
    %453 = arith.select %450, %451, %452 : vector<32x1xi1>, vector<32x1xf32>
    %454 = vector.broadcast %453 : vector<32x1xf32> to vector<32x8xf32>
    %455 = arith.mulf %441, %454 : vector<32x8xf32>
    %cst_195 = arith.constant 0.000000e+00 : f32
    %456 = vector.broadcast %cst_195 : f32 to vector<32x8xf32>
    %457 = tpu.concatenate %425, %440, %421, %455, %456 in 1 : vector<32x8xf32>, vector<32x8xf32>, vector<32x8xf32>, vector<32x8xf32>, vector<32x8xf32> -> vector<32x40xf32>
    %c256 = arith.constant 256 : index
    %c0_196 = arith.constant 0 : index
    %458 = vector.load %arg2[%c256, %c0_196] : memref<456x32xf32, #tpu.memory_space<vmem>>, vector<40x16xf32>
    %459 = arith.truncf %457 : vector<32x40xf32> to vector<32x40xbf16>
    %460 = arith.truncf %458 : vector<40x16xf32> to vector<40x16xbf16>
    %cst_197 = arith.constant dense<0.000000e+00> : vector<32x16xf32>
    %461 = tpu.matmul %459, %460, %cst_197 {dimension_numbers = #tpu.dot_dimension_numbers<[1], [0], [0], [1], [0, 0, 1, 1], [], []>} : vector<32x40xbf16>, vector<40x16xbf16>, vector<32x16xf32> -> vector<32x16xf32>
    %c296 = arith.constant 296 : index
    %c0_198 = arith.constant 0 : index
    %462 = vector.load %arg2[%c296, %c0_198] : memref<456x32xf32, #tpu.memory_space<vmem>>, vector<1x16xf32>
    %463 = vector.broadcast %462 : vector<1x16xf32> to vector<32x16xf32>
    %464 = arith.addf %461, %463 : vector<32x16xf32>
    %cst_199 = arith.constant 0.000000e+00 : f32
    %465 = vector.broadcast %cst_199 : f32 to vector<32x16xf32>
    %466 = arith.maximumf %464, %465 : vector<32x16xf32>
    %c304 = arith.constant 304 : index
    %c0_200 = arith.constant 0 : index
    %467 = vector.load %arg2[%c304, %c0_200] : memref<456x32xf32, #tpu.memory_space<vmem>>, vector<1x16xf32>
    %468 = vector.broadcast %467 : vector<1x16xf32> to vector<32x16xf32>
    %469 = arith.mulf %466, %468 : vector<32x16xf32>
    %c312 = arith.constant 312 : index
    %c0_201 = arith.constant 0 : index
    %470 = vector.load %arg2[%c312, %c0_201] : memref<456x32xf32, #tpu.memory_space<vmem>>, vector<1x16xf32>
    %471 = vector.broadcast %470 : vector<1x16xf32> to vector<32x16xf32>
    %472 = arith.addf %469, %471 : vector<32x16xf32>
    %c0_202 = arith.constant 0 : index
    %c0_203 = arith.constant 0 : index
    %473 = vector.load %arg5[%c0_202, %c0_203] : memref<32x16xf32, #tpu.memory_space<vmem>>, vector<32x16xf32>
    tpu.vector_store %arg5[%c0_202, %c0_203], %472 {strides = array<i32>} : memref<32x16xf32, #tpu.memory_space<vmem>>, vector<32x16xf32>,
    %c0_204 = arith.constant 0 : index
    %c0_205 = arith.constant 0 : index
    %474 = tpu.strided_load %arg5[%c0_204, %c0_205] {strides = array<i32: 2, 1>} : memref<32x16xf32, #tpu.memory_space<vmem>>, vector<16x16xf32>
    %c1_206 = arith.constant 1 : index
    %c0_207 = arith.constant 0 : index
    %475 = tpu.strided_load %arg5[%c1_206, %c0_207] {strides = array<i32: 2, 1>} : memref<32x16xf32, #tpu.memory_space<vmem>>, vector<16x16xf32>
    %476 = arith.maximumf %474, %475 : vector<16x16xf32>
    %477 = tpu.concatenate %192, %476 in 1 : vector<16x16xf32>, vector<16x16xf32> -> vector<16x32xf32>
    %478 = vector.extract_strided_slice %477 {offsets = [0, 0], sizes = [8, 32], strides = [1, 1]} : vector<16x32xf32> to vector<8x32xf32>
    %cst_208 = arith.constant dense<0.000000e+00> : vector<32xf32>
    %479 = vector.multi_reduction <add>, %478, %cst_208 [0] : vector<8x32xf32> to vector<32xf32>
    %480 = vector.shape_cast %479 : vector<32xf32> to vector<1x32xf32>
    %cst_209 = arith.constant 8.000000e+00 : f32
    %481 = vector.broadcast %cst_209 : f32 to vector<1x32xf32>
    %482 = arith.divf %480, %481 : vector<1x32xf32>
    %483 = vector.extract_strided_slice %477 {offsets = [8, 0], sizes = [8, 32], strides = [1, 1]} : vector<16x32xf32> to vector<8x32xf32>
    %cst_210 = arith.constant dense<0.000000e+00> : vector<32xf32>
    %484 = vector.multi_reduction <add>, %483, %cst_210 [0] : vector<8x32xf32> to vector<32xf32>
    %485 = vector.shape_cast %484 : vector<32xf32> to vector<1x32xf32>
    %cst_211 = arith.constant 8.000000e+00 : f32
    %486 = vector.broadcast %cst_211 : f32 to vector<1x32xf32>
    %487 = arith.divf %485, %486 : vector<1x32xf32>
    %488 = tpu.concatenate %482, %487 in 0 : vector<1x32xf32>, vector<1x32xf32> -> vector<2x32xf32>
    %c320 = arith.constant 320 : index
    %c0_212 = arith.constant 0 : index
    %489 = vector.load %arg2[%c320, %c0_212] : memref<456x32xf32, #tpu.memory_space<vmem>>, vector<32x8xf32>
    %490 = arith.truncf %488 : vector<2x32xf32> to vector<2x32xbf16>
    %491 = arith.truncf %489 : vector<32x8xf32> to vector<32x8xbf16>
    %cst_213 = arith.constant dense<0.000000e+00> : vector<2x8xf32>
    %492 = tpu.matmul %490, %491, %cst_213 {dimension_numbers = #tpu.dot_dimension_numbers<[1], [0], [0], [1], [0, 0, 1, 1], [], []>} : vector<2x32xbf16>, vector<32x8xbf16>, vector<2x8xf32> -> vector<2x8xf32>
    %c352 = arith.constant 352 : index
    %c0_214 = arith.constant 0 : index
    %493 = vector.load %arg2[%c352, %c0_214] : memref<456x32xf32, #tpu.memory_space<vmem>>, vector<1x8xf32>
    %494 = vector.broadcast %493 : vector<1x8xf32> to vector<2x8xf32>
    %495 = arith.addf %492, %494 : vector<2x8xf32>
    %cst_215 = arith.constant 0.000000e+00 : f32
    %496 = vector.broadcast %cst_215 : f32 to vector<2x8xf32>
    %497 = arith.maximumf %495, %496 : vector<2x8xf32>
    %c360 = arith.constant 360 : index
    %c0_216 = arith.constant 0 : index
    %498 = vector.load %arg2[%c360, %c0_216] : memref<456x32xf32, #tpu.memory_space<vmem>>, vector<8x32xf32>
    %499 = arith.truncf %497 : vector<2x8xf32> to vector<2x8xbf16>
    %500 = arith.truncf %498 : vector<8x32xf32> to vector<8x32xbf16>
    %cst_217 = arith.constant dense<0.000000e+00> : vector<2x32xf32>
    %501 = tpu.matmul %499, %500, %cst_217 {dimension_numbers = #tpu.dot_dimension_numbers<[1], [0], [0], [1], [0, 0, 1, 1], [], []>} : vector<2x8xbf16>, vector<8x32xbf16>, vector<2x32xf32> -> vector<2x32xf32>
    %c368 = arith.constant 368 : index
    %c0_218 = arith.constant 0 : index
    %502 = vector.load %arg2[%c368, %c0_218] : memref<456x32xf32, #tpu.memory_space<vmem>>, vector<1x32xf32>
    %503 = vector.broadcast %502 : vector<1x32xf32> to vector<2x32xf32>
    %504 = arith.addf %501, %503 : vector<2x32xf32>
    %cst_219 = arith.constant 0.000000e+00 : f32
    %505 = vector.broadcast %cst_219 : f32 to vector<2x32xf32>
    %506 = arith.subf %505, %504 : vector<2x32xf32>
    %507 = math.exp %506 : vector<2x32xf32>
    %cst_220 = arith.constant 1.000000e+00 : f32
    %508 = vector.broadcast %cst_220 : f32 to vector<2x32xf32>
    %509 = arith.addf %508, %507 : vector<2x32xf32>
    %510 = tpu.reciprocal %509 {approx = true} : vector<2x32xf32> -> vector<2x32xf32>
    %511 = vector.extract_strided_slice %477 {offsets = [0, 0], sizes = [8, 32], strides = [1, 1]} : vector<16x32xf32> to vector<8x32xf32>
    %512 = vector.extract_strided_slice %510 {offsets = [0, 0], sizes = [1, 32], strides = [1, 1]} : vector<2x32xf32> to vector<1x32xf32>
    %513 = vector.broadcast %512 : vector<1x32xf32> to vector<8x32xf32>
    %514 = arith.mulf %511, %513 : vector<8x32xf32>
    %515 = vector.extract_strided_slice %477 {offsets = [8, 0], sizes = [8, 32], strides = [1, 1]} : vector<16x32xf32> to vector<8x32xf32>
    %516 = vector.extract_strided_slice %510 {offsets = [1, 0], sizes = [1, 32], strides = [1, 1]} : vector<2x32xf32> to vector<1x32xf32>
    %517 = vector.broadcast %516 : vector<1x32xf32> to vector<8x32xf32>
    %518 = arith.mulf %515, %517 : vector<8x32xf32>
    %519 = tpu.concatenate %514, %518 in 0 : vector<8x32xf32>, vector<8x32xf32> -> vector<16x32xf32>
    %c376 = arith.constant 376 : index
    %c0_221 = arith.constant 0 : index
    %520 = vector.load %arg2[%c376, %c0_221] : memref<456x32xf32, #tpu.memory_space<vmem>>, vector<32x16xf32>
    %521 = arith.truncf %519 : vector<16x32xf32> to vector<16x32xbf16>
    %522 = arith.truncf %520 : vector<32x16xf32> to vector<32x16xbf16>
    %cst_222 = arith.constant dense<0.000000e+00> : vector<16x16xf32>
    %523 = tpu.matmul %521, %522, %cst_222 {dimension_numbers = #tpu.dot_dimension_numbers<[1], [0], [0], [1], [0, 0, 1, 1], [], []>} : vector<16x32xbf16>, vector<32x16xbf16>, vector<16x16xf32> -> vector<16x16xf32>
    %c408 = arith.constant 408 : index
    %c0_223 = arith.constant 0 : index
    %524 = vector.load %arg2[%c408, %c0_223] : memref<456x32xf32, #tpu.memory_space<vmem>>, vector<1x16xf32>
    %525 = vector.broadcast %524 : vector<1x16xf32> to vector<16x16xf32>
    %526 = arith.addf %523, %525 : vector<16x16xf32>
    %cst_224 = arith.constant 0.000000e+00 : f32
    %527 = vector.broadcast %cst_224 : f32 to vector<16x16xf32>
    %528 = arith.maximumf %526, %527 : vector<16x16xf32>
    %529 = math.absf %526 : vector<16x16xf32>
    %cst_225 = arith.constant 0.000000e+00 : f32
    %530 = vector.broadcast %cst_225 : f32 to vector<16x16xf32>
    %531 = arith.subf %530, %529 : vector<16x16xf32>
    %532 = math.exp %531 : vector<16x16xf32>
    %cst_226 = arith.constant 1.000000e+00 : f32
    %533 = vector.broadcast %cst_226 : f32 to vector<16x16xf32>
    %534 = arith.addf %533, %532 : vector<16x16xf32>
    %535 = math.log %534 : vector<16x16xf32>
    %536 = arith.addf %528, %535 : vector<16x16xf32>
    %537 = math.tanh %536 : vector<16x16xf32>
    %538 = arith.mulf %526, %537 : vector<16x16xf32>
    %c416 = arith.constant 416 : index
    %c0_227 = arith.constant 0 : index
    %539 = vector.load %arg2[%c416, %c0_227] : memref<456x32xf32, #tpu.memory_space<vmem>>, vector<16x8xf32>
    %540 = arith.truncf %538 : vector<16x16xf32> to vector<16x16xbf16>
    %541 = arith.truncf %539 : vector<16x8xf32> to vector<16x8xbf16>
    %cst_228 = arith.constant dense<0.000000e+00> : vector<16x8xf32>
    %542 = tpu.matmul %540, %541, %cst_228 {dimension_numbers = #tpu.dot_dimension_numbers<[1], [0], [0], [1], [0, 0, 1, 1], [], []>} : vector<16x16xbf16>, vector<16x8xbf16>, vector<16x8xf32> -> vector<16x8xf32>
    %c432 = arith.constant 432 : index
    %c0_229 = arith.constant 0 : index
    %543 = vector.load %arg2[%c432, %c0_229] : memref<456x32xf32, #tpu.memory_space<vmem>>, vector<1x8xf32>
    %544 = vector.broadcast %543 : vector<1x8xf32> to vector<16x8xf32>
    %545 = arith.addf %542, %544 : vector<16x8xf32>
    %cst_230 = arith.constant 0.000000e+00 : f32
    %546 = vector.broadcast %cst_230 : f32 to vector<16x8xf32>
    %547 = arith.maximumf %545, %546 : vector<16x8xf32>
    %548 = math.absf %545 : vector<16x8xf32>
    %cst_231 = arith.constant 0.000000e+00 : f32
    %549 = vector.broadcast %cst_231 : f32 to vector<16x8xf32>
    %550 = arith.subf %549, %548 : vector<16x8xf32>
    %551 = math.exp %550 : vector<16x8xf32>
    %cst_232 = arith.constant 1.000000e+00 : f32
    %552 = vector.broadcast %cst_232 : f32 to vector<16x8xf32>
    %553 = arith.addf %552, %551 : vector<16x8xf32>
    %554 = math.log %553 : vector<16x8xf32>
    %555 = arith.addf %547, %554 : vector<16x8xf32>
    %556 = math.tanh %555 : vector<16x8xf32>
    %557 = arith.mulf %545, %556 : vector<16x8xf32>
    %c440 = arith.constant 440 : index
    %c0_233 = arith.constant 0 : index
    %558 = vector.load %arg2[%c440, %c0_233] : memref<456x32xf32, #tpu.memory_space<vmem>>, vector<8x3xf32>
    %559 = arith.truncf %557 : vector<16x8xf32> to vector<16x8xbf16>
    %560 = arith.truncf %558 : vector<8x3xf32> to vector<8x3xbf16>
    %cst_234 = arith.constant dense<0.000000e+00> : vector<16x3xf32>
    %561 = tpu.matmul %559, %560, %cst_234 {dimension_numbers = #tpu.dot_dimension_numbers<[1], [0], [0], [1], [0, 0, 1, 1], [], []>} : vector<16x8xbf16>, vector<8x3xbf16>, vector<16x3xf32> -> vector<16x3xf32>
    %c448 = arith.constant 448 : index
    %c0_235 = arith.constant 0 : index
    %562 = vector.load %arg2[%c448, %c0_235] : memref<456x32xf32, #tpu.memory_space<vmem>>, vector<1x3xf32>
    %563 = vector.broadcast %562 : vector<1x3xf32> to vector<16x3xf32>
    %564 = arith.addf %561, %563 : vector<16x3xf32>
    %c0_236 = arith.constant 0 : index
    %c0_237 = arith.constant 0 : index
    %565 = vector.load %arg3[%c0_236, %c0_237] : memref<16x3xf32, #tpu.memory_space<vmem>>, vector<16x3xf32>
    tpu.vector_store %arg3[%c0_236, %c0_237], %564 {strides = array<i32>} : memref<16x3xf32, #tpu.memory_space<vmem>>, vector<16x3xf32>,
    return
  }
  func.func @transform_0(%arg0: i32) -> (i32, i32) {
    %c0_i32 = arith.constant 0 : i32
    %c0_i32_0 = arith.constant 0 : i32
    %c0_i32_1 = arith.constant 0 : i32
    return %c0_i32, %c0_i32_0 : i32, i32
  }
  func.func @transform_1(%arg0: i32) -> (i32, i32) {
    %c0_i32 = arith.constant 0 : i32
    %c0_i32_0 = arith.constant 0 : i32
    %c0_i32_1 = arith.constant 0 : i32
    return %c0_i32, %c0_i32_0 : i32, i32
  }
  func.func @transform_2(%arg0: i32) -> (i32, i32) {
    %c0_i32 = arith.constant 0 : i32
    %c0_i32_0 = arith.constant 0 : i32
    %c0_i32_1 = arith.constant 0 : i32
    return %c0_i32, %c0_i32_0 : i32, i32
  }
}

</mosaic_0001>

<bundles_post_ra>
// kernel: _lambda_.1
= control target key start
LH: loop header
LB: loop body
LE: loop exit
PB: predicated region body
PF: predicated region fallthrough
CT: control target
= control target key end

     0   :  { %v20_v0 = vlaneseq  ;;  %s3341_s23 = smov 2   ;;  %s3342_s26 = smov 4   ;;  %v3343_v34 = vmov 0.0   ;;  %vm273_vm3 = vcmask 1042432   ;;  %vm231_vm6 = vcmask 15360   ;;  %s4410_s0 = inlined_call_operand.vmem [shape: f32[64,2], index: 0, kind: input, shape index: {}]   ;;  %s4411_s1 = inlined_call_operand.vmem [shape: f32[456,32], index: 1, kind: input, shape index: {}]   ;;  %s4412_s2 = inlined_call_operand.vmem [shape: f32[16,3], index: 2, kind: output, shape index: {}]  }
   0x1   :  { %v3369_v1 = vld [vmem:[%s4410_s0] sm:$0xff]  ;;  %v3374_v2 = vld [vmem:[%s4410_s0 + $0x8] sm:$0xff]  ;;  %v3379_v3 = vld [vmem:[%s4410_s0 + $0x10] sm:$0xff]  ;;  %vm240_vm8 = vcmask 31744   ;;  %vm260_vm9 = vcmask 48128   ;;  %vm504_vm10 = vcmask 1045504  }
   0x2   :  { %v3383_v4 = vpack.i.bf16 %v3374_v2, %v3369_v1  ;;  %v3388_v5 = vld [vmem:[%s4410_s0 + $0x18] sm:$0xff]  ;;  %v3390_v6 = vshrl.u32 %v20_v0, 7  ;;  %v102_v7 = vrot.slane %v3369_v1, 1  ;;  %v103_v8 = vrot.slane %v3374_v2, 1  ;;  %v3397_v9 = vld [vmem:[%s4410_s0 + $0x20] sm:$0xff]  ;;  %v3402_v10 = vld [vmem:[%s4410_s0 + $0x28] sm:$0xff] }
   0x3   :  { %v3406_v11 = vpack.i.bf16 %v3388_v5, %v3379_v3  ;;  %v104_v12 = vrot.slane %v3379_v3, 1  ;;  %v3412_v13 = vld [vmem:[%s4410_s0 + $0x30] sm:$0xff]  ;;  %v105_v15 = vrot.slane %v3388_v5, 1  ;;  %v106_v16 = vrot.slane %v3397_v9, 1  ;;  %v3434_v23 = vld [vmem:[%s4410_s0 + $0x38] sm:$0xff]  ;;  %s3344_s6 = smov 8  }
   0x4   :  { %2964 = vrot.lane.b32.xlu0 %v3383_v4, %s3341_s23  ;;  %vm110_vm0 = vcmp.lt.s32.totalorder %v3390_v6, 7  ;;  %v3418_v14 = vadd.s32 24, %v3390_v6  ;;  %v107_v19 = vrot.slane %v3402_v10, 1  ;;  %v108_v20 = vrot.slane %v3412_v13, 1  ;;  %v249_v32 = vld [vmem:[%s4411_s1] sm:$0x3f] }
   0x5   :  { %v116_v17 = vsel %vm110_vm0, %v103_v8, %v104_v12  ;;  %v117_v18 = vsel %vm110_vm0, %v102_v7, %v103_v8  ;;  %v28_v24 = vadd.s32 56, %v3390_v6  ;;  %v3442_v25 = vpack.i.bf16 %v3402_v10, %v3397_v9  ;;  %s3345_s7 = smov 6   ;;  %s3346_s25 = smov 16  }
   0x6   :  { %v2978_v21 = vpack.i.bf16 %v116_v17, %v117_v18  ;;  %v3429_v22 = vand.u32 31, %v3418_v14  ;;  %v114_v26 = vsel %vm110_vm0, %v105_v15, %v106_v16  ;;  %v112_v28 = vsel %vm110_vm0, %v107_v19, %v108_v20  ;;  %s3347_s12 = smov 12   ;;  %s3348_s10 = smov 24  }
   0x7   :  { %v113_v29 = vsel %vm110_vm0, %v106_v16, %v107_v19  ;;  %v3451_v30 = vand.u32 31, %v28_v24  ;;  %v109_v31 = vrot.slane %v3434_v23, 1  ;;  %v115_v33 = vsel %vm110_vm0, %v104_v12, %v105_v15  ;;  %s3349_s11 = smov 32  }
   0x8   :  { %2969 = vrot.lane.b32.xlu0 %v3406_v11, %s3341_s23  ;;  %2979 = vrot.lane.b32.xlu1 %v2978_v21, %s3342_s26  ;;  %v122_v27 = vadd.s32 1, %v3429_v22  ;;  %v2993_v38 = vpack.i.bf16 %v112_v28, %v113_v29  ;;  %v254_v40 = vpack.c.bf16 %v249_v32, %v249_v32  ;;  %v3475_v43 = vpack.i.bf16 %v3434_v23, %v3412_v13 }
   0x9   :  { %v126_v36 = vadd.s32 1, %v3451_v30  ;;  %v118_v39 = vsel %vm110_vm0, %v109_v31, %v102_v7  ;;  %v111_v46 = vsel %vm110_vm0, %v108_v20, %v109_v31  ;;  %v3484_v48 = vand.u32 31, %v3390_v6 }
   0xa   :  { %vm138_vm1 = vcmp.lt.s32.totalorder %v122_v27, 32  ;;  %2945 = vmatprep.subr.msk.bf16.mxu0 %vm273_vm3, %v254_v40  ;;  %v275_v45 = vsel %vm273_vm3, %v254_v40, 0  ;;  %v25_v49 = vadd.s32 32, %v3390_v6  ;;  %v37_v51 = vrot.slane %v3369_v1, 7 }
   0xb   :  { %v3460_v35 = vsel %vm138_vm1, 1.0, %v3343_v34  ;;  %vm142_vm2 = vcmp.lt.s32.totalorder %v126_v36, 32  ;;  %2834 = vmatpush3.bf16.msra.mxu0 %v275_v45  ;;  %v54_v50 = vadd.s32 4294967295, %v3484_v48  ;;  %v44_v52 = vrot.slane %v3434_v23, 7 }
   0xc   :  { %2974 = vrot.lane.b32.xlu0 %v3442_v25, %s3341_s23  ;;  %v162_v37 = vmul.f32 %v3460_v35, %v114_v26  ;;  %v3469_v42 = vsel %vm142_vm2, 1.0, %v3343_v34  ;;  %vm45_vm4 = vcmp.lt.s32.totalorder %v3390_v6, 1  ;;  %v3491_v53 = vand.u32 31, %v25_v49 }
   0xd   :  { %v166_v44 = vmul.f32 %v3469_v42, %v118_v39  ;;  %vm62_vm5 = vcmp.ge.s32.totalorder %v54_v50, 0  ;;  %v38_v54 = vrot.slane %v3374_v2, 7  ;;  %v53_v55 = vsel %vm45_vm4, %v44_v52, %v37_v51 }
   0xe   :  { %v2983_v41 = vpack.i.bf16 %v162_v37, %v115_v33  ;;  %v3499_v56 = vsel %vm62_vm5, 1.0, %v3343_v34  ;;  %v58_v57 = vadd.s32 4294967295, %v3491_v53  ;;  %v41_v62 = vrot.slane %v3397_v9, 7 }
   0xf   :  { %v2998_v47 = vpack.i.bf16 %v166_v44, %v111_v46  ;;  %v94_v59 = vmul.f32 %v3499_v56, %v53_v55  ;;  %v52_v63 = vsel %vm45_vm4, %v37_v51, %v38_v54  ;;  %v39_v0 = vrot.slane %v3379_v3, 7 }
  0x10   :  { %2984 = vrot.lane.b32.xlu1 %v2983_v41, %s3342_s26  ;;  %2994 = vrot.lane.b32.xlu0 %v2993_v38, %s3342_s26  ;;  %vm66_vm7 = vcmp.ge.s32.totalorder %v58_v57, 0  ;;  %v40_v7 = vrot.slane %v3388_v5, 7  ;;  %v42_v15 = vrot.slane %v3402_v10, 7  ;;  %v43_v55 = vrot.slane %v3412_v13, 7 }
  0x11   :  { %v3514_v21 = vsel %vm66_vm7, 1.0, %v3343_v34  ;;  %v51_v36 = vsel %vm45_vm4, %v38_v54, %v39_v0  ;;  %vm470_vm11 = vcmask 64512   ;;  %vm491_vm12 = vcmask 97280  }
  0x12   :  { %v49_v20 = vsel %vm45_vm4, %v40_v7, %v41_v62  ;;  %v50_v24 = vsel %vm45_vm4, %v39_v0, %v40_v7  ;;  %v48_v37 = vsel %vm45_vm4, %v41_v62, %v42_v15  ;;  %vm642_vm13 = vcmp.lt.s32.totalorder %v3390_v6, 2 }
  0x13   :  { %v98_v31 = vmul.f32 %v3514_v21, %v49_v20  ;;  %vm675_vm15 = vcmp.lt.s32.totalorder %v3390_v6, 6  ;;  %vm998_vm1 = vcmp.lt.s32.totalorder %v3390_v6, 4  ;;  %vm764_vm3 = vcmask 1043456  }
  0x14   :  { %2989 = vrot.lane.b32.xlu1 %v3475_v43, %s3341_s23 }
  0x18   :  { %2999 = vrot.lane.b32.xlu1 %v2998_v47, %s3342_s26 }
  0x76   :  { %v2965_v58 = vpop.permute.xlu0 %2964 }
  0x77   :  { %v2967_v60 = vunpack.i.h.bf16 %v2965_v58  ;;  %v2966_v61 = vunpack.i.l.bf16 %v2965_v58 }
  0x79   :  { %v232_v16 = vsel %vm231_vm6, %v94_v59, %v2966_v61  ;;  %v233_v17 = vsel %vm231_vm6, %v52_v63, %v2967_v60 }
  0x7a   :  { %v2970_v8 = vpop.permute.xlu0 %2969  ;;  %v2980_v12 = vpop.permute.xlu1 %2979 }
  0x7b   :  { %v2982_v18 = vunpack.i.h.bf16 %v2980_v12  ;;  %v2981_v19 = vunpack.i.l.bf16 %v2980_v12  ;;  %v2972_v28 = vunpack.i.h.bf16 %v2970_v8  ;;  %v2971_v29 = vunpack.i.l.bf16 %v2970_v8 }
  0x7c   :  { %v46_v8 = vsel %vm45_vm4, %v43_v55, %v44_v52  ;;  %v47_v12 = vsel %vm45_vm4, %v42_v15, %v43_v55  ;;  %v2732_v52 = vld [vmem:[%s4411_s1 + $0x8] ss:$0 sm:$0xff] }
  0x7d   :  { %v241_v26 = vsel %vm240_vm8, %v232_v16, %v2981_v19  ;;  %v242_v27 = vsel %vm240_vm8, %v233_v17, %v2982_v18  ;;  %v235_v40 = vsel %vm231_vm6, %v50_v24, %v2972_v28  ;;  %v234_v41 = vsel %vm231_vm6, %v51_v36, %v2971_v29 }
  0x7e   :  { %v2975_v32 = vpop.permute.xlu0 %2974  ;;  %v250_v33 = vpack.c.bf16 %v242_v27, %v241_v26 }
  0x7f   :  { %v2977_v38 = vunpack.i.h.bf16 %v2975_v32  ;;  %v2976_v39 = vunpack.i.l.bf16 %v2975_v32 }
  0x80   :  { %2835 = vmatprep.mubr.msk.bf16.mxu0 %vm260_vm9, %v250_v33 }
  0x81   :  { %v237_v44 = vsel %vm231_vm6, %v48_v37, %v2977_v38  ;;  %v236_v45 = vsel %vm231_vm6, %v98_v31, %v2976_v39 }
  0x82   :  { %v2985_v46 = vpop.permute.xlu1 %2984  ;;  %v2995_v47 = vpop.permute.xlu0 %2994 }
  0x83   :  { %v2987_v49 = vunpack.i.h.bf16 %v2985_v46  ;;  %v2986_v50 = vunpack.i.l.bf16 %v2985_v46  ;;  %v2997_v51 = vunpack.i.h.bf16 %v2995_v47  ;;  %v2996_v54 = vunpack.i.l.bf16 %v2995_v47 }
  0x85   :  { %v244_v57 = vsel %vm240_vm8, %v235_v40, %v2987_v49  ;;  %v243_v58 = vsel %vm240_vm8, %v234_v41, %v2986_v50  ;;  %v245_v59 = vsel %vm240_vm8, %v236_v45, %v2996_v54  ;;  %v246_v60 = vsel %vm240_vm8, %v237_v44, %v2997_v51 }
  0x86   :  { %v251_v61 = vpack.c.bf16 %v244_v57, %v243_v58  ;;  %v252_v62 = vpack.c.bf16 %v246_v60, %v245_v59  ;;  %v2990_v63 = vpop.permute.xlu1 %2989  ;;  %v479_v59 = vld [vmem:[%s4411_s1 + $0x10] sm:$0xff]  ;;  %v480_v60 = vld [vmem:[%s4411_s1 + $0x18] sm:$0xf] }
  0x87   :  { %v2992_v0 = vunpack.i.h.bf16 %v2990_v63  ;;  %v2991_v7 = vunpack.i.l.bf16 %v2990_v63 }
  0x88   :  { %2836 = vmatmul.mubr.msk.bf16.vlgmr.msra.gmra.mrb[0].mxu0 %vm260_vm9, %v251_v61 }
  0x89   :  { %2839 = vmatprep.mubr.msk.bf16.mxu0 %vm260_vm9, %v252_v62  ;;  %v239_v19 = vsel %vm231_vm6, %v46_v8, %v2992_v0  ;;  %v238_v20 = vsel %vm231_vm6, %v47_v12, %v2991_v7  ;;  %v485_v7 = vpack.c.bf16 %v480_v60, %v479_v59 }
  0x8a   :  { %v3000_v16 = vpop.permute.xlu1 %2999 }
  0x8b   :  { %v3002_v17 = vunpack.i.h.bf16 %v3000_v16  ;;  %v3001_v18 = vunpack.i.l.bf16 %v3000_v16  ;;  %2946 = vmatprep.subr.msk.bf16.mxu1 %vm504_vm10, %v485_v7 }
  0x8d   :  { %v247_v24 = vsel %vm240_vm8, %v238_v20, %v3001_v18  ;;  %v248_v26 = vsel %vm240_vm8, %v239_v19, %v3002_v17 }
  0x8e   :  { %v253_v27 = vpack.c.bf16 %v248_v26, %v247_v24 }
  0x90   :  { %2840 = vmatmul.mubr.msk.bf16.gmra.mrb[4].mxu0 %vm260_vm9, %v253_v27 }
 0x15b   :  { %v2837_v15 = vpop.f32.mrb[0].mxu0 }
 0x15c   :  { %v320_v28 = vadd.f32 %v2837_v15, %v2732_v52  ;;  %v311_v29 = vpop.f32.mrb[1].mxu0 }
 0x15d   :  { %v312_v31 = vadd.f32 %v2732_v52, %v311_v29  ;;  %v2838_v32 = vpop.f32.mrb[2].mxu0 }
 0x15e   :  { %v344_v33 = vmax.f32 %v320_v28, 0.0  ;;  %v323_v36 = vadd.f32 %v2838_v32, %v2732_v52  ;;  %v314_v37 = vpop.f32.mrb[3].mxu0 }
 0x15f   :  { %v342_v38 = vmax.f32 %v312_v31, 0.0  ;;  %v315_v39 = vadd.f32 %v2732_v52, %v314_v37  ;;  %v506_v31 = vsel %vm504_vm10, %v485_v7, 0  ;;  %vm1408_vm10 = vcmask 1044480  }
 0x160   :  { %v345_v40 = vmax.f32 %v323_v36, 0.0  ;;  %v352_v41 = vrot.slane %v344_v33, 7  ;;  %v376_v44 = vrot.slane %v344_v33, 1  ;;  %2844 = vmatpush3.bf16.msra.mxu1 %v506_v31 }
 0x161   :  { %v350_v45 = vrot.slane %v342_v38, 7  ;;  %v343_v46 = vmax.f32 %v315_v39, 0.0  ;;  %v374_v47 = vrot.slane %v342_v38, 1 }
 0x162   :  { %v353_v49 = vrot.slane %v345_v40, 7  ;;  %v377_v50 = vrot.slane %v345_v40, 1  ;;  %v3003_v51 = vpack.i.bf16 %v345_v40, %v344_v33 }
 0x163   :  { %v351_v54 = vrot.slane %v343_v46, 7  ;;  %v375_v55 = vrot.slane %v343_v46, 1  ;;  %v2841_v57 = vpop.f32.mrb[4].mxu0  ;;  %v3008_v58 = vpack.i.bf16 %v343_v46, %v342_v38 }
 0x164   :  { %v336_v61 = vadd.f32 %v2841_v57, %v2732_v52  ;;  %3004 = vrot.lane.b32.xlu1 %v3003_v51, %s3342_s26  ;;  %v327_v62 = vpop.f32.mrb[5].mxu0  ;;  %v386_v63 = vsel %vm110_vm0, %v376_v44, %v377_v50  ;;  %v3562_v0 = vsel %vm45_vm4, %v352_v41, %v353_v49 }
 0x165   :  { %v328_v8 = vadd.f32 %v2732_v52, %v327_v62  ;;  %v2842_v12 = vpop.f32.mrb[6].mxu0  ;;  %3009 = vrot.lane.b32.xlu0 %v3008_v58, %s3342_s26  ;;  %v387_v16 = vsel %vm110_vm0, %v375_v55, %v376_v44  ;;  %v388_v17 = vsel %vm110_vm0, %v374_v47, %v375_v55  ;;  %v3571_v18 = vsel %vm45_vm4, %v351_v54, %v352_v41 }
 0x166   :  { %v348_v19 = vmax.f32 %v336_v61, 0.0  ;;  %v339_v20 = vadd.f32 %v2842_v12, %v2732_v52  ;;  %v330_v24 = vpop.f32.mrb[7].mxu0  ;;  %v3013_v26 = vpack.i.bf16 %v387_v16, %v388_v17  ;;  %v364_v27 = vsel %vm45_vm4, %v350_v45, %v351_v54 }
 0x167   :  { %v346_v15 = vmax.f32 %v328_v8, 0.0  ;;  %v331_v28 = vadd.f32 %v2732_v52, %v330_v24 }
 0x168   :  { %v349_v29 = vmax.f32 %v339_v20, 0.0  ;;  %v356_v32 = vrot.slane %v348_v19, 7  ;;  %v380_v38 = vrot.slane %v348_v19, 1 }
 0x169   :  { %v354_v33 = vrot.slane %v346_v15, 7  ;;  %v378_v36 = vrot.slane %v346_v15, 1  ;;  %v347_v37 = vmax.f32 %v331_v28, 0.0  ;;  %3014 = vrot.lane.b32.xlu0 %v3013_v26, %s3344_s6 }
 0x16a   :  { %v357_v39 = vrot.slane %v349_v29, 7  ;;  %v381_v40 = vrot.slane %v349_v29, 1  ;;  %v3028_v41 = vpack.i.bf16 %v349_v29, %v348_v19 }
 0x16b   :  { %v361_v44 = vsel %vm45_vm4, %v353_v49, %v354_v33  ;;  %v355_v52 = vrot.slane %v347_v37, 7  ;;  %v379_v46 = vrot.slane %v347_v37, 1  ;;  %v3018_v51 = vpack.i.bf16 %v347_v37, %v346_v15 }
 0x16c   :  { %v365_v54 = vsel %vm45_vm4, %v357_v39, %v350_v45  ;;  %v385_v55 = vsel %vm110_vm0, %v377_v50, %v378_v36  ;;  %v382_v57 = vsel %vm110_vm0, %v380_v38, %v381_v40  ;;  %v389_v58 = vsel %vm110_vm0, %v381_v40, %v374_v47 }
 0x16d   :  { %3019 = vrot.lane.b32.xlu0 %v3018_v51, %s3342_s26  ;;  %v393_v59 = vmul.f32 %v385_v55, %v3460_v35  ;;  %v383_v49 = vsel %vm110_vm0, %v379_v46, %v380_v38  ;;  %v384_v60 = vsel %vm110_vm0, %v378_v36, %v379_v46  ;;  %v397_v45 = vmul.f32 %v389_v58, %v3469_v42 }
 0x16e   :  { %v3033_v61 = vpack.i.bf16 %v383_v49, %v384_v60  ;;  %v360_v50 = vsel %vm45_vm4, %v354_v33, %v355_v52  ;;  %v358_v47 = vsel %vm45_vm4, %v356_v32, %v357_v39  ;;  %v359_v35 = vsel %vm45_vm4, %v355_v52, %v356_v32 }
 0x16f   :  { %v3023_v62 = vpack.i.bf16 %v393_v59, %v386_v63  ;;  %v3038_v7 = vpack.i.bf16 %v397_v45, %v382_v57  ;;  %v366_v63 = vmul.f32 %v365_v54, %v3499_v56  ;;  %v370_v56 = vmul.f32 %v361_v44, %v3514_v21 }
 0x171   :  { %3024 = vrot.lane.b32.xlu1 %v3023_v62, %s3344_s6  ;;  %3034 = vrot.lane.b32.xlu0 %v3033_v61, %s3344_s6 }
 0x175   :  { %3029 = vrot.lane.b32.xlu1 %v3028_v41, %s3342_s26 }
 0x179   :  { %3039 = vrot.lane.b32.xlu1 %v3038_v7, %s3344_s6 }
 0x1d6   :  { %v3005_v26 = vpop.permute.xlu1 %3004 }
 0x1d7   :  { %v3010_v42 = vpop.permute.xlu0 %3009  ;;  %v3007_v32 = vunpack.i.h.bf16 %v3005_v26  ;;  %v3006_v33 = vunpack.i.l.bf16 %v3005_v26  ;;  %v1058_v26 = vrot.slane %v3388_v5, 6 }
 0x1d8   :  { %v3012_v8 = vunpack.i.h.bf16 %v3010_v42  ;;  %v3011_v12 = vunpack.i.l.bf16 %v3010_v42 }
 0x1d9   :  { %v464_v46 = vsel %vm240_vm8, %v3571_v18, %v3006_v33  ;;  %v465_v51 = vsel %vm240_vm8, %v3562_v0, %v3007_v32  ;;  %v1138_v33 = vadd.s32 2, %v3429_v22 }
 0x1da   :  { %v462_v20 = vsel %vm240_vm8, %v366_v63, %v3011_v12  ;;  %v463_v24 = vsel %vm240_vm8, %v364_v27, %v3012_v8  ;;  %v1055_v63 = vrot.slane %v3369_v1, 6 }
 0x1db   :  { %v3015_v16 = vpop.permute.xlu0 %3014  ;;  %vm1154_vm0 = vcmp.lt.s32.totalorder %v1138_v33, 32 }
 0x1dc   :  { %v3017_v17 = vunpack.i.h.bf16 %v3015_v16  ;;  %v3016_v19 = vunpack.i.l.bf16 %v3015_v16  ;;  %v1071_v16 = vadd.s32 4294967294, %v3484_v48 }
 0x1de   :  { %v471_v15 = vsel %vm470_vm11, %v462_v20, %v3016_v19  ;;  %v472_v28 = vsel %vm470_vm11, %v463_v24, %v3017_v17  ;;  %v1062_v17 = vrot.slane %v3434_v23, 6  ;;  %vm1079_vm14 = vcmp.ge.s32.totalorder %v1071_v16, 0 }
 0x1df   :  { %v3020_v29 = vpop.permute.xlu0 %3019  ;;  %v481_v31 = vpack.c.bf16 %v472_v28, %v471_v15  ;;  %v1103_v19 = vsel %vm1079_vm14, 1.0, %v3343_v34  ;;  %v1057_v24 = vrot.slane %v3379_v3, 6 }
 0x1e0   :  { %v3022_v36 = vunpack.i.h.bf16 %v3020_v29  ;;  %v3021_v37 = vunpack.i.l.bf16 %v3020_v29 }
 0x1e1   :  { %2845 = vmatprep.mubr.msk.bf16.mxu1 %vm491_vm12, %v481_v31  ;;  %v1067_v29 = vsel %vm642_vm13, %v1057_v24, %v1058_v26 }
 0x1e2   :  { %v467_v54 = vsel %vm240_vm8, %v360_v50, %v3022_v36  ;;  %v466_v55 = vsel %vm240_vm8, %v370_v56, %v3021_v37  ;;  %v1122_v36 = vrot.slane %v3388_v5, 2  ;;  %v1123_v37 = vrot.slane %v3397_v9, 2 }
 0x1e3   :  { %v3025_v38 = vpop.permute.xlu1 %3024  ;;  %v3035_v39 = vpop.permute.xlu0 %3034  ;;  %v1119_v56 = vrot.slane %v3369_v1, 2 }
 0x1e4   :  { %v3027_v40 = vunpack.i.h.bf16 %v3025_v38  ;;  %v3026_v27 = vunpack.i.l.bf16 %v3025_v38  ;;  %v3037_v41 = vunpack.i.h.bf16 %v3035_v39  ;;  %v3036_v52 = vunpack.i.l.bf16 %v3035_v39 }
 0x1e5   :  { %v1120_v38 = vrot.slane %v3374_v2, 2  ;;  %v1121_v39 = vrot.slane %v3379_v3, 2 }
 0x1e6   :  { %v474_v57 = vsel %vm470_vm11, %v465_v51, %v3027_v40  ;;  %v473_v21 = vsel %vm470_vm11, %v464_v46, %v3026_v27  ;;  %v475_v44 = vsel %vm470_vm11, %v466_v55, %v3036_v52  ;;  %v476_v58 = vsel %vm470_vm11, %v467_v54, %v3037_v41 }
 0x1e7   :  { %v482_v59 = vpack.c.bf16 %v474_v57, %v473_v21  ;;  %v483_v49 = vpack.c.bf16 %v476_v58, %v475_v44  ;;  %v3030_v60 = vpop.permute.xlu1 %3029  ;;  %v1130_v40 = vsel %vm675_vm15, %v1122_v36, %v1123_v37  ;;  %v1133_v27 = vsel %vm675_vm15, %v1119_v56, %v1120_v38 }
 0x1e8   :  { %v3032_v45 = vunpack.i.h.bf16 %v3030_v60  ;;  %v3031_v18 = vunpack.i.l.bf16 %v3030_v60  ;;  %v1170_v41 = vsel %vm1154_vm0, 1.0, %v3343_v34  ;;  %v1132_v52 = vsel %vm675_vm15, %v1120_v38, %v1121_v39 }
 0x1e9   :  { %2846 = vmatmul.mubr.msk.bf16.vlgmr.msra.gmra.mrb[0].mxu1 %vm491_vm12, %v482_v59  ;;  %v1131_v46 = vsel %vm675_vm15, %v1121_v39, %v1122_v36  ;;  %v1178_v51 = vmul.f32 %v1170_v41, %v1130_v40  ;;  %v993_v54 = vrot.slane %v3388_v5, 4  ;;  %v3063_v55 = vpack.i.bf16 %v1132_v52, %v1133_v27 }
 0x1ea   :  { %2849 = vmatprep.mubr.msk.bf16.mxu1 %vm491_vm12, %v483_v49  ;;  %v469_v62 = vsel %vm240_vm8, %v358_v47, %v3032_v45  ;;  %v468_v7 = vsel %vm240_vm8, %v359_v35, %v3031_v18  ;;  %v1056_v47 = vrot.slane %v3374_v2, 6  ;;  %v1070_v35 = vsel %vm642_vm13, %v1062_v17, %v1055_v63 }
 0x1eb   :  { %v3040_v0 = vpop.permute.xlu1 %3039  ;;  %v1111_v20 = vmul.f32 %v1103_v19, %v1070_v35  ;;  %v991_v57 = vrot.slane %v3374_v2, 4  ;;  %v992_v21 = vrot.slane %v3379_v3, 4  ;;  %v3068_v44 = vpack.i.bf16 %v1178_v51, %v1131_v46 }
 0x1ec   :  { %v3042_v61 = vunpack.i.h.bf16 %v3040_v0  ;;  %v3041_v50 = vunpack.i.l.bf16 %v3040_v0  ;;  %v1069_v15 = vsel %vm642_vm13, %v1055_v63, %v1056_v47  ;;  %v1068_v31 = vsel %vm642_vm13, %v1056_v47, %v1057_v24  ;;  %v2737_v0 = vld [vmem:[%s4411_s1 + $0x20] ss:$0 sm:$0xff]  ;;  %v2743_v47 = vld [vmem:[%s4411_s1 + $0x30] ss:$0 sm:$0xff] }
 0x1ed   :  { %v3043_v28 = vpack.i.bf16 %v1069_v15, %v1111_v20  ;;  %v3048_v32 = vpack.i.bf16 %v1067_v29, %v1068_v31  ;;  %v3683_v58 = vsel %vm998_vm1, %v991_v57, %v992_v21  ;;  %v3705_v60 = vsel %vm998_vm1, %v992_v21, %v993_v54 }
 0x1ee   :  { %v478_v42 = vsel %vm470_vm11, %v469_v62, %v3042_v61  ;;  %v477_v8 = vsel %vm470_vm11, %v468_v7, %v3041_v50  ;;  %v2742_v7 = vld [vmem:[%s4411_s1 + $0x28] ss:$0 sm:$0xff] }
 0x1ef   :  { %v484_v12 = vpack.c.bf16 %v478_v42, %v477_v8  ;;  %3044 = vrot.lane.b32.xlu0 %v3043_v28, %s3341_s23  ;;  %3049 = vrot.lane.b32.xlu1 %v3048_v32, %s3341_s23 }
 0x1f1   :  { %2850 = vmatmul.mubr.msk.bf16.gmra.mrb[4].mxu1 %vm491_vm12, %v484_v12 }
 0x1f3   :  { %3054 = vrot.lane.b32.xlu0 %v3383_v4, %s3342_s26  ;;  %3059 = vrot.lane.b32.xlu1 %v3406_v11, %s3342_s26  ;;  %v1186_v4 = vadd.s32 4, %v3429_v22  ;;  %v990_v11 = vrot.slane %v3369_v1, 4  ;;  %v994_v22 = vrot.slane %v3397_v9, 4 }
 0x1f5   :  { %vm1202_vm2 = vcmp.lt.s32.totalorder %v1186_v4, 32  ;;  %v3689_v2 = vsel %vm998_vm1, %v990_v11, %v991_v57  ;;  %v3701_v49 = vsel %vm998_vm1, %v993_v54, %v994_v22  ;;  %v3726_v57 = vadd.s32 8, %v3390_v6 }
 0x1f6   :  { %v3692_v3 = vsel %vm1202_vm2, 1.0, %v3343_v34  ;;  %v3073_v59 = vpack.i.bf16 %v3683_v58, %v3689_v2 }
 0x1f7   :  { %3064 = vrot.lane.b32.xlu0 %v3063_v55, %s3345_s7  ;;  %3069 = vrot.lane.b32.xlu1 %v3068_v44, %s3345_s7  ;;  %v1226_v45 = vmul.f32 %v3692_v3, %v3701_v49 }
 0x1f9   :  { %v3078_v18 = vpack.i.bf16 %v1226_v45, %v3705_v60  ;;  %v746_v45 = vld [vmem:[%s4411_s1 + $0x40] sm:$0xff] }
 0x1fb   :  { %3074 = vrot.lane.b32.xlu0 %v3073_v59, %s3344_s6  ;;  %3079 = vrot.lane.b32.xlu1 %v3078_v18, %s3344_s6  ;;  %v745_v59 = vld [vmem:[%s4411_s1 + $0x38] sm:$0xff] }
 0x2bc   :  { %v2847_v61 = vpop.f32.mrb[0].mxu1 }
 0x2bd   :  { %v551_v50 = vadd.f32 %v2847_v61, %v2737_v0  ;;  %v542_v62 = vpop.f32.mrb[1].mxu1 }
 0x2be   :  { %v543_v42 = vadd.f32 %v2737_v0, %v542_v62  ;;  %v2848_v8 = vpop.f32.mrb[2].mxu1 }
 0x2bf   :  { %v575_v12 = vmax.f32 %v551_v50, 0.0  ;;  %v554_v16 = vadd.f32 %v2848_v8, %v2737_v0  ;;  %v545_v63 = vpop.f32.mrb[3].mxu1  ;;  %v750_v50 = vpack.c.bf16 %v746_v45, %v745_v59 }
 0x2c0   :  { %v573_v35 = vmax.f32 %v543_v42, 0.0  ;;  %v546_v19 = vadd.f32 %v2737_v0, %v545_v63 }
 0x2c1   :  { %v588_v20 = vmul.f32 %v2742_v7, %v575_v12  ;;  %v576_v24 = vmax.f32 %v554_v16, 0.0  ;;  %v635_v16 = vand.u32 15, %v3726_v57  ;;  %2853 = vmatprep.subr.bf16.mxu0 %v750_v50 }
 0x2c2   :  { %v586_v15 = vmul.f32 %v2742_v7, %v573_v35  ;;  %v574_v28 = vmax.f32 %v546_v19, 0.0  ;;  %2854 = vmatpush3.bf16.msra.mxu0 %v750_v50 }
 0x2c3   :  { %v601_v29 = vadd.f32 %v2743_v47, %v588_v20  ;;  %v589_v31 = vmul.f32 %v2742_v7, %v576_v24  ;;  %v1075_v24 = vadd.s32 4294967294, %v3491_v53 }
 0x2c4   :  { %v599_v32 = vadd.f32 %v2743_v47, %v586_v15  ;;  %v587_v33 = vmul.f32 %v2742_v7, %v574_v28  ;;  %v2851_v36 = vpop.f32.mrb[4].mxu1 }
 0x2c5   :  { %609 = vst.msk [vmem:[#allocation2 + $0x10] sm:$0xff] %vm470_vm11, %v601_v29  ;;  %v602_v38 = vadd.f32 %v2743_v47, %v589_v31  ;;  %v567_v39 = vadd.f32 %v2851_v36, %v2737_v0  ;;  %v558_v40 = vpop.f32.mrb[5].mxu1  ;;  %v747_v36 = vld [vmem:[%s4411_s1 + $0x48] sm:$0xff]  ;;  %vm1083_vm4 = vcmp.ge.s32.totalorder %v1075_v24, 0 }
 0x2c6   :  { %607 = vst.msk [vmem:[#allocation2] sm:$0xff] %vm470_vm11, %v599_v32  ;;  %v600_v27 = vadd.f32 %v2743_v47, %v587_v33  ;;  %v559_v41 = vadd.f32 %v2737_v0, %v558_v40  ;;  %v2852_v4 = vpop.f32.mrb[6].mxu1  ;;  %v681_v32 = vadd.s32 2, %v635_v16  ;;  %v751_v40 = vpack.c.bf16 %v747_v36, %v747_v36 }
 0x2c7   :  { %610 = vst.msk [vmem:[#allocation2 + $0x18] sm:$0xff] %vm470_vm11, %v602_v38  ;;  %v579_v52 = vmax.f32 %v567_v39, 0.0  ;;  %v570_v46 = vadd.f32 %v2852_v4, %v2737_v0  ;;  %v561_v51 = vpop.f32.mrb[7].mxu1  ;;  %v1126_v36 = vrot.slane %v3434_v23, 2 }
 0x2c8   :  { %608 = vst.msk [vmem:[#allocation2 + $0x8] sm:$0xff] %vm470_vm11, %v600_v27  ;;  %v577_v54 = vmax.f32 %v559_v41, 0.0  ;;  %v562_v55 = vadd.f32 %v2737_v0, %v561_v51  ;;  %v637_v0 = vand.u32 15, %v3418_v14  ;;  %v1061_v27 = vrot.slane %v3412_v13, 6  ;;  %2947 = vmatprep.subr.msk.bf16.mxu0 %vm764_vm3, %v751_v40  ;;  %v2111_v14 = vld [vmem:[%s4411_s1 + $0xe8] sm:$0xff] }
 0x2c9   :  { %v592_v21 = vmul.f32 %v2742_v7, %v579_v52  ;;  %v580_v44 = vmax.f32 %v570_v46, 0.0  ;;  %vm689_vm7 = vcmp.lt.s32.totalorder %v681_v32, 16  ;;  %v1060_v41 = vrot.slane %v3402_v10, 6 }
 0x2ca   :  { %v590_v18 = vmul.f32 %v2742_v7, %v577_v54  ;;  %v578_v61 = vmax.f32 %v562_v55, 0.0  ;;  %v766_v52 = vsel %vm764_vm3, %v751_v40, 0  ;;  %v1107_v51 = vsel %vm1083_vm4, 1.0, %v3343_v34 }
 0x2cb   :  { %v605_v62 = vadd.f32 %v2743_v47, %v592_v21  ;;  %v593_v42 = vmul.f32 %v2742_v7, %v580_v44  ;;  %2856 = vmatpush3.bf16.msra.mxu0 %v766_v52  ;;  %v1063_v5 = vsel %vm642_vm13, %v1061_v27, %v1062_v17  ;;  %v1383_v17 = vld [vmem:[%s4411_s1 + $0x88] sm:$0xff]  ;;  %v1190_v52 = vadd.s32 4, %v3451_v30 }
 0x2cc   :  { %v603_v8 = vadd.f32 %v2743_v47, %v590_v18  ;;  %v591_v12 = vmul.f32 %v2742_v7, %v578_v61  ;;  %v683_v7 = vadd.s32 2, %v637_v0  ;;  %v3772_v18 = vsel %vm689_vm7, 1.0, %v3343_v34 }
 0x2cd   :  { %613 = vst.msk [vmem:[#allocation2 + $0x30] sm:$0xff] %vm470_vm11, %v605_v62  ;;  %v606_v63 = vadd.f32 %v2743_v47, %v593_v42  ;;  %v1064_v61 = vsel %vm642_vm13, %v1060_v41, %v1061_v27  ;;  %vm1206_vm0 = vcmp.lt.s32.totalorder %v1190_v52, 32 }
 0x2ce   :  { %611 = vst.msk [vmem:[#allocation2 + $0x20] sm:$0xff] %vm470_vm11, %v603_v8  ;;  %v604_v35 = vadd.f32 %v2743_v47, %v591_v12  ;;  %v617_v19 = vld [vmem:[#allocation2 + $0x10] ss:$2 sm:$0xff]  ;;  %v625_v20 = vld [vmem:[#allocation2 + $0x11] ss:$2 sm:$0xff]  ;;  %v1059_v47 = vrot.slane %v3397_v9, 6 }
 0x2cf   :  { %614 = vst.msk [vmem:[#allocation2 + $0x38] sm:$0xff] %vm470_vm11, %v606_v63  ;;  %v615_v15 = vld [vmem:[#allocation2] ss:$2 sm:$0xff]  ;;  %v623_v28 = vld [vmem:[#allocation2 + $0x1] ss:$2 sm:$0xff]  ;;  %v3740_v29 = vmax.f32 %v617_v19, %v625_v20  ;;  %vm691_vm5 = vcmp.lt.s32.totalorder %v683_v7, 16 }
 0x2d0   :  { %612 = vst.msk [vmem:[#allocation2 + $0x28] sm:$0xff] %vm470_vm11, %v604_v35  ;;  %v630_v31 = vmax.f32 %v615_v15, %v623_v28  ;;  %v1066_v46 = vsel %vm642_vm13, %v1058_v26, %v1059_v47  ;;  %v3769_v45 = vsel %vm691_vm5, 1.0, %v3343_v34  ;;  %v1065_v50 = vsel %vm642_vm13, %v1059_v47, %v1060_v41  ;;  %v1384_v15 = vld [vmem:[%s4411_s1 + $0x90] sm:$0x3] }
 0x2d1   :  { %v639_v33 = vrot.slane %v3740_v29, 6  ;;  %v1115_v62 = vmul.f32 %v1107_v51, %v1066_v46  ;;  %v1142_v63 = vadd.s32 2, %v3451_v30  ;;  %v672_v20 = vrot.slane %v3740_v29, 2 }
 0x2d2   :  { %v3083_v38 = vpack.i.bf16 %v3740_v29, %v630_v31  ;;  %v638_v39 = vrot.slane %v630_v31, 6  ;;  %v671_v8 = vrot.slane %v630_v31, 2  ;;  %v1389_v31 = vpack.c.bf16 %v1384_v15, %v1383_v17 }
 0x2d3   :  { %vm1158_vm14 = vcmp.lt.s32.totalorder %v1142_v63, 32  ;;  %v3050_v63 = vpop.permute.xlu1 %3049  ;;  %v1007_v9 = vadd.s32 4294967292, %v3484_v48  ;;  %v634_v17 = vand.u32 15, %v3390_v6 }
 0x2d4   :  { %3084 = vrot.lane.b32.xlu0 %v3083_v38, %s3344_s6  ;;  %v3758_v4 = vsel %vm642_vm13, %v638_v39, %v639_v33  ;;  %2949 = vmatprep.subr.msk.bf16.mxu0 %vm1408_vm10, %v1389_v31  ;;  %v678_v41 = vsel %vm675_vm15, %v671_v8, %v672_v20  ;;  %v3815_v46 = vsel %vm1408_vm10, %v1389_v31, 0  ;;  %v1174_v30 = vsel %vm1158_vm14, 1.0, %v3343_v34 }
 0x2d5   :  { %vm1015_vm2 = vcmp.ge.s32.totalorder %v1007_v9, 0  ;;  %vm740_vm10 = vcmask 130048   ;;  %vm757_vm14 = vcmask 195584  }
 0x2d6   :  { %v621_v54 = vld [vmem:[#allocation2 + $0x30] ss:$2 sm:$0xff]  ;;  %v629_v55 = vld [vmem:[#allocation2 + $0x31] ss:$2 sm:$0xff] }
 0x2d7   :  { %v619_v21 = vld [vmem:[#allocation2 + $0x20] ss:$2 sm:$0xff]  ;;  %v627_v44 = vld [vmem:[#allocation2 + $0x21] ss:$2 sm:$0xff]  ;;  %v633_v59 = vmax.f32 %v621_v54, %v629_v55  ;;  %v3108_v54 = vpack.i.bf16 %v1063_v5, %v1064_v61  ;;  %v3103_v55 = vpack.i.bf16 %v1065_v50, %v1115_v62  ;;  %v996_v61 = vrot.slane %v3412_v13, 4 }
 0x2d8   :  { %v632_v26 = vmax.f32 %v619_v21, %v627_v44  ;;  %v1134_v21 = vsel %vm675_vm15, %v1126_v36, %v1119_v56  ;;  %v997_v44 = vrot.slane %v3434_v23, 4  ;;  %v3838_v23 = vsel %vm1206_vm0, 1.0, %v3343_v34 }
 0x2d9   :  { %v641_v42 = vrot.slane %v633_v59, 6  ;;  %v674_v12 = vrot.slane %v633_v59, 2  ;;  %v1182_v5 = vmul.f32 %v1174_v30, %v1134_v21  ;;  %vm1395_vm0 = vcmask 80896  }
 0x2da   :  { %v3088_v35 = vpack.i.bf16 %v633_v59, %v632_v26  ;;  %v673_v19 = vrot.slane %v632_v26, 2  ;;  %v640_v24 = vrot.slane %v632_v26, 6  ;;  %v1124_v59 = vrot.slane %v3402_v10, 2 }
 0x2db   :  { %v679_v28 = vsel %vm675_vm15, %v674_v12, %v671_v8  ;;  %v3794_v7 = vsel %vm642_vm13, %v641_v42, %v638_v39  ;;  %v1006_v56 = vsel %vm998_vm1, %v997_v44, %v990_v11  ;;  %v3854_v8 = vsel %vm998_vm1, %v996_v61, %v997_v44 }
 0x2dc   :  { %3089 = vrot.lane.b32.xlu1 %v3088_v35, %s3344_s6  ;;  %v676_v29 = vsel %vm675_vm15, %v673_v19, %v674_v12  ;;  %v703_v32 = vmul.f32 %v3769_v45, %v679_v28  ;;  %v677_v47 = vsel %vm675_vm15, %v672_v20, %v673_v19  ;;  %v3806_v39 = vsel %vm642_vm13, %v640_v24, %v641_v42 }
 0x2dd   :  { %v701_v38 = vmul.f32 %v3772_v18, %v677_v47  ;;  %v3810_v40 = vsel %vm642_vm13, %v639_v33, %v640_v24  ;;  %v1125_v33 = vrot.slane %v3412_v13, 2  ;;  %v1129_v62 = vsel %vm675_vm15, %v1123_v37, %v1124_v59  ;;  %v3045_v37 = vpop.permute.xlu0 %3044 }
 0x2de   :  { %v3093_v27 = vpack.i.bf16 %v703_v32, %v676_v29  ;;  %v995_v42 = vrot.slane %v3402_v10, 4  ;;  %v1230_v13 = vmul.f32 %v3838_v23, %v1006_v56  ;;  %v3875_v19 = vadd.s32 16, %v3390_v6 }
 0x2df   :  { %v3098_v51 = vpack.i.bf16 %v701_v38, %v678_v41  ;;  %v1127_v26 = vsel %vm675_vm15, %v1125_v33, %v1126_v36  ;;  %v1128_v50 = vsel %vm675_vm15, %v1124_v59, %v1125_v33  ;;  %v3878_v20 = vsel %vm1015_vm2, 1.0, %v3343_v34 }
 0x2e0   :  { %3094 = vrot.lane.b32.xlu1 %v3093_v27, %s3346_s25  ;;  %v3128_v1 = vpack.i.bf16 %v1182_v5, %v1127_v26  ;;  %v3123_v11 = vpack.i.bf16 %v1128_v50, %v1129_v62  ;;  %v3858_v12 = vsel %vm998_vm1, %v995_v42, %v996_v61  ;;  %v3864_v10 = vsel %vm998_vm1, %v994_v22, %v995_v42  ;;  %v3060_v22 = vpop.permute.xlu1 %3059 }
 0x2e1   :  { %3099 = vrot.lane.b32.xlu0 %v3098_v51, %s3346_s25  ;;  %v3055_v35 = vpop.permute.xlu0 %3054  ;;  %v636_v28 = vand.u32 15, %v3875_v19  ;;  %v1047_v31 = vmul.f32 %v3878_v20, %v1006_v56  ;;  %v3046_v29 = vunpack.i.l.bf16 %v3045_v37  ;;  %v3047_v48 = vunpack.i.h.bf16 %v3045_v37 }
 0x2e2   :  { %v647_v32 = vadd.s32 4294967294, %v634_v17  ;;  %v3056_v47 = vunpack.i.l.bf16 %v3055_v35  ;;  %v3051_v41 = vunpack.i.l.bf16 %v3050_v63  ;;  %v3057_v52 = vunpack.i.h.bf16 %v3055_v35 }
 0x2e3   :  { %v649_v38 = vadd.s32 4294967294, %v636_v28  ;;  %v1351_v27 = vsel %vm231_vm6, %v1047_v31, %v3046_v29  ;;  %v1011_v51 = vadd.s32 4294967292, %v3491_v53  ;;  %v3061_v44 = vunpack.i.l.bf16 %v3060_v22 }
 0x2e4   :  { %3109 = vrot.lane.b32.xlu1 %v3108_v54, %s3341_s23  ;;  %v3881_v15 = vpop.permute.xlu1 %3069  ;;  %v1352_v54 = vsel %vm231_vm6, %v3689_v2, %v3047_v48  ;;  %vm651_vm4 = vcmp.ge.s32.totalorder %v647_v32, 0  ;;  %v1359_v30 = vsel %vm240_vm8, %v1351_v27, %v3056_v47  ;;  %v1353_v5 = vsel %vm231_vm6, %v3683_v58, %v3051_v41 }
 0x2e5   :  { %3104 = vrot.lane.b32.xlu0 %v3103_v55, %s3341_s23  ;;  %v3065_v24 = vpop.permute.xlu0 %3064  ;;  %v3052_v55 = vunpack.i.h.bf16 %v3050_v63  ;;  %vm653_vm5 = vcmp.ge.s32.totalorder %v649_v38, 0  ;;  %v1360_v26 = vsel %vm240_vm8, %v1352_v54, %v3057_v52  ;;  %v3062_v61 = vunpack.i.h.bf16 %v3060_v22 }
 0x2e6   :  { %v3066_v21 = vunpack.i.l.bf16 %v3065_v24  ;;  %v3067_v59 = vunpack.i.h.bf16 %v3065_v24  ;;  %vm1019_vm7 = vcmp.ge.s32.totalorder %v1011_v51, 0  ;;  %v1361_v58 = vsel %vm240_vm8, %v1353_v5, %v3061_v44 }
 0x2e7   :  { %v1354_v53 = vsel %vm231_vm6, %v3705_v60, %v3052_v55  ;;  %v3072_v37 = vunpack.i.h.bf16 %v3881_v15  ;;  %v3071_v35 = vunpack.i.l.bf16 %v3881_v15  ;;  %vm2123_vm2 = vcmask 326656  }
 0x2e8   :  { %3119 = vrot.lane.b32.xlu1 %v3475_v43, %s3342_s26  ;;  %v3138_v43 = vpack.i.bf16 %v1230_v13, %v3854_v8  ;;  %v3893_v33 = vpop.permute.xlu1 %3079  ;;  %v1367_v62 = vsel %vm260_vm9, %v1359_v30, %v3066_v21  ;;  %v3906_v13 = vsel %vm653_vm5, 1.0, %v3343_v34  ;;  %v1362_v60 = vsel %vm240_vm8, %v1354_v53, %v3062_v61 }
 0x2e9   :  { %3114 = vrot.lane.b32.xlu0 %v3442_v25, %s3342_s26  ;;  %v3133_v25 = vpack.i.bf16 %v3858_v12, %v3864_v10  ;;  %v3075_v36 = vpop.permute.xlu0 %3074  ;;  %v669_v24 = vmul.f32 %v3906_v13, %v3810_v40  ;;  %v1369_v61 = vsel %vm260_vm9, %v1361_v58, %v3071_v35  ;;  %v3935_v53 = vsel %vm1019_vm7, 1.0, %v3343_v34 }
 0x2ea   :  { %v3076_v2 = vunpack.i.l.bf16 %v3075_v36  ;;  %v3077_v42 = vunpack.i.h.bf16 %v3075_v36  ;;  %v1051_v51 = vmul.f32 %v3935_v53, %v3701_v49  ;;  %vm2390_vm5 = vcmask 1040384  }
 0x2ec   :  { %3129 = vrot.lane.b32.xlu1 %v3128_v1, %s3345_s7  ;;  %v3903_v1 = vsel %vm651_vm4, 1.0, %v3343_v34  ;;  %v1375_v22 = vsel %vm470_vm11, %v1367_v62, %v3076_v2  ;;  %vm3350_vm4 = vmmov 0  }
 0x2ed   :  { %3124 = vrot.lane.b32.xlu0 %v3123_v11, %s3345_s7  ;;  %v1368_v11 = vsel %vm260_vm9, %v1360_v26, %v3067_v59  ;;  %v667_v48 = vmul.f32 %v3903_v1, %v3794_v7  ;;  %v3081_v59 = vunpack.i.l.bf16 %v3893_v33 }
 0x2ee   :  { %v1376_v29 = vsel %vm470_vm11, %v1368_v11, %v3077_v42 }
 0x2ef   :  { %v1385_v2 = vpack.c.bf16 %v1376_v29, %v1375_v22 }
 0x2f0   :  { %3139 = vrot.lane.b32.xlu1 %v3138_v43, %s3344_s6 }
 0x2f1   :  { %3134 = vrot.lane.b32.xlu0 %v3133_v25, %s3344_s6 }
 0x346   :  { %v3085_v56 = vpop.permute.xlu0 %3084 }
 0x347   :  { %v3087_v63 = vunpack.i.h.bf16 %v3085_v56  ;;  %v3086_v9 = vunpack.i.l.bf16 %v3085_v56 }
 0x349   :  { %v736_v52 = vsel %vm470_vm11, %v667_v48, %v3086_v9  ;;  %v737_v40 = vsel %vm470_vm11, %v3758_v4, %v3087_v63  ;;  %v1370_v4 = vsel %vm260_vm9, %v1362_v60, %v3072_v37 }
 0x34e   :  { %v3090_v50 = vpop.permute.xlu1 %3089 }
 0x34f   :  { %v3092_v43 = vunpack.i.h.bf16 %v3090_v50  ;;  %v3091_v25 = vunpack.i.l.bf16 %v3090_v50  ;;  %v1377_v50 = vsel %vm470_vm11, %v1369_v61, %v3081_v59  ;;  %v2744_v61 = vld [vmem:[%s4411_s1 + $0x50] ss:$0 sm:$0xff] }
 0x351   :  { %v738_v38 = vsel %vm470_vm11, %v669_v24, %v3091_v25  ;;  %v739_v15 = vsel %vm470_vm11, %v3806_v39, %v3092_v43  ;;  %v3082_v39 = vunpack.i.h.bf16 %v3893_v33 }
 0x352   :  { %v3095_v31 = vpop.permute.xlu1 %3094 }
 0x353   :  { %v3097_v32 = vunpack.i.h.bf16 %v3095_v31  ;;  %v3096_v47 = vunpack.i.l.bf16 %v3095_v31  ;;  %v3100_v36 = vpop.permute.xlu0 %3099  ;;  %v1378_v33 = vsel %vm470_vm11, %v1370_v4, %v3082_v39  ;;  %v885_v4 = vld [vmem:[%s4411_s1 + $0x58] sm:$0xff] }
 0x354   :  { %v3102_v27 = vunpack.i.h.bf16 %v3100_v36  ;;  %v3101_v41 = vunpack.i.l.bf16 %v3100_v36  ;;  %v1386_v25 = vpack.c.bf16 %v1378_v33, %v1377_v50 }
 0x355   :  { %v744_v54 = vsel %vm740_vm10, %v739_v15, %v3097_v32  ;;  %v743_v55 = vsel %vm740_vm10, %v738_v38, %v3096_v47 }
 0x356   :  { %v749_v7 = vpack.c.bf16 %v744_v54, %v743_v55  ;;  %v741_v21 = vsel %vm740_vm10, %v736_v52, %v3101_v41  ;;  %v742_v30 = vsel %vm740_vm10, %v737_v40, %v3102_v27  ;;  %v3110_v44 = vpop.permute.xlu1 %3109 }
 0x357   :  { %v748_v5 = vpack.c.bf16 %v742_v30, %v741_v21  ;;  %v3105_v26 = vpop.permute.xlu0 %3104  ;;  %v3112_v62 = vunpack.i.h.bf16 %v3110_v44  ;;  %v3111_v42 = vunpack.i.l.bf16 %v3110_v44 }
 0x358   :  { %v3107_v11 = vunpack.i.h.bf16 %v3105_v26  ;;  %v3106_v43 = vunpack.i.l.bf16 %v3105_v26 }
 0x359   :  { %2857 = vmatprep.mubr.msk.bf16.mxu0 %vm757_vm14, %v748_v5  ;;  %v1358_v9 = vsel %vm231_vm6, %v3854_v8, %v3112_v62  ;;  %v1357_v35 = vsel %vm231_vm6, %v3858_v12, %v3111_v42 }
 0x35a   :  { %v3120_v56 = vpop.permute.xlu1 %3119  ;;  %2858 = vmatmul.mubr.msk.bf16.vlgmr.msra.gmra.mrb[8].mxu0 %vm757_vm14, %v749_v7  ;;  %v1356_v31 = vsel %vm231_vm6, %v3864_v10, %v3107_v11  ;;  %v1355_v49 = vsel %vm231_vm6, %v1051_v51, %v3106_v43  ;;  %vm1800_vm6 = vcmask 1041408  }
 0x35b   :  { %v3115_v58 = vpop.permute.xlu0 %3114  ;;  %2870 = vmatpush3.bf16.msra.mxu0 %v3815_v46  ;;  %2871 = vmatprep.mubr.msk.bf16.mxu0 %vm1395_vm0, %v1385_v2  ;;  %v3122_v60 = vunpack.i.h.bf16 %v3120_v56  ;;  %v3121_v37 = vunpack.i.l.bf16 %v3120_v56  ;;  %v886_v2 = vld [vmem:[%s4411_s1 + $0x60] sm:$0xff] }
 0x35c   :  { %v3117_v22 = vunpack.i.h.bf16 %v3115_v58  ;;  %v3116_v24 = vunpack.i.l.bf16 %v3115_v58  ;;  %v890_v50 = vpack.c.bf16 %v886_v2, %v885_v4 }
 0x35d   :  { %v1365_v36 = vsel %vm240_vm8, %v1357_v35, %v3121_v37  ;;  %v1366_v38 = vsel %vm240_vm8, %v1358_v9, %v3122_v60  ;;  %v887_v9 = vld [vmem:[%s4411_s1 + $0x68] sm:$0xff] }
 0x35e   :  { %v3130_v63 = vpop.permute.xlu1 %3129  ;;  %v1363_v12 = vsel %vm240_vm8, %v1355_v49, %v3116_v24  ;;  %v1364_v15 = vsel %vm240_vm8, %v1356_v31, %v3117_v22  ;;  %2861 = vmatprep.subr.bf16.mxu1 %v890_v50  ;;  %v891_v31 = vpack.c.bf16 %v887_v9, %v887_v9 }
 0x35f   :  { %v3125_v46 = vpop.permute.xlu0 %3124  ;;  %v3132_v29 = vunpack.i.h.bf16 %v3130_v63  ;;  %v3131_v48 = vunpack.i.l.bf16 %v3130_v63  ;;  %2862 = vmatpush3.bf16.msra.mxu1 %v890_v50 }
 0x360   :  { %v3127_v32 = vunpack.i.h.bf16 %v3125_v46  ;;  %v3126_v47 = vunpack.i.l.bf16 %v3125_v46  ;;  %v2752_v46 = vld [vmem:[%s4411_s1 + $0x98] ss:$0 sm:$0xff]  ;;  %2948 = vmatprep.subr.msk.bf16.mxu1 %vm764_vm3, %v891_v31 }
 0x361   :  { %v1373_v52 = vsel %vm260_vm9, %v1365_v36, %v3131_v48  ;;  %v1374_v40 = vsel %vm260_vm9, %v1366_v38, %v3132_v29 }
 0x362   :  { %v3140_v8 = vpop.permute.xlu1 %3139  ;;  %2872 = vmatmul.mubr.msk.bf16.vlgmr.msra.gmra.mrb[12].mxu0 %vm1395_vm0, %v1386_v25  ;;  %v1371_v7 = vsel %vm260_vm9, %v1363_v12, %v3126_v47  ;;  %v1372_v21 = vsel %vm260_vm9, %v1364_v15, %v3127_v32  ;;  %v904_v12 = vsel %vm764_vm3, %v891_v31, 0  ;;  %vm1787_vm9 = vcmask 162816  }
 0x363   :  { %v3142_v27 = vunpack.i.h.bf16 %v3140_v8  ;;  %v3141_v41 = vunpack.i.l.bf16 %v3140_v8  ;;  %v3135_v10 = vpop.permute.xlu0 %3134  ;;  %2864 = vmatpush3.bf16.msra.mxu1 %v904_v12 }
 0x364   :  { %v3137_v54 = vunpack.i.h.bf16 %v3135_v10  ;;  %v3136_v55 = vunpack.i.l.bf16 %v3135_v10 }
 0x365   :  { %v1381_v30 = vsel %vm470_vm11, %v1373_v52, %v3141_v41  ;;  %v1382_v44 = vsel %vm470_vm11, %v1374_v40, %v3142_v27 }
 0x366   :  { %v1379_v39 = vsel %vm470_vm11, %v1371_v7, %v3136_v55  ;;  %v1380_v59 = vsel %vm470_vm11, %v1372_v21, %v3137_v54  ;;  %v1388_v26 = vpack.c.bf16 %v1382_v44, %v1381_v30 }
 0x367   :  { %v1387_v5 = vpack.c.bf16 %v1380_v59, %v1379_v39 }
 0x369   :  { %2875 = vmatprep.mubr.msk.bf16.mxu0 %vm1395_vm0, %v1387_v5 }
 0x36a   :  { %2876 = vmatmul.mubr.msk.bf16.gmra.mrb[16].mxu0 %vm1395_vm0, %v1388_v26 }
 0x42d   :  { %v2859_v56 = vpop.f32.mrb[8].mxu0 }
 0x42e   :  { %v811_v33 = vadd.f32 %v2859_v56, %v2744_v61  ;;  %v802_v62 = vpop.f32.mrb[9].mxu0 }
 0x42f   :  { %v803_v42 = vadd.f32 %v2744_v61, %v802_v62  ;;  %v2860_v58 = vpop.f32.mrb[10].mxu0 }
 0x430   :  { %v819_v51 = vmax.f32 %v811_v33, 0.0  ;;  %v814_v11 = vadd.f32 %v2860_v58, %v2744_v61  ;;  %v805_v43 = vpop.f32.mrb[11].mxu0 }
 0x431   :  { %v817_v25 = vmax.f32 %v803_v42, 0.0  ;;  %v806_v60 = vadd.f32 %v2744_v61, %v805_v43 }
 0x432   :  { %v823_v37 = vrot.slane %v819_v51, 6  ;;  %v820_v63 = vmax.f32 %v814_v11, 0.0  ;;  %v835_v49 = vrot.slane %v819_v51, 2 }
 0x433   :  { %v821_v35 = vrot.slane %v817_v25, 6  ;;  %v833_v22 = vrot.slane %v817_v25, 2  ;;  %v818_v24 = vmax.f32 %v806_v60, 0.0 }
 0x434   :  { %v824_v29 = vrot.slane %v820_v63, 6  ;;  %v836_v48 = vrot.slane %v820_v63, 2  ;;  %v3143_v32 = vpack.i.bf16 %v820_v63, %v819_v51 }
 0x435   :  { %v822_v47 = vrot.slane %v818_v24, 6  ;;  %v834_v36 = vrot.slane %v818_v24, 2  ;;  %v2873_v38 = vpop.f32.mrb[12].mxu0  ;;  %v3148_v8 = vpack.i.bf16 %v818_v24, %v817_v25 }
 0x436   :  { %v3986_v15 = vsel %vm642_vm13, %v824_v29, %v821_v35  ;;  %v1455_v27 = vadd.f32 %v2873_v38, %v2752_v46  ;;  %3144 = vrot.lane.b32.xlu1 %v3143_v32, %s3344_s6  ;;  %v1446_v41 = vpop.f32.mrb[13].mxu0  ;;  %v837_v10 = vsel %vm675_vm15, %v835_v49, %v836_v48  ;;  %v840_v52 = vsel %vm675_vm15, %v836_v48, %v833_v22 }
 0x437   :  { %v3995_v40 = vsel %vm642_vm13, %v822_v47, %v823_v37  ;;  %v1447_v54 = vadd.f32 %v2752_v46, %v1446_v41  ;;  %v2874_v55 = vpop.f32.mrb[14].mxu0  ;;  %3149 = vrot.lane.b32.xlu0 %v3148_v8, %s3344_s6  ;;  %v844_v7 = vmul.f32 %v840_v52, %v3769_v45  ;;  %v838_v21 = vsel %vm675_vm15, %v834_v36, %v835_v49 }
 0x438   :  { %v4001_v30 = vmax.f32 %v1455_v27, 0.0  ;;  %v1458_v44 = vadd.f32 %v2874_v55, %v2752_v46  ;;  %v1449_v39 = vpop.f32.mrb[15].mxu0  ;;  %v839_v59 = vsel %vm675_vm15, %v833_v22, %v834_v36  ;;  %v842_v5 = vmul.f32 %v838_v21, %v3772_v18  ;;  %v1774_v21 = vld [vmem:[%s4411_s1 + $0xa8] sm:$0xff] }
 0x439   :  { %v1450_v26 = vadd.f32 %v2752_v46, %v1449_v39  ;;  %v3153_v61 = vpack.i.bf16 %v844_v7, %v837_v10  ;;  %v4008_v4 = vsel %vm642_vm13, %v823_v37, %v824_v29  ;;  %v4012_v56 = vmax.f32 %v1447_v54, 0.0  ;;  %v1773_v7 = vld [vmem:[%s4411_s1 + $0xa0] sm:$0xff] }
 0x43a   :  { %v4010_v45 = vmax.f32 %v1458_v44, 0.0  ;;  %v3158_v2 = vpack.i.bf16 %v842_v5, %v839_v59  ;;  %v4019_v33 = vsel %vm642_vm13, %v821_v35, %v822_v47  ;;  %v1535_v18 = vrot.slane %v4001_v30, 4 }
 0x43b   :  { %v4014_v50 = vmax.f32 %v1450_v26, 0.0  ;;  %3154 = vrot.lane.b32.xlu1 %v3153_v61, %s3346_s25  ;;  %v1533_v31 = vrot.slane %v4012_v56, 4  ;;  %v1780_v59 = vpack.c.bf16 %v1774_v21, %v1773_v7 }
 0x43c   :  { %v1536_v62 = vrot.slane %v4010_v45, 4  ;;  %3159 = vrot.lane.b32.xlu0 %v3158_v2, %s3346_s25  ;;  %v3163_v42 = vpack.i.bf16 %v4010_v45, %v4001_v30 }
 0x43d   :  { %v1534_v58 = vrot.slane %v4014_v50, 4  ;;  %v2877_v51 = vpop.f32.mrb[16].mxu0  ;;  %v3168_v11 = vpack.i.bf16 %v4014_v50, %v4012_v56  ;;  %v3173_v32 = vpack.i.bf16 %v4001_v30, %v4014_v50  ;;  %2879 = vmatprep.subr.bf16.mxu1 %v1780_v59 }
 0x43e   :  { %v1462_v43 = vpop.f32.mrb[17].mxu0  ;;  %v1545_v25 = vsel %vm998_vm1, %v1535_v18, %v1536_v62  ;;  %v1471_v9 = vadd.f32 %v2877_v51, %v2752_v46 }
 0x43f   :  { %v1463_v60 = vadd.f32 %v2752_v46, %v1462_v43  ;;  %v2878_v37 = vpop.f32.mrb[18].mxu0  ;;  %3164 = vrot.lane.b32.xlu1 %v3163_v42, %s3344_s6  ;;  %v1546_v63 = vsel %vm998_vm1, %v1534_v58, %v1535_v18  ;;  %v1547_v8 = vsel %vm998_vm1, %v1533_v31, %v1534_v58  ;;  %v1612_v43 = vmul.f32 0.0, %v4012_v56 }
 0x440   :  { %v1474_v35 = vadd.f32 %v2878_v37, %v2752_v46  ;;  %v1465_v22 = vpop.f32.mrb[19].mxu0  ;;  %3169 = vrot.lane.b32.xlu0 %v3168_v11, %s3344_s6  ;;  %v3178_v24 = vpack.i.bf16 %v1545_v25, %v1546_v63  ;;  %v4049_v12 = vmax.f32 %v1471_v9, 0.0  ;;  %v3183_v52 = vpack.i.bf16 %v1546_v63, %v1547_v8 }
 0x441   :  { %v4036_v49 = vmax.f32 %v1463_v60, 0.0  ;;  %v1466_v29 = vadd.f32 %v2752_v46, %v1465_v22 }
 0x442   :  { %v4038_v48 = vmax.f32 %v1474_v35, 0.0 }
 0x443   :  { %v1537_v47 = vrot.slane %v4036_v49, 4  ;;  %v4043_v36 = vmax.f32 %v1466_v29, 0.0  ;;  %3179 = vrot.lane.b32.xlu1 %v3178_v24, %s3342_s26  ;;  %v1608_v38 = vmul.f32 0.0, %v4036_v49  ;;  %v831_v24 = vmul.f32 %v3995_v40, %v3906_v13 }
 0x444   :  { %v1540_v46 = vrot.slane %v4038_v48, 4  ;;  %3174 = vrot.lane.b32.xlu0 %v3173_v32, %s3346_s25  ;;  %v3218_v42 = vpack.i.bf16 %v4038_v48, %v4049_v12  ;;  %v829_v29 = vmul.f32 %v3986_v15, %v3903_v1  ;;  %v1775_v1 = vld [vmem:[%s4411_s1 + $0xb0] sm:$0xf] }
 0x445   :  { %v1538_v27 = vrot.slane %v4043_v36, 4  ;;  %v3188_v41 = vpack.i.bf16 %v1608_v38, %v4010_v45  ;;  %v1544_v10 = vsel %vm998_vm1, %v1536_v62, %v1537_v47  ;;  %v3213_v51 = vpack.i.bf16 %v4043_v36, %v4036_v49 }
 0x446   :  { %v1560_v54 = vmul.f32 %v1544_v10, %v3692_v3  ;;  %v1553_v55 = vmul.f32 %v1544_v10, %v3935_v53  ;;  %v1548_v39 = vsel %vm998_vm1, %v1540_v46, %v1533_v31  ;;  %v1539_v3 = vrot.slane %v4049_v12, 4 }
 0x447   :  { %3189 = vrot.lane.b32.xlu1 %v3188_v41, %s3346_s25  ;;  %v1543_v44 = vsel %vm998_vm1, %v1537_v47, %v1538_v27  ;;  %v1549_v2 = vmul.f32 %v1548_v39, %v3878_v20  ;;  %v1564_v58 = vmul.f32 %v1548_v39, %v3838_v23  ;;  %v3228_v60 = vpack.i.bf16 %v4049_v12, %v4043_v36 }
 0x448   :  { %3184 = vrot.lane.b32.xlu0 %v3183_v52, %s3347_s12  ;;  %v3193_v53 = vpack.i.bf16 %v1560_v54, %v1545_v25  ;;  %v3198_v5 = vpack.i.bf16 %v1543_v44, %v1553_v55  ;;  %v1541_v26 = vsel %vm998_vm1, %v1539_v3, %v1540_v46  ;;  %v1542_v61 = vsel %vm998_vm1, %v1538_v27, %v1539_v3 }
 0x449   :  { %v3203_v18 = vpack.i.bf16 %v1541_v26, %v1542_v61  ;;  %v3208_v62 = vpack.i.bf16 %v1547_v8, %v1549_v2  ;;  %v3233_v20 = vpack.i.bf16 %v1564_v58, %v1541_v26  ;;  %v3223_v11 = vpack.i.bf16 %v1542_v61, %v1543_v44 }
 0x44a   :  { %v3238_v25 = vpack.i.bf16 %v1612_v43, %v4038_v48  ;;  %v1781_v44 = vpack.c.bf16 %v1775_v1, %v1775_v1 }
 0x44b   :  { %3194 = vrot.lane.b32.xlu1 %v3193_v53, %s3347_s12 }
 0x44c   :  { %3199 = vrot.lane.b32.xlu0 %v3198_v5, %s3342_s26  ;;  %v1802_v3 = vsel %vm1800_vm6, %v1781_v44, 0 }
 0x44f   :  { %3204 = vrot.lane.b32.xlu1 %v3203_v18, %s3342_s26 }
 0x450   :  { %3209 = vrot.lane.b32.xlu0 %v3208_v62, %s3342_s26 }
 0x453   :  { %3219 = vrot.lane.b32.xlu1 %v3218_v42, %s3344_s6 }
 0x454   :  { %3214 = vrot.lane.b32.xlu0 %v3213_v51, %s3344_s6 }
 0x457   :  { %3234 = vrot.lane.b32.xlu1 %v3233_v20, %s3347_s12  ;;  %v1525_v20 = vmul.f32 0.0, %v4038_v48 }
 0x458   :  { %3224 = vrot.lane.b32.xlu0 %v3223_v11, %s3347_s12 }
 0x45b   :  { %3239 = vrot.lane.b32.xlu1 %v3238_v25, %s3346_s25 }
 0x45c   :  { %3229 = vrot.lane.b32.xlu0 %v3228_v60, %s3346_s25 }
 0x4a8   :  { %v3145_v23 = vpop.permute.xlu1 %3144 }
 0x4a9   :  { %v3150_v37 = vpop.permute.xlu0 %3149  ;;  %v3147_v63 = vunpack.i.h.bf16 %v3145_v23  ;;  %v3146_v9 = vunpack.i.l.bf16 %v3145_v23 }
 0x4aa   :  { %v3152_v35 = vunpack.i.h.bf16 %v3150_v37  ;;  %v3151_v22 = vunpack.i.l.bf16 %v3150_v37 }
 0x4ab   :  { %v879_v8 = vsel %vm470_vm11, %v831_v24, %v3146_v9  ;;  %v880_v46 = vsel %vm470_vm11, %v4008_v4, %v3147_v63 }
 0x4ac   :  { %v877_v10 = vsel %vm470_vm11, %v829_v29, %v3151_v22  ;;  %v878_v52 = vsel %vm470_vm11, %v4019_v33, %v3152_v35 }
 0x4ad   :  { %v3155_v31 = vpop.permute.xlu1 %3154 }
 0x4ae   :  { %v3157_v32 = vunpack.i.h.bf16 %v3155_v31  ;;  %v3156_v47 = vunpack.i.l.bf16 %v3155_v31  ;;  %v3160_v38 = vpop.permute.xlu0 %3159 }
 0x4af   :  { %v3162_v27 = vunpack.i.h.bf16 %v3160_v38  ;;  %v3161_v41 = vunpack.i.l.bf16 %v3160_v38 }
 0x4b0   :  { %v884_v13 = vsel %vm740_vm10, %v880_v46, %v3157_v32  ;;  %v883_v40 = vsel %vm740_vm10, %v879_v8, %v3156_v47 }
 0x4b1   :  { %v889_v15 = vpack.c.bf16 %v884_v13, %v883_v40  ;;  %v881_v54 = vsel %vm740_vm10, %v877_v10, %v3161_v41  ;;  %v882_v4 = vsel %vm740_vm10, %v878_v52, %v3162_v27  ;;  %v3165_v55 = vpop.permute.xlu1 %3164 }
 0x4b2   :  { %v888_v7 = vpack.c.bf16 %v882_v4, %v881_v54  ;;  %v3170_v21 = vpop.permute.xlu0 %3169  ;;  %v3166_v11 = vunpack.i.l.bf16 %v3165_v55 }
 0x4b3   :  { %v3172_v25 = vunpack.i.h.bf16 %v3170_v21  ;;  %v3171_v60 = vunpack.i.l.bf16 %v3170_v21 }
 0x4b4   :  { %2865 = vmatprep.mubr.msk.bf16.mxu1 %vm757_vm14, %v888_v7 }
 0x4b5   :  { %v3180_v33 = vpop.permute.xlu1 %3179  ;;  %2866 = vmatmul.mubr.msk.bf16.vlgmr.msra.gmra.mrb[8].mxu1 %vm757_vm14, %v889_v15 }
 0x4b6   :  { %v3175_v39 = vpop.permute.xlu0 %3174  ;;  %2880 = vmatpush3.bf16.msra.mxu1 %v1780_v59  ;;  %v3182_v26 = vunpack.i.h.bf16 %v3180_v33  ;;  %v3181_v61 = vunpack.i.l.bf16 %v3180_v33  ;;  %v3167_v59 = vunpack.i.h.bf16 %v3165_v55 }
 0x4b7   :  { %2950 = vmatprep.subr.msk.bf16.mxu1 %vm1800_vm6, %v1781_v44  ;;  %v3177_v23 = vunpack.i.h.bf16 %v3175_v39  ;;  %v3176_v8 = vunpack.i.l.bf16 %v3175_v39 }
 0x4b8   :  { %v1744_v62 = vsel %vm240_vm8, %v4001_v30, %v3182_v26  ;;  %v1743_v42 = vsel %vm240_vm8, %v4014_v50, %v3181_v61  ;;  %v1529_v26 = vmul.f32 0.0, %v4010_v45 }
 0x4b9   :  { %v3190_v53 = vpop.permute.xlu1 %3189  ;;  %v1751_v63 = vsel %vm470_vm11, %v1743_v42, %v3166_v11  ;;  %v1752_v9 = vsel %vm470_vm11, %v1744_v62, %v3167_v59 }
 0x4ba   :  { %v3185_v5 = vpop.permute.xlu0 %3184  ;;  %2882 = vmatpush3.bf16.msra.mxu1 %v1802_v3  ;;  %v3192_v22 = vunpack.i.h.bf16 %v3190_v53  ;;  %v3191_v50 = vunpack.i.l.bf16 %v3190_v53 }
 0x4bb   :  { %v3187_v31 = vunpack.i.h.bf16 %v3185_v5  ;;  %v3186_v29 = vunpack.i.l.bf16 %v3185_v5 }
 0x4bd   :  { %v3195_v2 = vpop.permute.xlu1 %3194 }
 0x4be   :  { %v3200_v18 = vpop.permute.xlu0 %3199  ;;  %v3197_v58 = vunpack.i.h.bf16 %v3195_v2  ;;  %v3196_v51 = vunpack.i.l.bf16 %v3195_v2 }
 0x4bf   :  { %v3202_v46 = vunpack.i.h.bf16 %v3200_v18  ;;  %v3201_v55 = vunpack.i.l.bf16 %v3200_v18 }
 0x4c0   :  { %v1759_v24 = vsel %vm491_vm12, %v1751_v63, %v3196_v51  ;;  %v1760_v48 = vsel %vm491_vm12, %v1752_v9, %v3197_v58 }
 0x4c1   :  { %v3205_v43 = vpop.permute.xlu1 %3204  ;;  %v1767_v52 = vsel %vm740_vm10, %v1759_v24, %v3191_v50  ;;  %v1768_v13 = vsel %vm740_vm10, %v1760_v48, %v3192_v22  ;;  %v1746_v51 = vsel %vm240_vm8, %v4036_v49, %v3202_v46 }
 0x4c2   :  { %v3210_v37 = vpop.permute.xlu0 %3209  ;;  %v3207_v15 = vunpack.i.h.bf16 %v3205_v43  ;;  %v1777_v39 = vpack.c.bf16 %v1768_v13, %v1767_v52  ;;  %v2751_v13 = vld [vmem:[%s4411_s1 + $0x80] ss:$0 sm:$0xff] }
 0x4c3   :  { %v3212_v30 = vunpack.i.h.bf16 %v3210_v37  ;;  %v3211_v35 = vunpack.i.l.bf16 %v3210_v37 }
 0x4c4   :  { %v1748_v62 = vsel %vm240_vm8, %v4049_v12, %v3207_v15 }
 0x4c5   :  { %v1742_v32 = vsel %vm240_vm8, %v4012_v56, %v3212_v30  ;;  %v1741_v47 = vsel %vm240_vm8, %v1525_v20, %v3211_v35  ;;  %v3220_v38 = vpop.permute.xlu1 %3219  ;;  %v3206_v56 = vunpack.i.l.bf16 %v3205_v43  ;;  %v1745_v20 = vsel %vm240_vm8, %v1529_v26, %v3201_v55 }
 0x4c6   :  { %v1749_v27 = vsel %vm470_vm11, %v1741_v47, %v3171_v60  ;;  %v1750_v41 = vsel %vm470_vm11, %v1742_v32, %v3172_v25  ;;  %v3215_v10 = vpop.permute.xlu0 %3214  ;;  %v3222_v7 = vunpack.i.h.bf16 %v3220_v38  ;;  %v3221_v21 = vunpack.i.l.bf16 %v3220_v38 }
 0x4c7   :  { %v1757_v40 = vsel %vm491_vm12, %v1749_v27, %v3186_v29  ;;  %v1758_v1 = vsel %vm491_vm12, %v1750_v41, %v3187_v31  ;;  %v3217_v3 = vunpack.i.h.bf16 %v3215_v10  ;;  %v3216_v53 = vunpack.i.l.bf16 %v3215_v10  ;;  %v2747_v29 = vld [vmem:[%s4411_s1 + $0x70] ss:$0 sm:$0xff] }
 0x4c8   :  { %v1765_v54 = vsel %vm740_vm10, %v1757_v40, %v3176_v8  ;;  %v1766_v4 = vsel %vm740_vm10, %v1758_v1, %v3177_v23  ;;  %v1747_v18 = vsel %vm240_vm8, %v4043_v36, %v3206_v56  ;;  %v1756_v59 = vsel %vm470_vm11, %v1748_v62, %v3222_v7  ;;  %v2750_v8 = vld [vmem:[%s4411_s1 + $0x78] ss:$0 sm:$0xff] }
 0x4c9   :  { %v3235_v44 = vpop.permute.xlu1 %3234  ;;  %v1776_v33 = vpack.c.bf16 %v1766_v4, %v1765_v54  ;;  %v1755_v45 = vsel %vm470_vm11, %v1747_v18, %v3221_v21  ;;  %v1753_v43 = vsel %vm470_vm11, %v1745_v20, %v3216_v53  ;;  %v1754_v12 = vsel %vm470_vm11, %v1746_v51, %v3217_v3  ;;  %v2757_v3 = vld [vmem:[%s4411_s1 + $0xb8] ss:$0 sm:$0xff]  ;;  %v2763_v51 = vld [vmem:[%s4411_s1 + $0xc8] ss:$0 sm:$0xff] }
 0x4ca   :  { %v3225_v5 = vpop.permute.xlu0 %3224  ;;  %v3237_v61 = vunpack.i.h.bf16 %v3235_v44  ;;  %v3236_v2 = vunpack.i.l.bf16 %v3235_v44 }
 0x4cb   :  { %2883 = vmatprep.mubr.msk.bf16.mxu1 %vm1787_vm9, %v1776_v33  ;;  %v3227_v42 = vunpack.i.h.bf16 %v3225_v5  ;;  %v3226_v58 = vunpack.i.l.bf16 %v3225_v5 }
 0x4cc   :  { %2884 = vmatmul.mubr.msk.bf16.vlgmr.msra.gmra.mrb[12].mxu1 %vm1787_vm9, %v1777_v39  ;;  %v1763_v23 = vsel %vm491_vm12, %v1755_v45, %v3236_v2  ;;  %v1764_v37 = vsel %vm491_vm12, %v1756_v59, %v3237_v61  ;;  %v2762_v61 = vld [vmem:[%s4411_s1 + $0xc0] ss:$0 sm:$0xff] }
 0x4cd   :  { %v3240_v11 = vpop.permute.xlu1 %3239  ;;  %v1761_v9 = vsel %vm491_vm12, %v1753_v43, %v3226_v58  ;;  %v1762_v30 = vsel %vm491_vm12, %v1754_v12, %v3227_v42 }
 0x4ce   :  { %v3242_v25 = vunpack.i.h.bf16 %v3240_v11  ;;  %v3241_v36 = vunpack.i.l.bf16 %v3240_v11  ;;  %v3230_v60 = vpop.permute.xlu0 %3229 }
 0x4cf   :  { %v3232_v63 = vunpack.i.h.bf16 %v3230_v60  ;;  %v3231_v49 = vunpack.i.l.bf16 %v3230_v60 }
 0x4d0   :  { %v1771_v35 = vsel %vm740_vm10, %v1763_v23, %v3241_v36  ;;  %v1772_v22 = vsel %vm740_vm10, %v1764_v37, %v3242_v25 }
 0x4d1   :  { %v1769_v50 = vsel %vm740_vm10, %v1761_v9, %v3231_v49  ;;  %v1770_v24 = vsel %vm740_vm10, %v1762_v30, %v3232_v63  ;;  %v1779_v31 = vpack.c.bf16 %v1772_v22, %v1771_v35 }
 0x4d2   :  { %v1778_v48 = vpack.c.bf16 %v1770_v24, %v1769_v50 }
 0x4d4   :  { %2887 = vmatprep.mubr.msk.bf16.mxu1 %vm1787_vm9, %v1778_v48 }
 0x4d5   :  { %2888 = vmatmul.mubr.msk.bf16.gmra.mrb[16].mxu1 %vm1787_vm9, %v1779_v31 }
 0x588   :  { %v2867_v32 = vpop.f32.mrb[8].mxu1 }
 0x589   :  { %v949_v47 = vadd.f32 %v2867_v32, %v2747_v29  ;;  %v940_v38 = vpop.f32.mrb[9].mxu1 }
 0x58a   :  { %v941_v46 = vadd.f32 %v2747_v29, %v940_v38  ;;  %v2868_v27 = vpop.f32.mrb[10].mxu1 }
 0x58b   :  { %v957_v41 = vmax.f32 %v949_v47, 0.0  ;;  %v952_v10 = vadd.f32 %v2868_v27, %v2747_v29  ;;  %v943_v52 = vpop.f32.mrb[11].mxu1 }
 0x58c   :  { %v955_v40 = vmax.f32 %v941_v46, 0.0  ;;  %v944_v1 = vadd.f32 %v2747_v29, %v943_v52 }
 0x58d   :  { %v966_v15 = vmul.f32 %v2750_v8, %v957_v41  ;;  %v958_v56 = vmax.f32 %v952_v10, 0.0 }
 0x58e   :  { %v964_v54 = vmul.f32 %v2750_v8, %v955_v40  ;;  %v956_v4 = vmax.f32 %v944_v1, 0.0 }
 0x58f   :  { %v975_v55 = vadd.f32 %v2751_v13, %v966_v15  ;;  %v967_v7 = vmul.f32 %v2750_v8, %v958_v56 }
 0x590   :  { %v973_v21 = vadd.f32 %v2751_v13, %v964_v54  ;;  %v965_v44 = vmul.f32 %v2750_v8, %v956_v4 }
 0x591   :  { %979 = vst.msk [vmem:[#allocation3 + $0x10] sm:$0xff] %vm740_vm10, %v975_v55  ;;  %v976_v33 = vadd.f32 %v2751_v13, %v967_v7  ;;  %v2108_v55 = vld [vmem:[%s4411_s1 + $0xd0] sm:$0xff]  ;;  %v2109_v7 = vld [vmem:[%s4411_s1 + $0xd8] sm:$0xff] }
 0x592   :  { %977 = vst.msk [vmem:[#allocation3] sm:$0xff] %vm740_vm10, %v973_v21  ;;  %v974_v39 = vadd.f32 %v2751_v13, %v965_v44  ;;  %v2115_v21 = vpack.c.bf16 %v2109_v7, %v2108_v55 }
 0x593   :  { %980 = vst.msk [vmem:[#allocation3 + $0x18] sm:$0xff] %vm740_vm10, %v976_v33  ;;  %v1982_v33 = vadd.s32 4, %v637_v0 }
 0x594   :  { %978 = vst.msk [vmem:[#allocation3 + $0x8] sm:$0xff] %vm740_vm10, %v974_v39  ;;  %v1955_v39 = vadd.s32 4294967292, %v634_v17  ;;  %2891 = vmatprep.subr.bf16.mxu0 %v2115_v21 }
 0x595   :  { %2892 = vmatpush3.bf16.msra.mxu0 %v2115_v21  ;;  %vm1990_vm8 = vcmp.lt.s32.totalorder %v1982_v33, 16 }
 0x596   :  { %vm1959_vm12 = vcmp.ge.s32.totalorder %v1955_v39, 0  ;;  %v1998_v57 = vsel %vm1990_vm8, 1.0, %v3343_v34 }
 0x59f   :  { %v2885_v53 = vpop.f32.mrb[12].mxu1 }
 0x5a0   :  { %v1847_v5 = vadd.f32 %v2885_v53, %v2757_v3  ;;  %v1838_v26 = vpop.f32.mrb[13].mxu1  ;;  %v1980_v53 = vadd.s32 4, %v635_v16 }
 0x5a1   :  { %v1839_v2 = vadd.f32 %v2757_v3, %v1838_v26  ;;  %v2886_v62 = vpop.f32.mrb[14].mxu1 }
 0x5a2   :  { %v1871_v18 = vmax.f32 %v1847_v5, 0.0  ;;  %v1850_v42 = vadd.f32 %v2886_v62, %v2757_v3  ;;  %v1841_v58 = vpop.f32.mrb[15].mxu1  ;;  %v2110_v5 = vld [vmem:[%s4411_s1 + $0xe0] sm:$0xff]  ;;  %vm1988_vm15 = vcmp.lt.s32.totalorder %v1980_v53, 16 }
 0x5a3   :  { %v1869_v20 = vmax.f32 %v1839_v2, 0.0  ;;  %v1842_v45 = vadd.f32 %v2757_v3, %v1841_v58  ;;  %v2116_v26 = vpack.c.bf16 %v2111_v14, %v2110_v5 }
 0x5a4   :  { %v1884_v59 = vmul.f32 %v2762_v61, %v1871_v18  ;;  %v1872_v11 = vmax.f32 %v1850_v42, 0.0  ;;  %v1971_v42 = vsel %vm1959_vm12, 1.0, %v3343_v34 }
 0x5a5   :  { %v1882_v43 = vmul.f32 %v2762_v61, %v1869_v20  ;;  %v1870_v12 = vmax.f32 %v1842_v45, 0.0  ;;  %2893 = vmatprep.subr.bf16.mxu0 %v2116_v26 }
 0x5a6   :  { %v1897_v25 = vadd.f32 %v2763_v51, %v1884_v59  ;;  %v1885_v36 = vmul.f32 %v2762_v61, %v1872_v11  ;;  %2894 = vmatpush3.bf16.msra.mxu0 %v2116_v26  ;;  %v1996_v59 = vsel %vm1988_vm15, 1.0, %v3343_v34 }
 0x5a7   :  { %v1895_v60 = vadd.f32 %v2763_v51, %v1882_v43  ;;  %v1883_v23 = vmul.f32 %v2762_v61, %v1870_v12 }
 0x5a8   :  { %1905 = vst.msk [vmem:[#allocation2 + $0x10] sm:$0xff] %vm470_vm11, %v1897_v25  ;;  %v1898_v37 = vadd.f32 %v2763_v51, %v1885_v36  ;;  %v2889_v63 = vpop.f32.mrb[16].mxu1 }
 0x5a9   :  { %1903 = vst.msk [vmem:[#allocation2] sm:$0xff] %vm470_vm11, %v1895_v60  ;;  %v1896_v49 = vadd.f32 %v2763_v51, %v1883_v23  ;;  %v1863_v9 = vadd.f32 %v2889_v63, %v2757_v3  ;;  %v1854_v30 = vpop.f32.mrb[17].mxu1 }
 0x5aa   :  { %1906 = vst.msk [vmem:[#allocation2 + $0x18] sm:$0xff] %vm470_vm11, %v1898_v37  ;;  %v1855_v35 = vadd.f32 %v2757_v3, %v1854_v30  ;;  %v2890_v22 = vpop.f32.mrb[18].mxu1 }
 0x5ab   :  { %1904 = vst.msk [vmem:[#allocation2 + $0x8] sm:$0xff] %vm470_vm11, %v1896_v49  ;;  %v1875_v50 = vmax.f32 %v1863_v9, 0.0  ;;  %v1866_v24 = vadd.f32 %v2890_v22, %v2757_v3  ;;  %v1857_v48 = vpop.f32.mrb[19].mxu1  ;;  %v2112_v49 = vld [vmem:[%s4411_s1 + $0xf0] sm:$0xff] }
 0x5ac   :  { %v1873_v31 = vmax.f32 %v1855_v35, 0.0  ;;  %v1858_v29 = vadd.f32 %v2757_v3, %v1857_v48  ;;  %v1957_v3 = vadd.s32 4294967292, %v636_v28  ;;  %v2117_v9 = vpack.c.bf16 %v2112_v49, %v2112_v49 }
 0x5ad   :  { %v1888_v32 = vmul.f32 %v2762_v61, %v1875_v50  ;;  %v1876_v47 = vmax.f32 %v1866_v24, 0.0 }
 0x5ae   :  { %v1886_v38 = vmul.f32 %v2762_v61, %v1873_v31  ;;  %v1874_v8 = vmax.f32 %v1858_v29, 0.0  ;;  %vm1961_vm13 = vcmp.ge.s32.totalorder %v1957_v3, 0  ;;  %2951 = vmatprep.subr.msk.bf16.mxu0 %vm764_vm3, %v2117_v9  ;;  %v2131_v50 = vsel %vm764_vm3, %v2117_v9, 0 }
 0x5af   :  { %v1901_v46 = vadd.f32 %v2763_v51, %v1888_v32  ;;  %v1889_v27 = vmul.f32 %v2762_v61, %v1876_v47  ;;  %v1973_v45 = vsel %vm1961_vm13, 1.0, %v3343_v34  ;;  %2896 = vmatpush3.bf16.msra.mxu0 %v2131_v50  ;;  %v2260_v50 = vld [vmem:[%s4411_s1 + $0x110] sm:$0xff] }
 0x5b0   :  { %v1899_v41 = vadd.f32 %v2763_v51, %v1886_v38  ;;  %v1887_v10 = vmul.f32 %v2762_v61, %v1874_v8  ;;  %2911 = vmatprep.subr.bf16.mxu0 %v3343_v34 }
 0x5b1   :  { %1909 = vst.msk [vmem:[#allocation2 + $0x30] sm:$0xff] %vm470_vm11, %v1901_v46  ;;  %v1902_v52 = vadd.f32 %v2763_v51, %v1889_v27  ;;  %v1912_v13 = vld [vmem:[#allocation2 + $0x10] ss:$2 sm:$0xff]  ;;  %v1916_v40 = vld [vmem:[#allocation2 + $0x11] ss:$2 sm:$0xff] }
 0x5b2   :  { %1907 = vst.msk [vmem:[#allocation2 + $0x20] sm:$0xff] %vm470_vm11, %v1899_v41  ;;  %v1900_v1 = vadd.f32 %v2763_v51, %v1887_v10  ;;  %v1911_v15 = vld [vmem:[#allocation2] ss:$2 sm:$0xff]  ;;  %v1915_v56 = vld [vmem:[#allocation2 + $0x1] ss:$2 sm:$0xff]  ;;  %v4183_v54 = vmax.f32 %v1912_v13, %v1916_v40 }
 0x5b3   :  { %1910 = vst.msk [vmem:[#allocation2 + $0x38] sm:$0xff] %vm470_vm11, %v1902_v52  ;;  %v4186_v4 = vmax.f32 %v1911_v15, %v1915_v56 }
 0x5b4   :  { %1908 = vst.msk [vmem:[#allocation2 + $0x28] sm:$0xff] %vm470_vm11, %v1900_v1  ;;  %v1948_v18 = vrot.slane %v4183_v54, 4  ;;  %v1945_v41 = vmul.f32 0.0, %v4183_v54 }
 0x5b5   :  { %v3243_v44 = vpack.i.bf16 %v4183_v54, %v4186_v4  ;;  %v1947_v16 = vrot.slane %v4186_v4, 4  ;;  %v2026_v24 = vmul.f32 0.0, %v4186_v4 }
 0x5b7   :  { %3244 = vrot.lane.b32.xlu0 %v3243_v44, %s3346_s25  ;;  %v1953_v36 = vsel %vm998_vm1, %v1947_v16, %v1948_v18 }
 0x5ba   :  { %v1914_v0 = vld [vmem:[#allocation2 + $0x30] ss:$2 sm:$0xff]  ;;  %v1918_v17 = vld [vmem:[#allocation2 + $0x31] ss:$2 sm:$0xff] }
 0x5bb   :  { %v1913_v61 = vld [vmem:[#allocation2 + $0x20] ss:$2 sm:$0xff]  ;;  %v1917_v2 = vld [vmem:[#allocation2 + $0x21] ss:$2 sm:$0xff]  ;;  %v1922_v19 = vmax.f32 %v1914_v0, %v1918_v17 }
 0x5bc   :  { %v4212_v28 = vmax.f32 %v1913_v61, %v1917_v2 }
 0x5bd   :  { %v1950_v62 = vrot.slane %v1922_v19, 4  ;;  %v3278_v48 = vpack.i.bf16 %v2026_v24, %v1922_v19  ;;  %v1943_v27 = vmul.f32 0.0, %v1922_v19  ;;  %v2261_v24 = vld [vmem:[%s4411_s1 + $0x118] sm:$0xff] }
 0x5be   :  { %v3248_v58 = vpack.i.bf16 %v1922_v19, %v4212_v28  ;;  %v1949_v51 = vrot.slane %v4212_v28, 4  ;;  %v2024_v22 = vmul.f32 0.0, %v4212_v28 }
 0x5bf   :  { %v1954_v20 = vsel %vm998_vm1, %v1950_v62, %v1947_v16 }
 0x5c0   :  { %3249 = vrot.lane.b32.xlu1 %v3248_v58, %s3346_s25  ;;  %v1951_v11 = vsel %vm998_vm1, %v1949_v51, %v1950_v62  ;;  %v2002_v43 = vmul.f32 %v1998_v57, %v1954_v20  ;;  %v1975_v12 = vmul.f32 %v1971_v42, %v1954_v20  ;;  %v1952_v25 = vsel %vm998_vm1, %v1948_v18, %v1949_v51 }
 0x5c1   :  { %v1977_v37 = vmul.f32 %v1973_v45, %v1952_v25  ;;  %v2000_v63 = vmul.f32 %v1996_v59, %v1952_v25  ;;  %v3273_v31 = vpack.i.bf16 %v2024_v22, %v4183_v54  ;;  %vm2103_vm1 = vcmask 261120   ;;  %v2764_v25 = vld [vmem:[%s4411_s1 + $0xf8] ss:$0 sm:$0xff] }
 0x5c2   :  { %v3258_v60 = vpack.i.bf16 %v2002_v43, %v1951_v11  ;;  %v3253_v23 = vpack.i.bf16 %v1953_v36, %v1975_v12  ;;  %v2259_v43 = vld [vmem:[%s4411_s1 + $0x108] sm:$0xff] }
 0x5c3   :  { %v3263_v30 = vpack.i.bf16 %v1951_v11, %v1977_v37  ;;  %v3268_v35 = vpack.i.bf16 %v2000_v63, %v1953_v36  ;;  %v2258_v11 = vld [vmem:[%s4411_s1 + $0x100] sm:$0xff] }
 0x5c4   :  { %3259 = vrot.lane.b32.xlu1 %v3258_v60, %s3348_s10  ;;  %3254 = vrot.lane.b32.xlu0 %v3253_v23, %s3344_s6  ;;  %v2265_v12 = vpack.c.bf16 %v2259_v43, %v2258_v11 }
 0x5c6   :  { %2901 = vmatprep.subr.bf16.mxu1 %v2265_v12 }
 0x5c7   :  { %2902 = vmatpush3.bf16.msra.mxu1 %v2265_v12 }
 0x5c8   :  { %3264 = vrot.lane.b32.xlu1 %v3263_v30, %s3344_s6  ;;  %3269 = vrot.lane.b32.xlu0 %v3268_v35, %s3348_s10 }
 0x5cc   :  { %3279 = vrot.lane.b32.xlu1 %v3278_v48, %s3349_s11  ;;  %3274 = vrot.lane.b32.xlu0 %v3273_v31, %s3349_s11 }
 0x629   :  { %v3245_v29 = vpop.permute.xlu0 %3244 }
 0x62a   :  { %v3247_v3 = vunpack.i.h.bf16 %v3245_v29  ;;  %v3246_v53 = vunpack.i.l.bf16 %v3245_v29  ;;  %v2266_v29 = vpack.c.bf16 %v2261_v24, %v2260_v50 }
 0x62c   :  { %2903 = vmatprep.subr.bf16.mxu1 %v2266_v29 }
 0x62d   :  { %2904 = vmatpush3.bf16.msra.mxu1 %v2266_v29 }
 0x632   :  { %v3250_v32 = vpop.permute.xlu1 %3249 }
 0x633   :  { %v3252_v13 = vunpack.i.h.bf16 %v3250_v32  ;;  %v3251_v40 = vunpack.i.l.bf16 %v3250_v32 }
 0x636   :  { %v3260_v47 = vpop.permute.xlu1 %3259  ;;  %v3255_v38 = vpop.permute.xlu0 %3254 }
 0x637   :  { %v3257_v8 = vunpack.i.h.bf16 %v3255_v38  ;;  %v3256_v46 = vunpack.i.l.bf16 %v3255_v38  ;;  %v3262_v56 = vunpack.i.h.bf16 %v3260_v47  ;;  %v3261_v55 = vunpack.i.l.bf16 %v3260_v47 }
 0x639   :  { %v2092_v7 = vsel %vm470_vm11, %v4186_v4, %v3257_v8  ;;  %v2091_v21 = vsel %vm470_vm11, %v1943_v27, %v3256_v46 }
 0x63a   :  { %v3265_v10 = vpop.permute.xlu1 %3264  ;;  %v3270_v52 = vpop.permute.xlu0 %3269  ;;  %v2095_v19 = vsel %vm740_vm10, %v2091_v21, %v3246_v53 }
 0x63b   :  { %v3267_v1 = vunpack.i.h.bf16 %v3265_v10  ;;  %v3266_v15 = vunpack.i.l.bf16 %v3265_v10  ;;  %v3272_v54 = vunpack.i.h.bf16 %v3270_v52  ;;  %v3271_v39 = vunpack.i.l.bf16 %v3270_v52  ;;  %v2262_v52 = vld [vmem:[%s4411_s1 + $0x120] sm:$0xff] }
 0x63d   :  { %v2094_v44 = vsel %vm470_vm11, %v4212_v28, %v3267_v1  ;;  %v2093_v33 = vsel %vm470_vm11, %v1945_v41, %v3266_v15  ;;  %v2096_v28 = vsel %vm740_vm10, %v2092_v7, %v3247_v3  ;;  %v2099_v62 = vsel %vm757_vm14, %v2095_v19, %v3271_v39 }
 0x63e   :  { %v2098_v5 = vsel %vm740_vm10, %v2094_v44, %v3252_v13  ;;  %v2097_v14 = vsel %vm740_vm10, %v2093_v33, %v3251_v40  ;;  %v3280_v0 = vpop.permute.xlu1 %3279  ;;  %v3275_v17 = vpop.permute.xlu0 %3274  ;;  %v2100_v18 = vsel %vm757_vm14, %v2096_v28, %v3272_v54  ;;  %v2267_v40 = vpack.c.bf16 %v2262_v52, %v2262_v52 }
 0x63f   :  { %v3282_v26 = vunpack.i.h.bf16 %v3280_v0  ;;  %v3281_v61 = vunpack.i.l.bf16 %v3280_v0  ;;  %v2101_v4 = vsel %vm757_vm14, %v2097_v14, %v3261_v55  ;;  %v2102_v2 = vsel %vm757_vm14, %v2098_v5, %v3262_v56 }
 0x640   :  { %v3277_v57 = vunpack.i.h.bf16 %v3275_v17  ;;  %v3276_v16 = vunpack.i.l.bf16 %v3275_v17  ;;  %2952 = vmatprep.subr.msk.bf16.mxu1 %vm764_vm3, %v2267_v40  ;;  %v2280_v15 = vsel %vm764_vm3, %v2267_v40, 0  ;;  %v981_v40 = vld [vmem:[#allocation3] ss:$2 sm:$0xff] }
 0x641   :  { %v2106_v42 = vsel %vm2103_vm1, %v2101_v4, %v3281_v61  ;;  %v2107_v58 = vsel %vm2103_vm1, %v2102_v2, %v3282_v26  ;;  %2906 = vmatpush3.bf16.msra.mxu1 %v2280_v15 }
 0x642   :  { %v2114_v51 = vpack.c.bf16 %v2107_v58, %v2106_v42  ;;  %v2104_v20 = vsel %vm2103_vm1, %v2099_v62, %v3276_v16  ;;  %v2105_v45 = vsel %vm2103_vm1, %v2100_v18, %v3277_v57  ;;  %2919 = vmatprep.subr.bf16.mxu1 %v3343_v34 }
 0x643   :  { %v2113_v59 = vpack.c.bf16 %v2105_v45, %v2104_v20 }
 0x645   :  { %2897 = vmatprep.mubr.msk.bf16.mxu0 %vm2123_vm2, %v2113_v59 }
 0x646   :  { %2898 = vmatmul.mubr.msk.bf16.vlgmr.msra.gmra.mrb[20].mxu0 %vm2123_vm2, %v2114_v51 }
 0x647   :  { %2915 = vmatprep.mubr.msk.bf16.mxu0 %vm3350_vm4, %v3343_v34 }
 0x719   :  { %v2899_v36 = vpop.f32.mrb[20].mxu0 }
 0x71a   :  { %v2176_v60 = vadd.f32 %v2899_v36, %v2764_v25  ;;  %v2167_v23 = vpop.f32.mrb[21].mxu0 }
 0x71b   :  { %v2168_v37 = vadd.f32 %v2764_v25, %v2167_v23  ;;  %v2900_v63 = vpop.f32.mrb[22].mxu0  ;;  %v2767_v23 = vld [vmem:[%s4411_s1 + $0x128] ss:$0 sm:$0xff] }
 0x71c   :  { %v2184_v49 = vmax.f32 %v2176_v60, 0.0  ;;  %v2179_v9 = vadd.f32 %v2900_v63, %v2764_v25  ;;  %v2170_v30 = vpop.f32.mrb[23].mxu0 }
 0x71d   :  { %v2182_v35 = vmax.f32 %v2168_v37, 0.0  ;;  %v2171_v22 = vadd.f32 %v2764_v25, %v2170_v30 }
 0x71e   :  { %v2191_v48 = vmul.f32 0.0, %v2184_v49  ;;  %v2185_v31 = vmax.f32 %v2179_v9, 0.0  ;;  %v2770_v9 = vld [vmem:[%s4411_s1 + $0x130] ss:$0 sm:$0xff] }
 0x71f   :  { %v2193_v32 = vmul.f32 0.0, %v2182_v35  ;;  %v2183_v47 = vmax.f32 %v2171_v22, 0.0 }
 0x720   :  { %v2186_v38 = vmul.f32 0.0, %v2185_v31  ;;  %v3283_v8 = vpack.i.bf16 %v2185_v31, %v2184_v49 }
 0x721   :  { %v2188_v46 = vmul.f32 0.0, %v2183_v47  ;;  %v3288_v27 = vpack.i.bf16 %v2183_v47, %v2182_v35  ;;  %v3308_v41 = vpack.i.bf16 %v2193_v32, %v2185_v31  ;;  %v3298_v10 = vpack.i.bf16 %v2191_v48, %v2183_v47  ;;  %v2771_v48 = vld [vmem:[%s4411_s1 + $0x138] ss:$0 sm:$0xff] }
 0x722   :  { %3284 = vrot.lane.b32.xlu1 %v3283_v8, %s3346_s25  ;;  %v3293_v13 = vpack.i.bf16 %v2182_v35, %v2186_v38 }
 0x723   :  { %3289 = vrot.lane.b32.xlu0 %v3288_v27, %s3346_s25  ;;  %v3303_v1 = vpack.i.bf16 %v2184_v49, %v2188_v46 }
 0x726   :  { %3304 = vrot.lane.b32.xlu1 %v3303_v1, %s3344_s6  ;;  %v985_v1 = vld [vmem:[#allocation3 + $0x1] ss:$2 sm:$0xff] }
 0x727   :  { %3294 = vrot.lane.b32.xlu0 %v3293_v13, %s3344_s6 }
 0x72a   :  { %3309 = vrot.lane.b32.xlu1 %v3308_v41, %s3348_s10  ;;  %v983_v41 = vld [vmem:[#allocation3 + $0x10] ss:$2 sm:$0xff] }
 0x72b   :  { %3299 = vrot.lane.b32.xlu0 %v3298_v10, %s3348_s10  ;;  %v987_v10 = vld [vmem:[#allocation3 + $0x11] ss:$2 sm:$0xff] }
 0x794   :  { %v3285_v56 = vpop.permute.xlu1 %3284 }
 0x795   :  { %v3290_v55 = vpop.permute.xlu0 %3289  ;;  %v3287_v5 = vunpack.i.h.bf16 %v3285_v56  ;;  %v3286_v14 = vunpack.i.l.bf16 %v3285_v56 }
 0x796   :  { %v3292_v61 = vunpack.i.h.bf16 %v3290_v55  ;;  %v3291_v4 = vunpack.i.l.bf16 %v3290_v55 }
 0x798   :  { %v3305_v7 = vpop.permute.xlu1 %3304 }
 0x799   :  { %v3307_v21 = vunpack.i.h.bf16 %v3305_v7  ;;  %v3306_v44 = vunpack.i.l.bf16 %v3305_v7  ;;  %v3295_v33 = vpop.permute.xlu0 %3294 }
 0x79a   :  { %v3297_v54 = vunpack.i.h.bf16 %v3295_v33  ;;  %v3296_v39 = vunpack.i.l.bf16 %v3295_v33 }
 0x79b   :  { %v2245_v3 = vsel %vm470_vm11, 0.0, %v3307_v21  ;;  %v2244_v53 = vsel %vm470_vm11, 0.0, %v3306_v44 }
 0x79c   :  { %v2243_v0 = vsel %vm470_vm11, 0.0, %v3297_v54  ;;  %v2242_v17 = vsel %vm470_vm11, 0.0, %v3296_v39  ;;  %v3310_v26 = vpop.permute.xlu1 %3309  ;;  %v2249_v57 = vsel %vm740_vm10, %v2245_v3, %v3287_v5  ;;  %v2248_v16 = vsel %vm740_vm10, %v2244_v53, %v3286_v14  ;;  %v2392_v39 = vld [vmem:[%s4411_s1 + $0x140] sm:$0xff]  ;;  %v2393_v3 = vld [vmem:[%s4411_s1 + $0x148] sm:$0xff]  ;;  %v2394_v5 = vld [vmem:[%s4411_s1 + $0x150] sm:$0xff] }
 0x79d   :  { %v3312_v2 = vunpack.i.h.bf16 %v3310_v26  ;;  %v3311_v19 = vunpack.i.l.bf16 %v3310_v26  ;;  %v3300_v28 = vpop.permute.xlu0 %3299  ;;  %v2246_v42 = vsel %vm740_vm10, %v2242_v17, %v3291_v4  ;;  %v2247_v58 = vsel %vm740_vm10, %v2243_v0, %v3292_v61  ;;  %v2395_v14 = vld [vmem:[%s4411_s1 + $0x158] sm:$0xff]  ;;  %v2448_v17 = vld [vmem:[%s4411_s1 + $0x168] sm:$0xff] }
 0x79e   :  { %v3302_v62 = vunpack.i.h.bf16 %v3300_v28  ;;  %v3301_v18 = vunpack.i.l.bf16 %v3300_v28  ;;  %v2397_v53 = vpack.c.bf16 %v2393_v3, %v2392_v39  ;;  %v2398_v0 = vpack.c.bf16 %v2395_v14, %v2394_v5  ;;  %v2595_v5 = vld [vmem:[%s4411_s1 + $0x1a0] sm:$0xff]  ;;  %v2596_v14 = vld [vmem:[%s4411_s1 + $0x1a8] sm:$0xff] }
 0x79f   :  { %v2253_v51 = vsel %vm757_vm14, %v2249_v57, %v3312_v2  ;;  %v2252_v20 = vsel %vm757_vm14, %v2248_v16, %v3311_v19  ;;  %v2450_v26 = vpack.c.bf16 %v2448_v17, %v2448_v17  ;;  %v989_v4 = vmax.f32 %v983_v41, %v987_v10 }
 0x7a0   :  { %v2257_v45 = vsel %vm2103_vm1, %v2253_v51, 0.0  ;;  %v2256_v59 = vsel %vm2103_vm1, %v2252_v20, 0.0  ;;  %v2250_v11 = vsel %vm757_vm14, %v2246_v42, %v3301_v18  ;;  %v2251_v43 = vsel %vm757_vm14, %v2247_v58, %v3302_v62  ;;  %2912 = vmatpush3.bf16.msra.mxu0 %v2397_v53 }
 0x7a1   :  { %v2254_v12 = vsel %vm2103_vm1, %v2250_v11, 0.0  ;;  %v2255_v25 = vsel %vm2103_vm1, %v2251_v43, 0.0  ;;  %v2264_v60 = vpack.c.bf16 %v2257_v45, %v2256_v59  ;;  %2913 = vmatprep.subr.bf16.mxu0 %v3343_v34  ;;  %v2460_v61 = vsel %vm764_vm3, %v2450_v26, 0 }
 0x7a2   :  { %v2263_v36 = vpack.c.bf16 %v2255_v25, %v2254_v12  ;;  %v988_v19 = vmax.f32 %v981_v40, %v985_v1 }
 0x7a4   :  { %2907 = vmatprep.mubr.msk.bf16.mxu1 %vm2123_vm2, %v2263_v36  ;;  %2914 = vmatpush3.bf16.msra.mxu0 %v2398_v0  ;;  %v2776_v0 = vld [vmem:[%s4411_s1 + $0x198] ss:$0 sm:$0xff] }
 0x7a5   :  { %2908 = vmatmul.mubr.msk.bf16.vlgmr.msra.gmra.mrb[20].mxu1 %vm2123_vm2, %v2264_v60  ;;  %2925 = vmatprep.subr.bf16.mxu0 %v3343_v34 }
 0x7a6   :  { %2921 = vmatprep.mubr.msk.bf16.mxu1 %vm3350_vm4, %v3343_v34  ;;  %2920 = vmatpush3.bf16.msra.mxu1 %v2460_v61 }
 0x7a7   :  { %2933 = vmatprep.subr.bf16.mxu1 %v3343_v34 }
 0x878   :  { %v2909_v37 = vpop.f32.mrb[20].mxu1 }
 0x879   :  { %v2325_v63 = vadd.f32 %v2909_v37, %v2767_v23  ;;  %v2316_v49 = vpop.f32.mrb[21].mxu1 }
 0x87a   :  { %v2317_v30 = vadd.f32 %v2767_v23, %v2316_v49  ;;  %v2910_v35 = vpop.f32.mrb[22].mxu1 }
 0x87b   :  { %v2333_v22 = vmax.f32 %v2325_v63, 0.0  ;;  %v2328_v50 = vadd.f32 %v2910_v35, %v2767_v23  ;;  %v2319_v24 = vpop.f32.mrb[23].mxu1 }
 0x87c   :  { %v2331_v31 = vmax.f32 %v2317_v30, 0.0  ;;  %v2320_v29 = vadd.f32 %v2767_v23, %v2319_v24 }
 0x87d   :  { %v2342_v32 = vmul.f32 %v2770_v9, %v2333_v22  ;;  %v2334_v47 = vmax.f32 %v2328_v50, 0.0 }
 0x87e   :  { %v2340_v38 = vmul.f32 %v2770_v9, %v2331_v31  ;;  %v2332_v8 = vmax.f32 %v2320_v29, 0.0  ;;  %v2517_v29 = vld [vmem:[%s4411_s1 + $0x178] sm:$0xff] }
 0x87f   :  { %v2351_v46 = vadd.f32 %v2771_v48, %v2342_v32  ;;  %v2343_v27 = vmul.f32 %v2770_v9, %v2334_v47  ;;  %v2518_v32 = vld [vmem:[%s4411_s1 + $0x180] sm:$0xff]  ;;  %v2519_v47 = vld [vmem:[%s4411_s1 + $0x188] sm:$0xff] }
 0x880   :  { %v2349_v52 = vadd.f32 %v2771_v48, %v2340_v38  ;;  %v2341_v13 = vmul.f32 %v2770_v9, %v2332_v8  ;;  %v2772_v9 = vld [vmem:[%s4411_s1 + $0x160] ss:$0 sm:$0xff]  ;;  %v2522_v38 = vpack.c.bf16 %v2518_v32, %v2517_v29  ;;  %v2520_v8 = vld [vmem:[%s4411_s1 + $0x190] sm:$0xff] }
 0x881   :  { %2355 = vst.msk [vmem:[#allocation3 + $0x10] sm:$0xff] %vm740_vm10, %v2351_v46  ;;  %v2352_v15 = vadd.f32 %v2771_v48, %v2343_v27  ;;  %v2523_v46 = vpack.c.bf16 %v2520_v8, %v2519_v47  ;;  %v2774_v27 = vld [vmem:[%s4411_s1 + $0x170] ss:$0 sm:$0xff] }
 0x882   :  { %2353 = vst.msk [vmem:[#allocation3] sm:$0xff] %vm740_vm10, %v2349_v52  ;;  %v2350_v56 = vadd.f32 %v2771_v48, %v2341_v13 }
 0x883   :  { %2356 = vst.msk [vmem:[#allocation3 + $0x18] sm:$0xff] %vm740_vm10, %v2352_v15 }
 0x884   :  { %2354 = vst.msk [vmem:[#allocation3 + $0x8] sm:$0xff] %vm740_vm10, %v2350_v56 }
 0x88a   :  { %v2358_v55 = vld [vmem:[#allocation3 + $0x10] ss:$2 sm:$0xff]  ;;  %v2360_v7 = vld [vmem:[#allocation3 + $0x11] ss:$2 sm:$0xff] }
 0x88b   :  { %v2362_v21 = vmax.f32 %v2358_v55, %v2360_v7  ;;  %v2357_v44 = vld [vmem:[#allocation3] ss:$2 sm:$0xff]  ;;  %v2359_v33 = vld [vmem:[#allocation3 + $0x1] ss:$2 sm:$0xff]  ;;  %v2509_v7 = vsub.s32 0, %v3390_v6 }
 0x88c   :  { %v2361_v54 = vmax.f32 %v2357_v44, %v2359_v33 }
 0x88d   :  { %2367 = vrot.lane.b32.xlu1 %v2362_v21, %s3346_s25  ;;  %v2514_v21 = vsub.s32 1, %v3390_v6  ;;  %v2598_v6 = vpack.c.bf16 %v2596_v14, %v2595_v5 }
 0x88e   :  { %2365 = vrot.lane.b32.xlu0 %v2361_v54, %s3346_s25 }
 0x8ff   :  { %v2368_v2 = vpop.permute.xlu1 %2367 }
 0x900   :  { %v2372_v28 = vsel %vm740_vm10, %v989_v4, %v2368_v2  ;;  %v2366_v57 = vpop.permute.xlu0 %2365 }
 0x901   :  { %v2382_v16 = vsel %vm2103_vm1, %v2372_v28, 0.0  ;;  %v2371_v62 = vsel %vm740_vm10, %v988_v19, %v2366_v57 }
 0x902   :  { %v2383_v18 = vrot.slane %v2382_v16, 4  ;;  %v2373_v42 = vsel %vm2103_vm1, %v2371_v62, 0.0 }
 0x903   :  { %v2374_v58 = vrot.slane %v2373_v42, 4 }
 0x904   :  { %v2384_v51 = vadd.f32 %v2383_v18, %v2382_v16 }
 0x905   :  { %v2375_v20 = vadd.f32 %v2374_v58, %v2373_v42 }
 0x906   :  { %v2385_v45 = vrot.slane %v2384_v51, 2 }
 0x907   :  { %v2376_v59 = vrot.slane %v2375_v20, 2 }
 0x908   :  { %v2386_v11 = vadd.f32 %v2385_v45, %v2384_v51 }
 0x909   :  { %v2377_v43 = vadd.f32 %v2376_v59, %v2375_v20 }
 0x90a   :  { %v2387_v12 = vrot.slane %v2386_v11, 1 }
 0x90b   :  { %v2378_v25 = vrot.slane %v2377_v43, 1 }
 0x90c   :  { %v2388_v36 = vadd.f32 %v2387_v12, %v2386_v11 }
 0x90d   :  { %v2379_v60 = vadd.f32 %v2378_v25, %v2377_v43 }
 0x90e   :  { %v2389_v23 = vmul.f32 0.125, %v2388_v36 }
 0x90f   :  { %v2381_v37 = vmul.f32 0.125, %v2379_v60 }
 0x911   :  { %v2391_v63 = vsel %vm2390_vm5, %v2381_v37, %v2389_v23 }
 0x912   :  { %v2396_v49 = vpack.c.bf16 %v2391_v63, %v2391_v63 }
 0x914   :  { %2916 = vmatmul.mubr.msk.bf16.vlgmr.msra.gmra.mrb[24].mxu0 %vm2103_vm1, %v2396_v49 }
 0x915   :  { %2929 = vmatprep.mubr.msk.bf16.mxu0 %vm3350_vm4, %v3343_v34  ;;  %2926 = vmatpush3.bf16.msra.mxu0 %v2522_v38 }
 0x916   :  { %2927 = vmatprep.subr.bf16.mxu0 %v3343_v34 }
 0x919   :  { %2928 = vmatpush3.bf16.msra.mxu0 %v2523_v46 }
 0x91a   :  { %2939 = vmatprep.subr.bf16.mxu0 %v3343_v34 }
 0x9e7   :  { %v2441_v30 = vpop.f32.mrb[24].mxu0 }
 0x9e8   :  { %v2442_v35 = vadd.f32 %v2772_v9, %v2441_v30  ;;  %v2917_v22 = vpop.f32.mrb[25].mxu0  ;;  %v2670_v30 = vld [vmem:[%s4411_s1 + $0x1b8] sm:$0xff] }
 0x9e9   :  { %v2444_v50 = vpop.f32.mrb[26].mxu0 }
 0x9ea   :  { %v2447_v24 = vmax.f32 %v2442_v35, 0.0  ;;  %v2918_v48 = vpop.f32.mrb[27].mxu0  ;;  %v2672_v35 = vpack.c.bf16 %v2670_v30, %v2670_v30  ;;  %v2778_v50 = vld [vmem:[%s4411_s1 + $0x1b0] ss:$0 sm:$0xff] }
 0x9ec   :  { %v2449_v31 = vpack.c.bf16 %v2447_v24, %v2447_v24  ;;  %v2682_v22 = vsel %vm764_vm3, %v2672_v35, 0  ;;  %vm2725_vm3 = vcmask 23552  }
 0x9ee   :  { %2922 = vmatmul.mubr.msk.bf16.vlgmr.msra.gmra.mrb[24].mxu1 %vm470_vm11, %v2449_v31 }
 0x9ef   :  { %2935 = vmatprep.mubr.msk.bf16.mxu1 %vm3350_vm4, %v3343_v34  ;;  %2934 = vmatpush3.bf16.msra.mxu1 %v2598_v6  ;;  %v2780_v6 = vld [vmem:[%s4411_s1 + $0x1c0] ss:$0 sm:$0xff] }
 0xac1   :  { %v2496_v41 = vpop.f32.mrb[24].mxu1 }
 0xac2   :  { %v2497_v10 = vadd.f32 %v2774_v27, %v2496_v41  ;;  %v2923_v52 = vpop.f32.mrb[25].mxu1 }
 0xac3   :  { %v2499_v13 = vpop.f32.mrb[26].mxu1 }
 0xac4   :  { %v2502_v40 = vsub.f32 0.0, %v2497_v10  ;;  %v2924_v1 = vpop.f32.mrb[27].mxu1 }
 0xac6   :  { %v2503_v15 = vmul.f32 1.442695, %v2502_v40 }
 0xac8   :  { %3313 = vpow2.f32 %v2503_v15 }
 0xad2   :  { %v3314_v56 = vpop.eup %3313 }
 0xad3   :  { %v2505_v55 = vadd.f32 1.0, %v3314_v56 }
 0xad5   :  { %3315 = vrcp.f32 %v2505_v55 }
 0xadf   :  { %v3316_v44 = vpop.eup %3315 }
 0xae0   :  { %v2510_v33 = vrot.slane %v3316_v44, %v2509_v7  ;;  %v2515_v54 = vrot.slane %v3316_v44, %v2514_v21 }
 0xae2   :  { %v2511_v39 = vmul.f32 %v2510_v33, %v2371_v62  ;;  %v2516_v3 = vmul.f32 %v2515_v54, %v2372_v28 }
 0xae4   :  { %v2521_v53 = vpack.c.bf16 %v2516_v3, %v2511_v39 }
 0xae6   :  { %2930 = vmatmul.mubr.msk.bf16.vlgmr.msra.gmra.mrb[28].mxu0 %vm2103_vm1, %v2521_v53 }
 0xae7   :  { %2941 = vmatprep.mubr.msk.bf16.mxu0 %vm3350_vm4, %v3343_v34  ;;  %2940 = vmatpush3.bf16.msra.mxu0 %v2682_v22 }
 0xbb9   :  { %v2566_v17 = vpop.f32.mrb[28].mxu0 }
 0xbba   :  { %v2567_v26 = vadd.f32 %v2776_v0, %v2566_v17  ;;  %v2931_v61 = vpop.f32.mrb[29].mxu0 }
 0xbbb   :  { %v2569_v4 = vpop.f32.mrb[30].mxu0 }
 0xbbc   :  { %v2575_v2 = vand.u32 2147483647, %v2567_v26  ;;  %v2570_v34 = vadd.f32 %v2776_v0, %v2569_v4  ;;  %v2932_v19 = vpop.f32.mrb[31].mxu0  ;;  %v2573_v59 = vmax.f32 %v2567_v26, 0.0 }
 0xbbe   :  { %v2577_v28 = vsub.f32 0.0, %v2575_v2  ;;  %v2576_v57 = vand.u32 2147483647, %v2570_v34  ;;  %v2574_v25 = vmax.f32 %v2570_v34, 0.0 }
 0xbc0   :  { %v2579_v16 = vmul.f32 1.442695, %v2577_v28  ;;  %v2578_v62 = vsub.f32 0.0, %v2576_v57 }
 0xbc2   :  { %3317 = vpow2.f32 %v2579_v16  ;;  %v2581_v18 = vmul.f32 1.442695, %v2578_v62 }
 0xbc4   :  { %3319 = vpow2.f32 %v2581_v18 }
 0xbcc   :  { %v3318_v42 = vpop.eup %3317 }
 0xbcd   :  { %v2583_v58 = vadd.f32 1.0, %v3318_v42 }
 0xbce   :  { %v3320_v51 = vpop.eup %3319 }
 0xbcf   :  { %3321 = vlog2.f32 %v2583_v58  ;;  %v2584_v20 = vadd.f32 1.0, %v3320_v51 }
 0xbd1   :  { %3323 = vlog2.f32 %v2584_v20 }
 0xbd9   :  { %v3322_v45 = vpop.eup %3321 }
 0xbda   :  { %v2586_v11 = vmul.f32 0.6931472, %v3322_v45 }
 0xbdb   :  { %v3324_v43 = vpop.eup %3323 }
 0xbdc   :  { %v2589_v12 = vadd.f32 %v2586_v11, %v2573_v59  ;;  %v2588_v36 = vmul.f32 0.6931472, %v3324_v43 }
 0xbde   :  { %3325 = vtanh.f32 %v2589_v12  ;;  %v2590_v60 = vadd.f32 %v2588_v36, %v2574_v25 }
 0xbe0   :  { %3327 = vtanh.f32 %v2590_v60 }
 0xbe8   :  { %v3326_v23 = vpop.eup %3325 }
 0xbe9   :  { %v2593_v63 = vmul.f32 %v3326_v23, %v2567_v26 }
 0xbea   :  { %v3328_v37 = vpop.eup %3327 }
 0xbeb   :  { %v2594_v49 = vmul.f32 %v3328_v37, %v2570_v34 }
 0xbed   :  { %v2597_v9 = vpack.c.bf16 %v2594_v49, %v2593_v63 }
 0xbef   :  { %2936 = vmatmul.mubr.msk.bf16.vlgmr.msra.gmra.mrb[28].mxu1 %vm740_vm10, %v2597_v9 }
 0xcc2   :  { %v2641_v24 = vpop.f32.mrb[28].mxu1 }
 0xcc3   :  { %v2642_v48 = vadd.f32 %v2778_v50, %v2641_v24  ;;  %v2937_v31 = vpop.f32.mrb[29].mxu1 }
 0xcc4   :  { %v2644_v29 = vpop.f32.mrb[30].mxu1 }
 0xcc5   :  { %v2650_v32 = vand.u32 2147483647, %v2642_v48  ;;  %v2645_v47 = vadd.f32 %v2778_v50, %v2644_v29  ;;  %v2938_v38 = vpop.f32.mrb[31].mxu1  ;;  %v2648_v56 = vmax.f32 %v2642_v48, 0.0 }
 0xcc7   :  { %v2652_v8 = vsub.f32 0.0, %v2650_v32  ;;  %v2651_v46 = vand.u32 2147483647, %v2645_v47  ;;  %v2649_v44 = vmax.f32 %v2645_v47, 0.0 }
 0xcc9   :  { %v2654_v27 = vmul.f32 1.442695, %v2652_v8  ;;  %v2653_v41 = vsub.f32 0.0, %v2651_v46 }
 0xccb   :  { %3329 = vpow2.f32 %v2654_v27  ;;  %v2656_v10 = vmul.f32 1.442695, %v2653_v41 }
 0xccd   :  { %3331 = vpow2.f32 %v2656_v10 }
 0xcd5   :  { %v3330_v52 = vpop.eup %3329 }
 0xcd6   :  { %v2658_v13 = vadd.f32 1.0, %v3330_v52 }
 0xcd7   :  { %v3332_v40 = vpop.eup %3331 }
 0xcd8   :  { %3333 = vlog2.f32 %v2658_v13  ;;  %v2659_v1 = vadd.f32 1.0, %v3332_v40 }
 0xcda   :  { %3335 = vlog2.f32 %v2659_v1 }
 0xce2   :  { %v3334_v15 = vpop.eup %3333 }
 0xce3   :  { %v2661_v55 = vmul.f32 0.6931472, %v3334_v15 }
 0xce4   :  { %v3336_v7 = vpop.eup %3335 }
 0xce5   :  { %v2664_v21 = vadd.f32 %v2661_v55, %v2648_v56  ;;  %v2663_v33 = vmul.f32 0.6931472, %v3336_v7 }
 0xce7   :  { %3337 = vtanh.f32 %v2664_v21  ;;  %v2665_v54 = vadd.f32 %v2663_v33, %v2649_v44 }
 0xce9   :  { %3339 = vtanh.f32 %v2665_v54 }
 0xcf1   :  { %v3338_v39 = vpop.eup %3337 }
 0xcf2   :  { %v2668_v53 = vmul.f32 %v3338_v39, %v2642_v48 }
 0xcf3   :  { %v3340_v3 = vpop.eup %3339 }
 0xcf4   :  { %v2669_v5 = vmul.f32 %v3340_v3, %v2645_v47 }
 0xcf6   :  { %v2671_v14 = vpack.c.bf16 %v2669_v5, %v2668_v53 }
 0xcf8   :  { %2942 = vmatmul.mubr.msk.bf16.vlgmr.msra.gmra.mrb[32].mxu0 %vm470_vm11, %v2671_v14 }
 0xdcb   :  { %v2718_v0 = vpop.f32.mrb[32].mxu0 }
 0xdcc   :  { %v2719_v17 = vadd.f32 %v2780_v6, %v2718_v0  ;;  %v2943_v26 = vpop.f32.mrb[33].mxu0 }
 0xdcd   :  { %v2721_v61 = vpop.f32.mrb[34].mxu0 }
 0xdce   :  { %2726 = vst.msk [vmem:[%s4412_s2] sm:$0xff] %vm2725_vm3, %v2719_v17  ;;  %v2722_v4 = vadd.f32 %v2780_v6, %v2721_v61  ;;  %v2944_v2 = vpop.f32.mrb[35].mxu0 }
 0xdd0   :  { %2727 = vst.msk [vmem:[%s4412_s2 + $0x8] sm:$0xff] %vm2725_vm3, %v2722_v4 }

</bundles_post_ra>
